<compile_context>
chip_gen: v7x
topology: tpu7x:2x2x1
jax: 0.10.0
libtpu: 0.0.40
codegen_flags: <defaults>
</compile_context>

<pallas_src>
import math

import jax
import jax.numpy as jnp
from jax.experimental import pallas as pl
from jax.experimental.pallas import tpu as pltpu

# Small, TPU-friendly synthetic config standing in for DistilBERT
# (hidden 768 -> 128, 12 heads -> 2, 6 layers -> 2, ffn 3072 -> 256).
B, S, H = 2, 16, 128
NH, HD = 2, 64          # num heads, head dim (NH * HD == H)
FFN = 256
LAYERS = 2
VOCAB = 64
EPS = 1e-12
BS = B * S

# ---- packed f32 vector-slab layout (one padded row per bias / LN param) -----
VWIDTH = 3 * H                      # widest vector (fused QKV bias)
R_EMB_G, R_EMB_B = 0, 1
R_LAYER0 = 2
R_BQKV, R_BO, R_G1, R_B1, R_BF1, R_BF2, R_G2, R_B2 = range(8)
ROWS_PER_LAYER = 8
R_BPRE = R_LAYER0 + LAYERS * ROWS_PER_LAYER
R_WCLS = R_BPRE + 1
R_BCLS = R_WCLS + 1
VROWS = ((R_BCLS + 1 + 7) // 8) * 8   # pad rows to a multiple of 8


# ---------------------------------------------------------------- kernel -----
def _ln(x, g, b):
    mu = jnp.mean(x, axis=-1, keepdims=True)
    var = jnp.mean((x - mu) ** 2, axis=-1, keepdims=True)
    return (x - mu) * jax.lax.rsqrt(var + EPS) * g + b


def _softmax_lastdim(x):
    m = jnp.max(x, axis=-1, keepdims=True)
    e = jnp.exp(x - m)
    return e * pl.reciprocal(jnp.sum(e, axis=-1, keepdims=True), approx=True)


def fused_forward_kernel(emb_ref, mask_ref, vec_ref, wqkv_ref, wo_ref,
                         w1_ref, w2_ref, o_ref):
    def vrow(r, width=H):
        # one packed f32 parameter row, sliced to its valid (128-aligned) width
        return vec_ref[r:r + 1, :width]

    # Embedding LayerNorm (f32), batch folded into rows: (B*S, H).
    x = _ln(emb_ref[...], vrow(R_EMB_G), vrow(R_EMB_B))

    # Additive attention bias computed once: (B, 1, S); 1.0 = keep, 0.0 = pad.
    bias = ((1.0 - mask_ref[...]) * -1e9)[:, None, :]

    scale = 1.0 / math.sqrt(HD)
    for l in range(LAYERS):  # static unroll over the 2 encoder layers
        base = R_LAYER0 + l * ROWS_PER_LAYER

        # Fused QKV projection: one (BS,H)x(H,3H) bf16 matmul, f32 accumulate,
        # bias added in f32, then a SINGLE bf16 cast of the whole qkv tensor.
        qkv = jnp.dot(x.astype(jnp.bfloat16), wqkv_ref[l],
                      preferred_element_type=jnp.float32) + vrow(base + R_BQKV, 3 * H)
        qkv = qkv.astype(jnp.bfloat16)                                  # (BS, 3H)

        ctx_heads = []
        for h in range(NH):  # static unroll over heads (B-batched einsums)
            q = qkv[:, h * HD:(h + 1) * HD].reshape(B, S, HD)
            k = qkv[:, H + h * HD:H + (h + 1) * HD].reshape(B, S, HD)
            v = qkv[:, 2 * H + h * HD:2 * H + (h + 1) * HD].reshape(B, S, HD)

            sc = jnp.einsum('bqd,bkd->bqk', q, k,
                            preferred_element_type=jnp.float32) * scale + bias
            p = _softmax_lastdim(sc).astype(jnp.bfloat16)               # (B, S, S)
            ctx = jnp.einsum('bqk,bkd->bqd', p, v,
                             preferred_element_type=jnp.float32)        # (B, S, HD)
            ctx_heads.append(ctx.reshape(BS, HD).astype(jnp.bfloat16))

        # Heads occupy adjacent 64-lane halves: one lane concat, then ONE
        # full-depth (K = H = 128) output projection — no per-head accumulation.
        ctx_all = jnp.concatenate(ctx_heads, axis=-1)                   # (BS, H) bf16
        attn = jnp.dot(ctx_all, wo_ref[l],
                       preferred_element_type=jnp.float32) + vrow(base + R_BO)
        h1 = _ln(x + attn, vrow(base + R_G1), vrow(base + R_B1))        # sa_layer_norm

        f = jnp.dot(h1.astype(jnp.bfloat16), w1_ref[l],
                    preferred_element_type=jnp.float32) + vrow(base + R_BF1, FFN)
        # TODO(synk): HF DistilBERT uses exact (erf) GELU; tanh approximation here.
        f = jax.nn.gelu(f, approximate=True)
        f = jnp.dot(f.astype(jnp.bfloat16), w2_ref[l],
                    preferred_element_type=jnp.float32) + vrow(base + R_BF2)
        x = _ln(h1 + f, vrow(base + R_G2), vrow(base + R_B2))           # output_layer_norm

    # CLS pooling via reshape + trivial slice (no 1-row concatenates).
    pooled = x.reshape(B, S, H)[:, :1, :].reshape(B, H)                 # (B, H)

    # pre_classifier (entry LAYERS of the wo stack) + tanh.
    y = jnp.dot(pooled.astype(jnp.bfloat16), wo_ref[LAYERS],
                preferred_element_type=jnp.float32) + vrow(R_BPRE)
    y = jnp.tanh(y)
    # TODO(synk): nn.Dropout(0.1) is identity at inference time; no-op here.
    logits = (jnp.sum(y * vrow(R_WCLS), axis=-1, keepdims=True)
              + vrow(R_BCLS)[:, :1])                                    # (B, 1)
    out = jax.nn.sigmoid(logits)
    # Lane-dense write: broadcast over H lanes; the wrapper slices column 0.
    o_ref[...] = jnp.broadcast_to(out, (B, H)).astype(o_ref.dtype)


# ------------------------------------------------------------ param pack -----
def pack_params(params):
    """One-time packing of per-tensor params into the kernel's few slabs."""
    def row(v):
        v = jnp.asarray(v, jnp.float32).reshape(1, -1)
        return jnp.pad(v, ((0, 0), (0, VWIDTH - v.shape[1])))

    rows = [row(params["emb_g"]), row(params["emb_b"])]
    wqkv, wo, w1, w2 = [], [], [], []
    for (Wqkv, bqkv, Wo, bo, g1, b1, W1, bf1, W2, bf2, g2, b2) in params["layers"]:
        wqkv.append(Wqkv); wo.append(Wo); w1.append(W1); w2.append(W2)
        rows += [row(bqkv), row(bo), row(g1), row(b1),
                 row(bf1), row(bf2), row(g2), row(b2)]
    rows += [row(params["b_pre"]), row(params["w_cls"]), row(params["b_cls"])]
    rows += [jnp.zeros((1, VWIDTH), jnp.float32)] * (VROWS - len(rows))
    wo.append(params["w_pre"])   # pre_classifier rides the (H, H) stack

    return dict(
        word_emb=params["word_emb"], pos_emb=params["pos_emb"],
        vec=jnp.concatenate(rows, axis=0),                    # (VROWS, 3H) f32
        wqkv=jnp.stack(wqkv).astype(jnp.bfloat16),            # (L, H, 3H)
        wo=jnp.stack(wo).astype(jnp.bfloat16),                # (L+1, H, H)
        w1=jnp.stack(w1).astype(jnp.bfloat16),                # (L, H, FFN)
        w2=jnp.stack(w2).astype(jnp.bfloat16),                # (L, FFN, H)
    )


# --------------------------------------------------------------- wrapper -----
def _full_spec(shape):
    # Whole-array block, constant index map (single grid point).
    return pl.BlockSpec(shape, lambda i, n=len(shape): (0,) * n)


def forward(packed, input_ids, attention_mask, token_type_ids=None):
    # token_type_ids accepted but unused — DistilBERT has no token-type
    # embeddings, matching the reference module's forward.
    del token_type_ids

    # Embedding lookup (gather) kept as plain-JAX glue outside the kernel.
    pos = jnp.arange(S)
    emb = packed["word_emb"][input_ids] + packed["pos_emb"][pos][None, :, :]
    emb = emb.reshape(BS, H).astype(jnp.float32)
    mask = attention_mask.astype(jnp.float32)                 # (B, S)

    args = (emb, mask, packed["vec"], packed["wqkv"], packed["wo"],
            packed["w1"], packed["w2"])

    out = pl.pallas_call(
        fused_forward_kernel,
        out_shape=jax.ShapeDtypeStruct((B, H), jnp.float32),
        grid_spec=pltpu.PrefetchScalarGridSpec(
            num_scalar_prefetch=0, grid=(1,),
            in_specs=[_full_spec(a.shape) for a in args],
            out_specs=_full_spec((B, H))),
        compiler_params=pltpu.CompilerParams(
            dimension_semantics=("arbitrary",)),
    )(*args)
    return out[:, :1]                                         # (B, 1) sigmoid scores


# ------------------------------------------------------------------- init ----
def init_params(key):
    keys = iter(jax.random.split(key, 64))

    def w(shape, dtype=jnp.bfloat16, scale=0.02):
        return (scale * jax.random.normal(next(keys), shape)).astype(dtype)

    params = dict(
        word_emb=w((VOCAB, H), jnp.float32),
        pos_emb=w((S, H), jnp.float32),
        emb_g=jnp.ones((1, H), jnp.float32),
        emb_b=jnp.zeros((1, H), jnp.float32),
        w_pre=w((H, H)), b_pre=jnp.zeros((1, H), jnp.float32),
        w_cls=w((1, H), jnp.float32), b_cls=jnp.zeros((1, 1), jnp.float32),
        layers=[],
    )
    for _ in range(LAYERS):
        params["layers"].append([
            w((H, 3 * H)), jnp.zeros((1, 3 * H), jnp.float32),               # Wqkv, bqkv
            w((H, H)), jnp.zeros((1, H), jnp.float32),                       # Wo, bo
            jnp.ones((1, H), jnp.float32), jnp.zeros((1, H), jnp.float32),   # sa LN
            w((H, FFN)), jnp.zeros((1, FFN), jnp.float32),                   # FFN in
            w((FFN, H)), jnp.zeros((1, H), jnp.float32),                     # FFN out
            jnp.ones((1, H), jnp.float32), jnp.zeros((1, H), jnp.float32),   # out LN
        ])
    return params


if __name__ == "__main__":
    key = jax.random.PRNGKey(0)
    pkey, ikey = jax.random.split(key)
    params = init_params(pkey)
    packed = pack_params(params)     # one-time slab packing (not per call)

    input_ids = jax.random.randint(ikey, (B, S), 0, VOCAB, dtype=jnp.int32)
    attention_mask = jnp.ones((B, S), jnp.int32).at[:, S - 4:].set(0)
    token_type_ids = jnp.zeros((B, S), jnp.int32)

    out = forward(packed, input_ids, attention_mask, token_type_ids)
    jax.block_until_ready(out)
    assert out.shape == (B, 1) and out.dtype == jnp.float32
    assert bool(jnp.all((out >= 0.0) & (out <= 1.0)))
    print("KERNEL_OK")
</pallas_src>

<mosaic_0001>
module attributes {stable_mosaic.version = 11 : i64} {
  func.func @fused_forward_kernel(%arg0: i32, %arg1: memref<32x128xf32, #tpu.memory_space<vmem>>, %arg2: memref<2x16xf32, #tpu.memory_space<vmem>>, %arg3: memref<24x384xf32, #tpu.memory_space<vmem>>, %arg4: memref<2x128x384xbf16, #tpu.memory_space<vmem>>, %arg5: memref<3x128x128xbf16, #tpu.memory_space<vmem>>, %arg6: memref<2x128x256xbf16, #tpu.memory_space<vmem>>, %arg7: memref<2x256x128xbf16, #tpu.memory_space<vmem>>, %arg8: memref<2x128xf32, #tpu.memory_space<vmem>>) attributes {dimension_semantics = [#tpu.dimension_semantics<arbitrary>], iteration_bounds = array<i64: 1>, scalar_prefetch = 0 : i64, scratch_operands = 0 : i64, tpu.core_type = #tpu.core_type<tc>, window_params = [{pipeline_mode = #tpu.pipeline_mode<synchronous>, transform_indices = @transform_0, window_bounds = array<i64: 32, 128>}, {pipeline_mode = #tpu.pipeline_mode<synchronous>, transform_indices = @transform_1, window_bounds = array<i64: 2, 16>}, {pipeline_mode = #tpu.pipeline_mode<synchronous>, transform_indices = @transform_2, window_bounds = array<i64: 24, 384>}, {pipeline_mode = #tpu.pipeline_mode<synchronous>, transform_indices = @transform_3, window_bounds = array<i64: 2, 128, 384>}, {pipeline_mode = #tpu.pipeline_mode<synchronous>, transform_indices = @transform_4, window_bounds = array<i64: 3, 128, 128>}, {pipeline_mode = #tpu.pipeline_mode<synchronous>, transform_indices = @transform_5, window_bounds = array<i64: 2, 128, 256>}, {pipeline_mode = #tpu.pipeline_mode<synchronous>, transform_indices = @transform_6, window_bounds = array<i64: 2, 256, 128>}, {pipeline_mode = #tpu.pipeline_mode<synchronous>, transform_indices = @transform_7, window_bounds = array<i64: 2, 128>}]} {
    %c0 = arith.constant 0 : index
    %c0_0 = arith.constant 0 : index
    %0 = vector.load %arg1[%c0, %c0_0] : memref<32x128xf32, #tpu.memory_space<vmem>>, vector<32x128xf32>
    %c0_1 = arith.constant 0 : index
    %c0_2 = arith.constant 0 : index
    %1 = vector.load %arg3[%c0_1, %c0_2] : memref<24x384xf32, #tpu.memory_space<vmem>>, vector<1x128xf32>
    %c1 = arith.constant 1 : index
    %c0_3 = arith.constant 0 : index
    %2 = vector.load %arg3[%c1, %c0_3] : memref<24x384xf32, #tpu.memory_space<vmem>>, vector<1x128xf32>
    %cst = arith.constant dense<0.000000e+00> : vector<32xf32>
    %3 = vector.multi_reduction <add>, %0, %cst [1] : vector<32x128xf32> to vector<32xf32>
    %4 = vector.shape_cast %3 : vector<32xf32> to vector<32x1xf32>
    %cst_4 = arith.constant 1.280000e+02 : f32
    %5 = vector.broadcast %cst_4 : f32 to vector<32x1xf32>
    %6 = arith.divf %4, %5 : vector<32x1xf32>
    %7 = vector.broadcast %6 : vector<32x1xf32> to vector<32x128xf32>
    %8 = arith.subf %0, %7 : vector<32x128xf32>
    %9 = arith.mulf %8, %8 : vector<32x128xf32>
    %cst_5 = arith.constant dense<0.000000e+00> : vector<32xf32>
    %10 = vector.multi_reduction <add>, %9, %cst_5 [1] : vector<32x128xf32> to vector<32xf32>
    %11 = vector.shape_cast %10 : vector<32xf32> to vector<32x1xf32>
    %cst_6 = arith.constant 1.280000e+02 : f32
    %12 = vector.broadcast %cst_6 : f32 to vector<32x1xf32>
    %13 = arith.divf %11, %12 : vector<32x1xf32>
    %14 = vector.broadcast %6 : vector<32x1xf32> to vector<32x128xf32>
    %15 = arith.subf %0, %14 : vector<32x128xf32>
    %cst_7 = arith.constant 9.99999996E-13 : f32
    %16 = vector.broadcast %cst_7 : f32 to vector<32x1xf32>
    %17 = arith.addf %13, %16 : vector<32x1xf32>
    %18 = math.rsqrt %17 : vector<32x1xf32>
    %19 = vector.broadcast %18 : vector<32x1xf32> to vector<32x128xf32>
    %20 = arith.mulf %15, %19 : vector<32x128xf32>
    %21 = vector.broadcast %1 : vector<1x128xf32> to vector<32x128xf32>
    %22 = arith.mulf %20, %21 : vector<32x128xf32>
    %23 = vector.broadcast %2 : vector<1x128xf32> to vector<32x128xf32>
    %24 = arith.addf %22, %23 : vector<32x128xf32>
    %c0_8 = arith.constant 0 : index
    %c0_9 = arith.constant 0 : index
    %25 = vector.load %arg2[%c0_8, %c0_9] : memref<2x16xf32, #tpu.memory_space<vmem>>, vector<2x16xf32>
    %cst_10 = arith.constant 1.000000e+00 : f32
    %26 = vector.broadcast %cst_10 : f32 to vector<2x16xf32>
    %27 = arith.subf %26, %25 : vector<2x16xf32>
    %cst_11 = arith.constant -1.000000e+09 : f32
    %28 = vector.broadcast %cst_11 : f32 to vector<2x16xf32>
    %29 = arith.mulf %27, %28 : vector<2x16xf32>
    %30 = vector.shape_cast %29 : vector<2x16xf32> to vector<2x1x16xf32>
    %31 = arith.truncf %24 : vector<32x128xf32> to vector<32x128xbf16>
    %c0_12 = arith.constant 0 : index
    %c0_13 = arith.constant 0 : index
    %c0_14 = arith.constant 0 : index
    %32 = vector.load %arg4[%c0_12, %c0_13, %c0_14] : memref<2x128x384xbf16, #tpu.memory_space<vmem>>, vector<1x128x384xbf16>
    %33 = vector.shape_cast %32 : vector<1x128x384xbf16> to vector<128x384xbf16>
    %cst_15 = arith.constant dense<0.000000e+00> : vector<32x384xf32>
    %34 = tpu.matmul %31, %33, %cst_15 {dimension_numbers = #tpu.dot_dimension_numbers<[1], [0], [0], [1], [0, 0, 1, 1], [], []>} : vector<32x128xbf16>, vector<128x384xbf16>, vector<32x384xf32> -> vector<32x384xf32>
    %c2 = arith.constant 2 : index
    %c0_16 = arith.constant 0 : index
    %35 = vector.load %arg3[%c2, %c0_16] : memref<24x384xf32, #tpu.memory_space<vmem>>, vector<1x384xf32>
    %36 = vector.broadcast %35 : vector<1x384xf32> to vector<32x384xf32>
    %37 = arith.addf %34, %36 : vector<32x384xf32>
    %38 = arith.truncf %37 : vector<32x384xf32> to vector<32x384xbf16>
    %39 = vector.extract_strided_slice %38 {offsets = [0, 0], sizes = [32, 64], strides = [1, 1]} : vector<32x384xbf16> to vector<32x64xbf16>
    %40 = vector.shape_cast %39 : vector<32x64xbf16> to vector<2x16x64xbf16>
    %41 = vector.extract_strided_slice %38 {offsets = [0, 128], sizes = [32, 64], strides = [1, 1]} : vector<32x384xbf16> to vector<32x64xbf16>
    %42 = vector.shape_cast %41 : vector<32x64xbf16> to vector<2x16x64xbf16>
    %43 = vector.extract_strided_slice %38 {offsets = [0, 256], sizes = [32, 64], strides = [1, 1]} : vector<32x384xbf16> to vector<32x64xbf16>
    %44 = vector.shape_cast %43 : vector<32x64xbf16> to vector<2x16x64xbf16>
    "tpu.trace_start"() <{level = 10 : i32, message = "bqd,bkd->bqk"}> : () -> ()
    %cst_17 = arith.constant dense<0.000000e+00> : vector<2x16x16xf32>
    %45 = tpu.matmul %40, %42, %cst_17 {dimension_numbers = #tpu.dot_dimension_numbers<[2], [2], [1], [1], [0, 0, 0, 1, 1, 1], [0], [0]>} : vector<2x16x64xbf16>, vector<2x16x64xbf16>, vector<2x16x16xf32> -> vector<2x16x16xf32>
    "tpu.trace_stop"() : () -> ()
    %cst_18 = arith.constant 1.250000e-01 : f32
    %46 = vector.broadcast %cst_18 : f32 to vector<2x16x16xf32>
    %47 = arith.mulf %45, %46 : vector<2x16x16xf32>
    %48 = vector.broadcast %30 : vector<2x1x16xf32> to vector<2x16x16xf32>
    %49 = arith.addf %47, %48 : vector<2x16x16xf32>
    %cst_19 = arith.constant dense<0xFF800000> : vector<2x16xf32>
    %50 = vector.multi_reduction <maximumf>, %49, %cst_19 [2] : vector<2x16x16xf32> to vector<2x16xf32>
    %51 = vector.shape_cast %50 : vector<2x16xf32> to vector<2x16x1xf32>
    %52 = vector.broadcast %51 : vector<2x16x1xf32> to vector<2x16x16xf32>
    %53 = arith.subf %49, %52 : vector<2x16x16xf32>
    %54 = math.exp %53 : vector<2x16x16xf32>
    %cst_20 = arith.constant dense<0.000000e+00> : vector<2x16xf32>
    %55 = vector.multi_reduction <add>, %54, %cst_20 [2] : vector<2x16x16xf32> to vector<2x16xf32>
    %56 = vector.shape_cast %55 : vector<2x16xf32> to vector<2x16x1xf32>
    %57 = tpu.reciprocal %56 {approx = true} : vector<2x16x1xf32> -> vector<2x16x1xf32>
    %58 = vector.broadcast %57 : vector<2x16x1xf32> to vector<2x16x16xf32>
    %59 = arith.mulf %54, %58 : vector<2x16x16xf32>
    %60 = arith.truncf %59 : vector<2x16x16xf32> to vector<2x16x16xbf16>
    "tpu.trace_start"() <{level = 10 : i32, message = "bqk,bkd->bqd"}> : () -> ()
    %cst_21 = arith.constant dense<0.000000e+00> : vector<2x16x64xf32>
    %61 = tpu.matmul %60, %44, %cst_21 {dimension_numbers = #tpu.dot_dimension_numbers<[2], [1], [1], [2], [0, 0, 0, 1, 1, 2], [0], [0]>} : vector<2x16x16xbf16>, vector<2x16x64xbf16>, vector<2x16x64xf32> -> vector<2x16x64xf32>
    "tpu.trace_stop"() : () -> ()
    %62 = vector.shape_cast %61 : vector<2x16x64xf32> to vector<32x64xf32>
    %63 = arith.truncf %62 : vector<32x64xf32> to vector<32x64xbf16>
    %64 = vector.extract_strided_slice %38 {offsets = [0, 64], sizes = [32, 64], strides = [1, 1]} : vector<32x384xbf16> to vector<32x64xbf16>
    %65 = vector.shape_cast %64 : vector<32x64xbf16> to vector<2x16x64xbf16>
    %66 = vector.extract_strided_slice %38 {offsets = [0, 192], sizes = [32, 64], strides = [1, 1]} : vector<32x384xbf16> to vector<32x64xbf16>
    %67 = vector.shape_cast %66 : vector<32x64xbf16> to vector<2x16x64xbf16>
    %68 = vector.extract_strided_slice %38 {offsets = [0, 320], sizes = [32, 64], strides = [1, 1]} : vector<32x384xbf16> to vector<32x64xbf16>
    %69 = vector.shape_cast %68 : vector<32x64xbf16> to vector<2x16x64xbf16>
    "tpu.trace_start"() <{level = 10 : i32, message = "bqd,bkd->bqk"}> : () -> ()
    %cst_22 = arith.constant dense<0.000000e+00> : vector<2x16x16xf32>
    %70 = tpu.matmul %65, %67, %cst_22 {dimension_numbers = #tpu.dot_dimension_numbers<[2], [2], [1], [1], [0, 0, 0, 1, 1, 1], [0], [0]>} : vector<2x16x64xbf16>, vector<2x16x64xbf16>, vector<2x16x16xf32> -> vector<2x16x16xf32>
    "tpu.trace_stop"() : () -> ()
    %cst_23 = arith.constant 1.250000e-01 : f32
    %71 = vector.broadcast %cst_23 : f32 to vector<2x16x16xf32>
    %72 = arith.mulf %70, %71 : vector<2x16x16xf32>
    %73 = vector.broadcast %30 : vector<2x1x16xf32> to vector<2x16x16xf32>
    %74 = arith.addf %72, %73 : vector<2x16x16xf32>
    %cst_24 = arith.constant dense<0xFF800000> : vector<2x16xf32>
    %75 = vector.multi_reduction <maximumf>, %74, %cst_24 [2] : vector<2x16x16xf32> to vector<2x16xf32>
    %76 = vector.shape_cast %75 : vector<2x16xf32> to vector<2x16x1xf32>
    %77 = vector.broadcast %76 : vector<2x16x1xf32> to vector<2x16x16xf32>
    %78 = arith.subf %74, %77 : vector<2x16x16xf32>
    %79 = math.exp %78 : vector<2x16x16xf32>
    %cst_25 = arith.constant dense<0.000000e+00> : vector<2x16xf32>
    %80 = vector.multi_reduction <add>, %79, %cst_25 [2] : vector<2x16x16xf32> to vector<2x16xf32>
    %81 = vector.shape_cast %80 : vector<2x16xf32> to vector<2x16x1xf32>
    %82 = tpu.reciprocal %81 {approx = true} : vector<2x16x1xf32> -> vector<2x16x1xf32>
    %83 = vector.broadcast %82 : vector<2x16x1xf32> to vector<2x16x16xf32>
    %84 = arith.mulf %79, %83 : vector<2x16x16xf32>
    %85 = arith.truncf %84 : vector<2x16x16xf32> to vector<2x16x16xbf16>
    "tpu.trace_start"() <{level = 10 : i32, message = "bqk,bkd->bqd"}> : () -> ()
    %cst_26 = arith.constant dense<0.000000e+00> : vector<2x16x64xf32>
    %86 = tpu.matmul %85, %69, %cst_26 {dimension_numbers = #tpu.dot_dimension_numbers<[2], [1], [1], [2], [0, 0, 0, 1, 1, 2], [0], [0]>} : vector<2x16x16xbf16>, vector<2x16x64xbf16>, vector<2x16x64xf32> -> vector<2x16x64xf32>
    "tpu.trace_stop"() : () -> ()
    %87 = vector.shape_cast %86 : vector<2x16x64xf32> to vector<32x64xf32>
    %88 = arith.truncf %87 : vector<32x64xf32> to vector<32x64xbf16>
    %89 = tpu.concatenate %63, %88 in 1 : vector<32x64xbf16>, vector<32x64xbf16> -> vector<32x128xbf16>
    %c0_27 = arith.constant 0 : index
    %c0_28 = arith.constant 0 : index
    %c0_29 = arith.constant 0 : index
    %90 = vector.load %arg5[%c0_27, %c0_28, %c0_29] : memref<3x128x128xbf16, #tpu.memory_space<vmem>>, vector<1x128x128xbf16>
    %91 = vector.shape_cast %90 : vector<1x128x128xbf16> to vector<128x128xbf16>
    %cst_30 = arith.constant dense<0.000000e+00> : vector<32x128xf32>
    %92 = tpu.matmul %89, %91, %cst_30 {dimension_numbers = #tpu.dot_dimension_numbers<[1], [0], [0], [1], [0, 0, 1, 1], [], []>} : vector<32x128xbf16>, vector<128x128xbf16>, vector<32x128xf32> -> vector<32x128xf32>
    %c3 = arith.constant 3 : index
    %c0_31 = arith.constant 0 : index
    %93 = vector.load %arg3[%c3, %c0_31] : memref<24x384xf32, #tpu.memory_space<vmem>>, vector<1x128xf32>
    %94 = vector.broadcast %93 : vector<1x128xf32> to vector<32x128xf32>
    %95 = arith.addf %92, %94 : vector<32x128xf32>
    %96 = arith.addf %24, %95 : vector<32x128xf32>
    %c4 = arith.constant 4 : index
    %c0_32 = arith.constant 0 : index
    %97 = vector.load %arg3[%c4, %c0_32] : memref<24x384xf32, #tpu.memory_space<vmem>>, vector<1x128xf32>
    %c5 = arith.constant 5 : index
    %c0_33 = arith.constant 0 : index
    %98 = vector.load %arg3[%c5, %c0_33] : memref<24x384xf32, #tpu.memory_space<vmem>>, vector<1x128xf32>
    %cst_34 = arith.constant dense<0.000000e+00> : vector<32xf32>
    %99 = vector.multi_reduction <add>, %96, %cst_34 [1] : vector<32x128xf32> to vector<32xf32>
    %100 = vector.shape_cast %99 : vector<32xf32> to vector<32x1xf32>
    %cst_35 = arith.constant 1.280000e+02 : f32
    %101 = vector.broadcast %cst_35 : f32 to vector<32x1xf32>
    %102 = arith.divf %100, %101 : vector<32x1xf32>
    %103 = vector.broadcast %102 : vector<32x1xf32> to vector<32x128xf32>
    %104 = arith.subf %96, %103 : vector<32x128xf32>
    %105 = arith.mulf %104, %104 : vector<32x128xf32>
    %cst_36 = arith.constant dense<0.000000e+00> : vector<32xf32>
    %106 = vector.multi_reduction <add>, %105, %cst_36 [1] : vector<32x128xf32> to vector<32xf32>
    %107 = vector.shape_cast %106 : vector<32xf32> to vector<32x1xf32>
    %cst_37 = arith.constant 1.280000e+02 : f32
    %108 = vector.broadcast %cst_37 : f32 to vector<32x1xf32>
    %109 = arith.divf %107, %108 : vector<32x1xf32>
    %110 = vector.broadcast %102 : vector<32x1xf32> to vector<32x128xf32>
    %111 = arith.subf %96, %110 : vector<32x128xf32>
    %cst_38 = arith.constant 9.99999996E-13 : f32
    %112 = vector.broadcast %cst_38 : f32 to vector<32x1xf32>
    %113 = arith.addf %109, %112 : vector<32x1xf32>
    %114 = math.rsqrt %113 : vector<32x1xf32>
    %115 = vector.broadcast %114 : vector<32x1xf32> to vector<32x128xf32>
    %116 = arith.mulf %111, %115 : vector<32x128xf32>
    %117 = vector.broadcast %97 : vector<1x128xf32> to vector<32x128xf32>
    %118 = arith.mulf %116, %117 : vector<32x128xf32>
    %119 = vector.broadcast %98 : vector<1x128xf32> to vector<32x128xf32>
    %120 = arith.addf %118, %119 : vector<32x128xf32>
    %121 = arith.truncf %120 : vector<32x128xf32> to vector<32x128xbf16>
    %c0_39 = arith.constant 0 : index
    %c0_40 = arith.constant 0 : index
    %c0_41 = arith.constant 0 : index
    %122 = vector.load %arg6[%c0_39, %c0_40, %c0_41] : memref<2x128x256xbf16, #tpu.memory_space<vmem>>, vector<1x128x256xbf16>
    %123 = vector.shape_cast %122 : vector<1x128x256xbf16> to vector<128x256xbf16>
    %cst_42 = arith.constant dense<0.000000e+00> : vector<32x256xf32>
    %124 = tpu.matmul %121, %123, %cst_42 {dimension_numbers = #tpu.dot_dimension_numbers<[1], [0], [0], [1], [0, 0, 1, 1], [], []>} : vector<32x128xbf16>, vector<128x256xbf16>, vector<32x256xf32> -> vector<32x256xf32>
    %c6 = arith.constant 6 : index
    %c0_43 = arith.constant 0 : index
    %125 = vector.load %arg3[%c6, %c0_43] : memref<24x384xf32, #tpu.memory_space<vmem>>, vector<1x256xf32>
    %126 = vector.broadcast %125 : vector<1x256xf32> to vector<32x256xf32>
    %127 = arith.addf %124, %126 : vector<32x256xf32>
    %128 = arith.mulf %127, %127 : vector<32x256xf32>
    %129 = arith.mulf %127, %128 : vector<32x256xf32>
    %cst_44 = arith.constant 4.471500e-02 : f32
    %130 = vector.broadcast %cst_44 : f32 to vector<32x256xf32>
    %131 = arith.mulf %130, %129 : vector<32x256xf32>
    %132 = arith.addf %127, %131 : vector<32x256xf32>
    %cst_45 = arith.constant 0.797884583 : f32
    %133 = vector.broadcast %cst_45 : f32 to vector<32x256xf32>
    %134 = arith.mulf %133, %132 : vector<32x256xf32>
    %135 = math.tanh %134 : vector<32x256xf32>
    %cst_46 = arith.constant 1.000000e+00 : f32
    %136 = vector.broadcast %cst_46 : f32 to vector<32x256xf32>
    %137 = arith.addf %136, %135 : vector<32x256xf32>
    %cst_47 = arith.constant 5.000000e-01 : f32
    %138 = vector.broadcast %cst_47 : f32 to vector<32x256xf32>
    %139 = arith.mulf %138, %137 : vector<32x256xf32>
    %140 = arith.mulf %127, %139 : vector<32x256xf32>
    %141 = arith.truncf %140 : vector<32x256xf32> to vector<32x256xbf16>
    %c0_48 = arith.constant 0 : index
    %c0_49 = arith.constant 0 : index
    %c0_50 = arith.constant 0 : index
    %142 = vector.load %arg7[%c0_48, %c0_49, %c0_50] : memref<2x256x128xbf16, #tpu.memory_space<vmem>>, vector<1x256x128xbf16>
    %143 = vector.shape_cast %142 : vector<1x256x128xbf16> to vector<256x128xbf16>
    %cst_51 = arith.constant dense<0.000000e+00> : vector<32x128xf32>
    %144 = tpu.matmul %141, %143, %cst_51 {dimension_numbers = #tpu.dot_dimension_numbers<[1], [0], [0], [1], [0, 0, 1, 1], [], []>} : vector<32x256xbf16>, vector<256x128xbf16>, vector<32x128xf32> -> vector<32x128xf32>
    %c7 = arith.constant 7 : index
    %c0_52 = arith.constant 0 : index
    %145 = vector.load %arg3[%c7, %c0_52] : memref<24x384xf32, #tpu.memory_space<vmem>>, vector<1x128xf32>
    %146 = vector.broadcast %145 : vector<1x128xf32> to vector<32x128xf32>
    %147 = arith.addf %144, %146 : vector<32x128xf32>
    %148 = arith.addf %120, %147 : vector<32x128xf32>
    %c8 = arith.constant 8 : index
    %c0_53 = arith.constant 0 : index
    %149 = vector.load %arg3[%c8, %c0_53] : memref<24x384xf32, #tpu.memory_space<vmem>>, vector<1x128xf32>
    %c9 = arith.constant 9 : index
    %c0_54 = arith.constant 0 : index
    %150 = vector.load %arg3[%c9, %c0_54] : memref<24x384xf32, #tpu.memory_space<vmem>>, vector<1x128xf32>
    %cst_55 = arith.constant dense<0.000000e+00> : vector<32xf32>
    %151 = vector.multi_reduction <add>, %148, %cst_55 [1] : vector<32x128xf32> to vector<32xf32>
    %152 = vector.shape_cast %151 : vector<32xf32> to vector<32x1xf32>
    %cst_56 = arith.constant 1.280000e+02 : f32
    %153 = vector.broadcast %cst_56 : f32 to vector<32x1xf32>
    %154 = arith.divf %152, %153 : vector<32x1xf32>
    %155 = vector.broadcast %154 : vector<32x1xf32> to vector<32x128xf32>
    %156 = arith.subf %148, %155 : vector<32x128xf32>
    %157 = arith.mulf %156, %156 : vector<32x128xf32>
    %cst_57 = arith.constant dense<0.000000e+00> : vector<32xf32>
    %158 = vector.multi_reduction <add>, %157, %cst_57 [1] : vector<32x128xf32> to vector<32xf32>
    %159 = vector.shape_cast %158 : vector<32xf32> to vector<32x1xf32>
    %cst_58 = arith.constant 1.280000e+02 : f32
    %160 = vector.broadcast %cst_58 : f32 to vector<32x1xf32>
    %161 = arith.divf %159, %160 : vector<32x1xf32>
    %162 = vector.broadcast %154 : vector<32x1xf32> to vector<32x128xf32>
    %163 = arith.subf %148, %162 : vector<32x128xf32>
    %cst_59 = arith.constant 9.99999996E-13 : f32
    %164 = vector.broadcast %cst_59 : f32 to vector<32x1xf32>
    %165 = arith.addf %161, %164 : vector<32x1xf32>
    %166 = math.rsqrt %165 : vector<32x1xf32>
    %167 = vector.broadcast %166 : vector<32x1xf32> to vector<32x128xf32>
    %168 = arith.mulf %163, %167 : vector<32x128xf32>
    %169 = vector.broadcast %149 : vector<1x128xf32> to vector<32x128xf32>
    %170 = arith.mulf %168, %169 : vector<32x128xf32>
    %171 = vector.broadcast %150 : vector<1x128xf32> to vector<32x128xf32>
    %172 = arith.addf %170, %171 : vector<32x128xf32>
    %173 = arith.truncf %172 : vector<32x128xf32> to vector<32x128xbf16>
    %c1_60 = arith.constant 1 : index
    %c0_61 = arith.constant 0 : index
    %c0_62 = arith.constant 0 : index
    %174 = vector.load %arg4[%c1_60, %c0_61, %c0_62] : memref<2x128x384xbf16, #tpu.memory_space<vmem>>, vector<1x128x384xbf16>
    %175 = vector.shape_cast %174 : vector<1x128x384xbf16> to vector<128x384xbf16>
    %cst_63 = arith.constant dense<0.000000e+00> : vector<32x384xf32>
    %176 = tpu.matmul %173, %175, %cst_63 {dimension_numbers = #tpu.dot_dimension_numbers<[1], [0], [0], [1], [0, 0, 1, 1], [], []>} : vector<32x128xbf16>, vector<128x384xbf16>, vector<32x384xf32> -> vector<32x384xf32>
    %c10 = arith.constant 10 : index
    %c0_64 = arith.constant 0 : index
    %177 = vector.load %arg3[%c10, %c0_64] : memref<24x384xf32, #tpu.memory_space<vmem>>, vector<1x384xf32>
    %178 = vector.broadcast %177 : vector<1x384xf32> to vector<32x384xf32>
    %179 = arith.addf %176, %178 : vector<32x384xf32>
    %180 = arith.truncf %179 : vector<32x384xf32> to vector<32x384xbf16>
    %181 = vector.extract_strided_slice %180 {offsets = [0, 0], sizes = [32, 64], strides = [1, 1]} : vector<32x384xbf16> to vector<32x64xbf16>
    %182 = vector.shape_cast %181 : vector<32x64xbf16> to vector<2x16x64xbf16>
    %183 = vector.extract_strided_slice %180 {offsets = [0, 128], sizes = [32, 64], strides = [1, 1]} : vector<32x384xbf16> to vector<32x64xbf16>
    %184 = vector.shape_cast %183 : vector<32x64xbf16> to vector<2x16x64xbf16>
    %185 = vector.extract_strided_slice %180 {offsets = [0, 256], sizes = [32, 64], strides = [1, 1]} : vector<32x384xbf16> to vector<32x64xbf16>
    %186 = vector.shape_cast %185 : vector<32x64xbf16> to vector<2x16x64xbf16>
    "tpu.trace_start"() <{level = 10 : i32, message = "bqd,bkd->bqk"}> : () -> ()
    %cst_65 = arith.constant dense<0.000000e+00> : vector<2x16x16xf32>
    %187 = tpu.matmul %182, %184, %cst_65 {dimension_numbers = #tpu.dot_dimension_numbers<[2], [2], [1], [1], [0, 0, 0, 1, 1, 1], [0], [0]>} : vector<2x16x64xbf16>, vector<2x16x64xbf16>, vector<2x16x16xf32> -> vector<2x16x16xf32>
    "tpu.trace_stop"() : () -> ()
    %cst_66 = arith.constant 1.250000e-01 : f32
    %188 = vector.broadcast %cst_66 : f32 to vector<2x16x16xf32>
    %189 = arith.mulf %187, %188 : vector<2x16x16xf32>
    %190 = vector.broadcast %30 : vector<2x1x16xf32> to vector<2x16x16xf32>
    %191 = arith.addf %189, %190 : vector<2x16x16xf32>
    %cst_67 = arith.constant dense<0xFF800000> : vector<2x16xf32>
    %192 = vector.multi_reduction <maximumf>, %191, %cst_67 [2] : vector<2x16x16xf32> to vector<2x16xf32>
    %193 = vector.shape_cast %192 : vector<2x16xf32> to vector<2x16x1xf32>
    %194 = vector.broadcast %193 : vector<2x16x1xf32> to vector<2x16x16xf32>
    %195 = arith.subf %191, %194 : vector<2x16x16xf32>
    %196 = math.exp %195 : vector<2x16x16xf32>
    %cst_68 = arith.constant dense<0.000000e+00> : vector<2x16xf32>
    %197 = vector.multi_reduction <add>, %196, %cst_68 [2] : vector<2x16x16xf32> to vector<2x16xf32>
    %198 = vector.shape_cast %197 : vector<2x16xf32> to vector<2x16x1xf32>
    %199 = tpu.reciprocal %198 {approx = true} : vector<2x16x1xf32> -> vector<2x16x1xf32>
    %200 = vector.broadcast %199 : vector<2x16x1xf32> to vector<2x16x16xf32>
    %201 = arith.mulf %196, %200 : vector<2x16x16xf32>
    %202 = arith.truncf %201 : vector<2x16x16xf32> to vector<2x16x16xbf16>
    "tpu.trace_start"() <{level = 10 : i32, message = "bqk,bkd->bqd"}> : () -> ()
    %cst_69 = arith.constant dense<0.000000e+00> : vector<2x16x64xf32>
    %203 = tpu.matmul %202, %186, %cst_69 {dimension_numbers = #tpu.dot_dimension_numbers<[2], [1], [1], [2], [0, 0, 0, 1, 1, 2], [0], [0]>} : vector<2x16x16xbf16>, vector<2x16x64xbf16>, vector<2x16x64xf32> -> vector<2x16x64xf32>
    "tpu.trace_stop"() : () -> ()
    %204 = vector.shape_cast %203 : vector<2x16x64xf32> to vector<32x64xf32>
    %205 = arith.truncf %204 : vector<32x64xf32> to vector<32x64xbf16>
    %206 = vector.extract_strided_slice %180 {offsets = [0, 64], sizes = [32, 64], strides = [1, 1]} : vector<32x384xbf16> to vector<32x64xbf16>
    %207 = vector.shape_cast %206 : vector<32x64xbf16> to vector<2x16x64xbf16>
    %208 = vector.extract_strided_slice %180 {offsets = [0, 192], sizes = [32, 64], strides = [1, 1]} : vector<32x384xbf16> to vector<32x64xbf16>
    %209 = vector.shape_cast %208 : vector<32x64xbf16> to vector<2x16x64xbf16>
    %210 = vector.extract_strided_slice %180 {offsets = [0, 320], sizes = [32, 64], strides = [1, 1]} : vector<32x384xbf16> to vector<32x64xbf16>
    %211 = vector.shape_cast %210 : vector<32x64xbf16> to vector<2x16x64xbf16>
    "tpu.trace_start"() <{level = 10 : i32, message = "bqd,bkd->bqk"}> : () -> ()
    %cst_70 = arith.constant dense<0.000000e+00> : vector<2x16x16xf32>
    %212 = tpu.matmul %207, %209, %cst_70 {dimension_numbers = #tpu.dot_dimension_numbers<[2], [2], [1], [1], [0, 0, 0, 1, 1, 1], [0], [0]>} : vector<2x16x64xbf16>, vector<2x16x64xbf16>, vector<2x16x16xf32> -> vector<2x16x16xf32>
    "tpu.trace_stop"() : () -> ()
    %cst_71 = arith.constant 1.250000e-01 : f32
    %213 = vector.broadcast %cst_71 : f32 to vector<2x16x16xf32>
    %214 = arith.mulf %212, %213 : vector<2x16x16xf32>
    %215 = vector.broadcast %30 : vector<2x1x16xf32> to vector<2x16x16xf32>
    %216 = arith.addf %214, %215 : vector<2x16x16xf32>
    %cst_72 = arith.constant dense<0xFF800000> : vector<2x16xf32>
    %217 = vector.multi_reduction <maximumf>, %216, %cst_72 [2] : vector<2x16x16xf32> to vector<2x16xf32>
    %218 = vector.shape_cast %217 : vector<2x16xf32> to vector<2x16x1xf32>
    %219 = vector.broadcast %218 : vector<2x16x1xf32> to vector<2x16x16xf32>
    %220 = arith.subf %216, %219 : vector<2x16x16xf32>
    %221 = math.exp %220 : vector<2x16x16xf32>
    %cst_73 = arith.constant dense<0.000000e+00> : vector<2x16xf32>
    %222 = vector.multi_reduction <add>, %221, %cst_73 [2] : vector<2x16x16xf32> to vector<2x16xf32>
    %223 = vector.shape_cast %222 : vector<2x16xf32> to vector<2x16x1xf32>
    %224 = tpu.reciprocal %223 {approx = true} : vector<2x16x1xf32> -> vector<2x16x1xf32>
    %225 = vector.broadcast %224 : vector<2x16x1xf32> to vector<2x16x16xf32>
    %226 = arith.mulf %221, %225 : vector<2x16x16xf32>
    %227 = arith.truncf %226 : vector<2x16x16xf32> to vector<2x16x16xbf16>
    "tpu.trace_start"() <{level = 10 : i32, message = "bqk,bkd->bqd"}> : () -> ()
    %cst_74 = arith.constant dense<0.000000e+00> : vector<2x16x64xf32>
    %228 = tpu.matmul %227, %211, %cst_74 {dimension_numbers = #tpu.dot_dimension_numbers<[2], [1], [1], [2], [0, 0, 0, 1, 1, 2], [0], [0]>} : vector<2x16x16xbf16>, vector<2x16x64xbf16>, vector<2x16x64xf32> -> vector<2x16x64xf32>
    "tpu.trace_stop"() : () -> ()
    %229 = vector.shape_cast %228 : vector<2x16x64xf32> to vector<32x64xf32>
    %230 = arith.truncf %229 : vector<32x64xf32> to vector<32x64xbf16>
    %231 = tpu.concatenate %205, %230 in 1 : vector<32x64xbf16>, vector<32x64xbf16> -> vector<32x128xbf16>
    %c1_75 = arith.constant 1 : index
    %c0_76 = arith.constant 0 : index
    %c0_77 = arith.constant 0 : index
    %232 = vector.load %arg5[%c1_75, %c0_76, %c0_77] : memref<3x128x128xbf16, #tpu.memory_space<vmem>>, vector<1x128x128xbf16>
    %233 = vector.shape_cast %232 : vector<1x128x128xbf16> to vector<128x128xbf16>
    %cst_78 = arith.constant dense<0.000000e+00> : vector<32x128xf32>
    %234 = tpu.matmul %231, %233, %cst_78 {dimension_numbers = #tpu.dot_dimension_numbers<[1], [0], [0], [1], [0, 0, 1, 1], [], []>} : vector<32x128xbf16>, vector<128x128xbf16>, vector<32x128xf32> -> vector<32x128xf32>
    %c11 = arith.constant 11 : index
    %c0_79 = arith.constant 0 : index
    %235 = vector.load %arg3[%c11, %c0_79] : memref<24x384xf32, #tpu.memory_space<vmem>>, vector<1x128xf32>
    %236 = vector.broadcast %235 : vector<1x128xf32> to vector<32x128xf32>
    %237 = arith.addf %234, %236 : vector<32x128xf32>
    %238 = arith.addf %172, %237 : vector<32x128xf32>
    %c12 = arith.constant 12 : index
    %c0_80 = arith.constant 0 : index
    %239 = vector.load %arg3[%c12, %c0_80] : memref<24x384xf32, #tpu.memory_space<vmem>>, vector<1x128xf32>
    %c13 = arith.constant 13 : index
    %c0_81 = arith.constant 0 : index
    %240 = vector.load %arg3[%c13, %c0_81] : memref<24x384xf32, #tpu.memory_space<vmem>>, vector<1x128xf32>
    %cst_82 = arith.constant dense<0.000000e+00> : vector<32xf32>
    %241 = vector.multi_reduction <add>, %238, %cst_82 [1] : vector<32x128xf32> to vector<32xf32>
    %242 = vector.shape_cast %241 : vector<32xf32> to vector<32x1xf32>
    %cst_83 = arith.constant 1.280000e+02 : f32
    %243 = vector.broadcast %cst_83 : f32 to vector<32x1xf32>
    %244 = arith.divf %242, %243 : vector<32x1xf32>
    %245 = vector.broadcast %244 : vector<32x1xf32> to vector<32x128xf32>
    %246 = arith.subf %238, %245 : vector<32x128xf32>
    %247 = arith.mulf %246, %246 : vector<32x128xf32>
    %cst_84 = arith.constant dense<0.000000e+00> : vector<32xf32>
    %248 = vector.multi_reduction <add>, %247, %cst_84 [1] : vector<32x128xf32> to vector<32xf32>
    %249 = vector.shape_cast %248 : vector<32xf32> to vector<32x1xf32>
    %cst_85 = arith.constant 1.280000e+02 : f32
    %250 = vector.broadcast %cst_85 : f32 to vector<32x1xf32>
    %251 = arith.divf %249, %250 : vector<32x1xf32>
    %252 = vector.broadcast %244 : vector<32x1xf32> to vector<32x128xf32>
    %253 = arith.subf %238, %252 : vector<32x128xf32>
    %cst_86 = arith.constant 9.99999996E-13 : f32
    %254 = vector.broadcast %cst_86 : f32 to vector<32x1xf32>
    %255 = arith.addf %251, %254 : vector<32x1xf32>
    %256 = math.rsqrt %255 : vector<32x1xf32>
    %257 = vector.broadcast %256 : vector<32x1xf32> to vector<32x128xf32>
    %258 = arith.mulf %253, %257 : vector<32x128xf32>
    %259 = vector.broadcast %239 : vector<1x128xf32> to vector<32x128xf32>
    %260 = arith.mulf %258, %259 : vector<32x128xf32>
    %261 = vector.broadcast %240 : vector<1x128xf32> to vector<32x128xf32>
    %262 = arith.addf %260, %261 : vector<32x128xf32>
    %263 = arith.truncf %262 : vector<32x128xf32> to vector<32x128xbf16>
    %c1_87 = arith.constant 1 : index
    %c0_88 = arith.constant 0 : index
    %c0_89 = arith.constant 0 : index
    %264 = vector.load %arg6[%c1_87, %c0_88, %c0_89] : memref<2x128x256xbf16, #tpu.memory_space<vmem>>, vector<1x128x256xbf16>
    %265 = vector.shape_cast %264 : vector<1x128x256xbf16> to vector<128x256xbf16>
    %cst_90 = arith.constant dense<0.000000e+00> : vector<32x256xf32>
    %266 = tpu.matmul %263, %265, %cst_90 {dimension_numbers = #tpu.dot_dimension_numbers<[1], [0], [0], [1], [0, 0, 1, 1], [], []>} : vector<32x128xbf16>, vector<128x256xbf16>, vector<32x256xf32> -> vector<32x256xf32>
    %c14 = arith.constant 14 : index
    %c0_91 = arith.constant 0 : index
    %267 = vector.load %arg3[%c14, %c0_91] : memref<24x384xf32, #tpu.memory_space<vmem>>, vector<1x256xf32>
    %268 = vector.broadcast %267 : vector<1x256xf32> to vector<32x256xf32>
    %269 = arith.addf %266, %268 : vector<32x256xf32>
    %270 = arith.mulf %269, %269 : vector<32x256xf32>
    %271 = arith.mulf %269, %270 : vector<32x256xf32>
    %cst_92 = arith.constant 4.471500e-02 : f32
    %272 = vector.broadcast %cst_92 : f32 to vector<32x256xf32>
    %273 = arith.mulf %272, %271 : vector<32x256xf32>
    %274 = arith.addf %269, %273 : vector<32x256xf32>
    %cst_93 = arith.constant 0.797884583 : f32
    %275 = vector.broadcast %cst_93 : f32 to vector<32x256xf32>
    %276 = arith.mulf %275, %274 : vector<32x256xf32>
    %277 = math.tanh %276 : vector<32x256xf32>
    %cst_94 = arith.constant 1.000000e+00 : f32
    %278 = vector.broadcast %cst_94 : f32 to vector<32x256xf32>
    %279 = arith.addf %278, %277 : vector<32x256xf32>
    %cst_95 = arith.constant 5.000000e-01 : f32
    %280 = vector.broadcast %cst_95 : f32 to vector<32x256xf32>
    %281 = arith.mulf %280, %279 : vector<32x256xf32>
    %282 = arith.mulf %269, %281 : vector<32x256xf32>
    %283 = arith.truncf %282 : vector<32x256xf32> to vector<32x256xbf16>
    %c1_96 = arith.constant 1 : index
    %c0_97 = arith.constant 0 : index
    %c0_98 = arith.constant 0 : index
    %284 = vector.load %arg7[%c1_96, %c0_97, %c0_98] : memref<2x256x128xbf16, #tpu.memory_space<vmem>>, vector<1x256x128xbf16>
    %285 = vector.shape_cast %284 : vector<1x256x128xbf16> to vector<256x128xbf16>
    %cst_99 = arith.constant dense<0.000000e+00> : vector<32x128xf32>
    %286 = tpu.matmul %283, %285, %cst_99 {dimension_numbers = #tpu.dot_dimension_numbers<[1], [0], [0], [1], [0, 0, 1, 1], [], []>} : vector<32x256xbf16>, vector<256x128xbf16>, vector<32x128xf32> -> vector<32x128xf32>
    %c15 = arith.constant 15 : index
    %c0_100 = arith.constant 0 : index
    %287 = vector.load %arg3[%c15, %c0_100] : memref<24x384xf32, #tpu.memory_space<vmem>>, vector<1x128xf32>
    %288 = vector.broadcast %287 : vector<1x128xf32> to vector<32x128xf32>
    %289 = arith.addf %286, %288 : vector<32x128xf32>
    %290 = arith.addf %262, %289 : vector<32x128xf32>
    %c16 = arith.constant 16 : index
    %c0_101 = arith.constant 0 : index
    %291 = vector.load %arg3[%c16, %c0_101] : memref<24x384xf32, #tpu.memory_space<vmem>>, vector<1x128xf32>
    %c17 = arith.constant 17 : index
    %c0_102 = arith.constant 0 : index
    %292 = vector.load %arg3[%c17, %c0_102] : memref<24x384xf32, #tpu.memory_space<vmem>>, vector<1x128xf32>
    %cst_103 = arith.constant dense<0.000000e+00> : vector<32xf32>
    %293 = vector.multi_reduction <add>, %290, %cst_103 [1] : vector<32x128xf32> to vector<32xf32>
    %294 = vector.shape_cast %293 : vector<32xf32> to vector<32x1xf32>
    %cst_104 = arith.constant 1.280000e+02 : f32
    %295 = vector.broadcast %cst_104 : f32 to vector<32x1xf32>
    %296 = arith.divf %294, %295 : vector<32x1xf32>
    %297 = vector.broadcast %296 : vector<32x1xf32> to vector<32x128xf32>
    %298 = arith.subf %290, %297 : vector<32x128xf32>
    %299 = arith.mulf %298, %298 : vector<32x128xf32>
    %cst_105 = arith.constant dense<0.000000e+00> : vector<32xf32>
    %300 = vector.multi_reduction <add>, %299, %cst_105 [1] : vector<32x128xf32> to vector<32xf32>
    %301 = vector.shape_cast %300 : vector<32xf32> to vector<32x1xf32>
    %cst_106 = arith.constant 1.280000e+02 : f32
    %302 = vector.broadcast %cst_106 : f32 to vector<32x1xf32>
    %303 = arith.divf %301, %302 : vector<32x1xf32>
    %304 = vector.broadcast %296 : vector<32x1xf32> to vector<32x128xf32>
    %305 = arith.subf %290, %304 : vector<32x128xf32>
    %cst_107 = arith.constant 9.99999996E-13 : f32
    %306 = vector.broadcast %cst_107 : f32 to vector<32x1xf32>
    %307 = arith.addf %303, %306 : vector<32x1xf32>
    %308 = math.rsqrt %307 : vector<32x1xf32>
    %309 = vector.broadcast %308 : vector<32x1xf32> to vector<32x128xf32>
    %310 = arith.mulf %305, %309 : vector<32x128xf32>
    %311 = vector.broadcast %291 : vector<1x128xf32> to vector<32x128xf32>
    %312 = arith.mulf %310, %311 : vector<32x128xf32>
    %313 = vector.broadcast %292 : vector<1x128xf32> to vector<32x128xf32>
    %314 = arith.addf %312, %313 : vector<32x128xf32>
    %315 = vector.shape_cast %314 : vector<32x128xf32> to vector<2x16x128xf32>
    %316 = vector.extract_strided_slice %315 {offsets = [0, 0, 0], sizes = [2, 1, 128], strides = [1, 1, 1]} : vector<2x16x128xf32> to vector<2x1x128xf32>
    %317 = vector.shape_cast %316 : vector<2x1x128xf32> to vector<2x128xf32>
    %318 = arith.truncf %317 : vector<2x128xf32> to vector<2x128xbf16>
    %c2_108 = arith.constant 2 : index
    %c0_109 = arith.constant 0 : index
    %c0_110 = arith.constant 0 : index
    %319 = vector.load %arg5[%c2_108, %c0_109, %c0_110] : memref<3x128x128xbf16, #tpu.memory_space<vmem>>, vector<1x128x128xbf16>
    %320 = vector.shape_cast %319 : vector<1x128x128xbf16> to vector<128x128xbf16>
    %cst_111 = arith.constant dense<0.000000e+00> : vector<2x128xf32>
    %321 = tpu.matmul %318, %320, %cst_111 {dimension_numbers = #tpu.dot_dimension_numbers<[1], [0], [0], [1], [0, 0, 1, 1], [], []>} : vector<2x128xbf16>, vector<128x128xbf16>, vector<2x128xf32> -> vector<2x128xf32>
    %c18 = arith.constant 18 : index
    %c0_112 = arith.constant 0 : index
    %322 = vector.load %arg3[%c18, %c0_112] : memref<24x384xf32, #tpu.memory_space<vmem>>, vector<1x128xf32>
    %323 = vector.broadcast %322 : vector<1x128xf32> to vector<2x128xf32>
    %324 = arith.addf %321, %323 : vector<2x128xf32>
    %325 = math.tanh %324 : vector<2x128xf32>
    %c19 = arith.constant 19 : index
    %c0_113 = arith.constant 0 : index
    %326 = vector.load %arg3[%c19, %c0_113] : memref<24x384xf32, #tpu.memory_space<vmem>>, vector<1x128xf32>
    %327 = vector.broadcast %326 : vector<1x128xf32> to vector<2x128xf32>
    %328 = arith.mulf %325, %327 : vector<2x128xf32>
    %cst_114 = arith.constant dense<0.000000e+00> : vector<2xf32>
    %329 = vector.multi_reduction <add>, %328, %cst_114 [1] : vector<2x128xf32> to vector<2xf32>
    %330 = vector.shape_cast %329 : vector<2xf32> to vector<2x1xf32>
    %c20 = arith.constant 20 : index
    %c0_115 = arith.constant 0 : index
    %331 = vector.load %arg3[%c20, %c0_115] : memref<24x384xf32, #tpu.memory_space<vmem>>, vector<1x128xf32>
    %332 = vector.extract_strided_slice %331 {offsets = [0, 0], sizes = [1, 1], strides = [1, 1]} : vector<1x128xf32> to vector<1x1xf32>
    %333 = vector.broadcast %332 : vector<1x1xf32> to vector<2x1xf32>
    %334 = arith.addf %330, %333 : vector<2x1xf32>
    %335 = arith.negf %334 : vector<2x1xf32>
    %336 = math.exp %335 : vector<2x1xf32>
    %cst_116 = arith.constant 1.000000e+00 : f32
    %337 = vector.broadcast %cst_116 : f32 to vector<2x1xf32>
    %338 = arith.addf %337, %336 : vector<2x1xf32>
    %339 = arith.divf %337, %338 : vector<2x1xf32>
    %340 = vector.shape_cast %339 : vector<2x1xf32> to vector<2x1xf32>
    %341 = vector.broadcast %340 : vector<2x1xf32> to vector<2x128xf32>
    %c0_117 = arith.constant 0 : index
    %c0_118 = arith.constant 0 : index
    %342 = vector.load %arg8[%c0_117, %c0_118] : memref<2x128xf32, #tpu.memory_space<vmem>>, vector<2x128xf32>
    tpu.vector_store %arg8[%c0_117, %c0_118], %341 {strides = array<i32>} : memref<2x128xf32, #tpu.memory_space<vmem>>, vector<2x128xf32>,
    return
  }
  func.func @transform_0(%arg0: i32) -> (i32, i32) {
    %c0_i32 = arith.constant 0 : i32
    %c0_i32_0 = arith.constant 0 : i32
    %c0_i32_1 = arith.constant 0 : i32
    return %c0_i32, %c0_i32_0 : i32, i32
  }
  func.func @transform_1(%arg0: i32) -> (i32, i32) {
    %c0_i32 = arith.constant 0 : i32
    %c0_i32_0 = arith.constant 0 : i32
    %c0_i32_1 = arith.constant 0 : i32
    return %c0_i32, %c0_i32_0 : i32, i32
  }
  func.func @transform_2(%arg0: i32) -> (i32, i32) {
    %c0_i32 = arith.constant 0 : i32
    %c0_i32_0 = arith.constant 0 : i32
    %c0_i32_1 = arith.constant 0 : i32
    return %c0_i32, %c0_i32_0 : i32, i32
  }
  func.func @transform_3(%arg0: i32) -> (i32, i32, i32) {
    %c0_i32 = arith.constant 0 : i32
    %c0_i32_0 = arith.constant 0 : i32
    %c0_i32_1 = arith.constant 0 : i32
    %c0_i32_2 = arith.constant 0 : i32
    return %c0_i32, %c0_i32_0, %c0_i32_1 : i32, i32, i32
  }
  func.func @transform_4(%arg0: i32) -> (i32, i32, i32) {
    %c0_i32 = arith.constant 0 : i32
    %c0_i32_0 = arith.constant 0 : i32
    %c0_i32_1 = arith.constant 0 : i32
    %c0_i32_2 = arith.constant 0 : i32
    return %c0_i32, %c0_i32_0, %c0_i32_1 : i32, i32, i32
  }
  func.func @transform_5(%arg0: i32) -> (i32, i32, i32) {
    %c0_i32 = arith.constant 0 : i32
    %c0_i32_0 = arith.constant 0 : i32
    %c0_i32_1 = arith.constant 0 : i32
    %c0_i32_2 = arith.constant 0 : i32
    return %c0_i32, %c0_i32_0, %c0_i32_1 : i32, i32, i32
  }
  func.func @transform_6(%arg0: i32) -> (i32, i32, i32) {
    %c0_i32 = arith.constant 0 : i32
    %c0_i32_0 = arith.constant 0 : i32
    %c0_i32_1 = arith.constant 0 : i32
    %c0_i32_2 = arith.constant 0 : i32
    return %c0_i32, %c0_i32_0, %c0_i32_1 : i32, i32, i32
  }
  func.func @transform_7(%arg0: i32) -> (i32, i32) {
    %c0_i32 = arith.constant 0 : i32
    %c0_i32_0 = arith.constant 0 : i32
    %c0_i32_1 = arith.constant 0 : i32
    return %c0_i32, %c0_i32_0 : i32, i32
  }
}

</mosaic_0001>

<bundles_post_ra>
// kernel: tpu_custom_call.1
= control target key start
LH: loop header
LB: loop body
LE: loop exit
PB: predicated region body
PF: predicated region fallthrough
CT: control target
= control target key end

     0   :  { %12 = vsyncpa [#allocation3], 0  ;;  %s4852_s0 = inlined_call_operand.hbm [shape: f32[32,128], index: 0, kind: input, shape index: {}]   ;;  %s4853_s1 = inlined_call_operand.vmem [shape: f32[2,16], index: 1, kind: input, shape index: {}]   ;;  %s4854_s2 = inlined_call_operand.hbm [shape: f32[24,384], index: 2, kind: input, shape index: {}]   ;;  %s4855_s3 = inlined_call_operand.hbm [shape: bf16[2,128,384], index: 3, kind: input, shape index: {}]   ;;  %s4856_s4 = inlined_call_operand.hbm [shape: bf16[3,128,128], index: 4, kind: input, shape index: {}]   ;;  %s4857_s5 = inlined_call_operand.hbm [shape: bf16[2,128,256], index: 5, kind: input, shape index: {}]   ;;  %s4858_s6 = inlined_call_operand.hbm [shape: bf16[2,256,128], index: 6, kind: input, shape index: {}]   ;;  %s4859_s7 = inlined_call_operand.hbm [shape: f32[2,128], index: 7, kind: output, shape index: {}]  }
   0x1   :  { %13 = vsyncpa [#allocation6], 0 }
   0x2   :  { %14 = vsyncpa [#allocation9], 0 }
   0x3   :  { %15 = vsyncpa [#allocation12], 0 }
   0x4   :  { %16 = vsyncpa [#allocation4], 0  ;;  %s4206_s24 = smov [#allocation5]   ;;  %s4042_s28 = scalar_lea.hbm %s4854_s2, 1152 }
   0x5   :  { %s36_s25 = sshll.u32 %s4206_s24, 4  ;;  %p4043_p0 = scmp.ne.s32.totalorder %s4854_s2, %s4042_s28  ;;  %s37_s25 = int_to_ptr.vmem [resolvable:$true] %s36_s25 }
   0x6   :  { %p4046_p1 = scmp.lt.u32.totalorder %s4042_s28, %s4854_s2 }
   0x8   :  { %p4048_p2 = pnand %p4046_p1, %p4043_p0 }
   0xa   :  { %4051 = shalt.err (!%p4048_p2)
}
   0xb   :  { %s4052_s10 = scalar_lea.vmem %s37_s25, 1152  ;;  %p4057_p4 = scmp.lt.s32.totalorder %s37_s25, %s37_s25 }
   0xc   :  { %p4053_p3 = scmp.ne.s32.totalorder %s37_s25, %s4052_s10  ;;  %p4058_p5 = scmp.lt.s32.totalorder %s4052_s10, %s4052_s10 }
   0xe   :  { %p4059_p6 = por %p4058_p5, %p4057_p4 }
  0x10   :  { %p4060_p7 = pnand %p4059_p6, %p4053_p3 }
  0x12   :  { %4063 = shalt.err (!%p4060_p7)
}
  0x13   :  { %s4207_s11 = smov 384   ;;  %s4208_s12 = smov 24  }
  0x14   :  { %42 = dma.hbm_to_vmem [thread:$0]  %s4854_s2, 1152, %s37_s25, [#allocation6], %s4207_s11, %s4207_s11, %s4208_s12  }
  0x15   :  { %s4209_s15 = smov [#allocation8]   ;;  %s4064_s19 = scalar_lea.hbm %s4856_s4, 3072 }
  0x16   :  { %s60_s16 = sshll.u32 %s4209_s15, 4  ;;  %p4065_p8 = scmp.ne.s32.totalorder %s4856_s4, %s4064_s19  ;;  %s61_s16 = int_to_ptr.vmem [resolvable:$true] %s60_s16 }
  0x17   :  { %p4068_p9 = scmp.lt.u32.totalorder %s4064_s19, %s4856_s4 }
  0x19   :  { %p4070_p10 = pnand %p4068_p9, %p4065_p8 }
  0x1b   :  { %4073 = shalt.err (!%p4070_p10)
}
  0x1c   :  { %s4074_s24 = scalar_lea.vmem %s61_s16, 3072  ;;  %p4079_p12 = scmp.lt.s32.totalorder %s61_s16, %s61_s16 }
  0x1d   :  { %p4075_p11 = scmp.ne.s32.totalorder %s61_s16, %s4074_s24  ;;  %p4080_p13 = scmp.lt.s32.totalorder %s4074_s24, %s4074_s24 }
  0x1f   :  { %p4081_p0 = por %p4080_p13, %p4079_p12 }
  0x21   :  { %p4082_p1 = pnand %p4081_p0, %p4075_p11 }
  0x23   :  { %4085 = shalt.err (!%p4082_p1)
}
  0x24   :  { %s4210_s2 = smov 64   ;;  %s4211_s25 = smov 4  }
  0x25   :  { %66 = dma.hbm_to_vmem [thread:$0]  %s4856_s4, 3072, %s61_s16, [#allocation9], %s4210_s2, %s4210_s2, %s4211_s25  }
  0x26   :  { %s4212_s28 = smov [#allocation2]   ;;  %s4086_s9 = scalar_lea.hbm %s4852_s0, 512 }
  0x27   :  { %s22_s29 = sshll.u32 %s4212_s28, 4  ;;  %p4087_p2 = scmp.ne.s32.totalorder %s4852_s0, %s4086_s9  ;;  %s23_s29 = int_to_ptr.vmem [resolvable:$true] %s22_s29 }
  0x28   :  { %p4090_p3 = scmp.lt.u32.totalorder %s4086_s9, %s4852_s0 }
  0x2a   :  { %p4092_p4 = pnand %p4090_p3, %p4087_p2 }
  0x2c   :  { %4095 = shalt.err (!%p4092_p4)
}
  0x2d   :  { %s4096_s14 = scalar_lea.vmem %s23_s29, 512  ;;  %p4101_p6 = scmp.lt.s32.totalorder %s23_s29, %s23_s29 }
  0x2e   :  { %p4097_p5 = scmp.ne.s32.totalorder %s23_s29, %s4096_s14  ;;  %p4102_p7 = scmp.lt.s32.totalorder %s4096_s14, %s4096_s14 }
  0x30   :  { %p4103_p8 = por %p4102_p7, %p4101_p6 }
  0x32   :  { %p4104_p9 = pnand %p4103_p8, %p4097_p5 }
  0x34   :  { %4107 = shalt.err (!%p4104_p9)
}
  0x35   :  { %s4213_s4 = smov 128   ;;  %s4214_s15 = smov 8  }
  0x36   :  { %28 = dma.hbm_to_vmem [thread:$0]  %s4852_s0, 512, %s23_s29, [#allocation3], %s4213_s4, %s4213_s4, %s4214_s15  }
  0x37   :  { %s4215_s18 = smov [#allocation7]   ;;  %s4108_s22 = scalar_lea.hbm %s4855_s3, 6144 }
  0x38   :  { %s48_s19 = sshll.u32 %s4215_s18, 4  ;;  %p4109_p10 = scmp.ne.s32.totalorder %s4855_s3, %s4108_s22  ;;  %s49_s19 = int_to_ptr.vmem [resolvable:$true] %s48_s19 }
  0x39   :  { %p4112_p11 = scmp.lt.u32.totalorder %s4108_s22, %s4855_s3 }
  0x3b   :  { %p4114_p12 = pnand %p4112_p11, %p4109_p10 }
  0x3d   :  { %4117 = shalt.err (!%p4114_p12)
}
  0x3e   :  { %s4118_s28 = scalar_lea.vmem %s49_s19, 6144  ;;  %p4123_p0 = scmp.lt.s32.totalorder %s49_s19, %s49_s19 }
  0x3f   :  { %p4119_p13 = scmp.ne.s32.totalorder %s49_s19, %s4118_s28  ;;  %p4124_p1 = scmp.lt.s32.totalorder %s4118_s28, %s4118_s28 }
  0x41   :  { %p4125_p2 = por %p4124_p1, %p4123_p0 }
  0x43   :  { %p4126_p3 = pnand %p4125_p2, %p4119_p13 }
  0x45   :  { %4129 = shalt.err (!%p4126_p3)
}
  0x46   :  { %s4216_s0 = smov 192   ;;  %s4217_s29 = smov 12  }
  0x47   :  { %54 = dma.hbm_to_vmem [thread:$0]  %s4855_s3, 6144, %s49_s19, [#allocation6], %s4216_s0, %s4216_s0, %s4217_s29  }
  0x48   :  { %s4218_s9 = smov [#allocation10]   ;;  %s4219_s11 = smov [#allocation11]  }
  0x49   :  { %s72_s10 = sshll.u32 %s4218_s9, 4  ;;  %s84_s12 = sshll.u32 %s4219_s11, 4  ;;  %s73_s10 = int_to_ptr.vmem [resolvable:$true] %s72_s10  ;;  %s4319_s12 = int_to_ptr.vmem [resolvable:$true] %s84_s12 }
  0x4a   :  { %s4130_s16 = scalar_lea.hbm %s4857_s5, 4096 }
  0x4b   :  { %p4131_p4 = scmp.ne.s32.totalorder %s4857_s5, %s4130_s16  ;;  %p4134_p5 = scmp.lt.u32.totalorder %s4130_s16, %s4857_s5 }
  0x4d   :  { %p4136_p6 = pnand %p4134_p5, %p4131_p4 }
  0x4f   :  { %4139 = shalt.err (!%p4136_p6)
}
  0x50   :  { %s4140_s3 = scalar_lea.vmem %s73_s10, 4096  ;;  %p4145_p8 = scmp.lt.s32.totalorder %s73_s10, %s73_s10 }
  0x51   :  { %p4141_p7 = scmp.ne.s32.totalorder %s73_s10, %s4140_s3  ;;  %p4146_p9 = scmp.lt.s32.totalorder %s4140_s3, %s4140_s3 }
  0x53   :  { %p4147_p10 = por %p4146_p9, %p4145_p8 }
  0x55   :  { %p4148_p11 = pnand %p4147_p10, %p4141_p7 }
  0x57   :  { %4151 = shalt.err (!%p4148_p11)
}
  0x58   :  { %78 = dma.hbm_to_vmem [thread:$0]  %s4857_s5, 4096, %s73_s10, [#allocation9], %s4213_s4, %s4213_s4, %s4214_s15  }
  0x59   :  { %s4152_s26 = scalar_lea.hbm %s4858_s6, 4096 }
  0x5a   :  { %p4153_p12 = scmp.ne.s32.totalorder %s4858_s6, %s4152_s26  ;;  %p4156_p13 = scmp.lt.u32.totalorder %s4152_s26, %s4858_s6 }
  0x5c   :  { %p4158_p0 = pnand %p4156_p13, %p4153_p12 }
  0x5e   :  { %4161 = shalt.err (!%p4158_p0)
}
  0x5f   :  { %s4162_s30 = scalar_lea.vmem %s4319_s12, 4096  ;;  %p4167_p2 = scmp.lt.s32.totalorder %s4319_s12, %s4319_s12 }
  0x60   :  { %p4163_p1 = scmp.ne.s32.totalorder %s4319_s12, %s4162_s30  ;;  %p4168_p3 = scmp.lt.s32.totalorder %s4162_s30, %s4162_s30 }
  0x62   :  { %p4169_p4 = por %p4168_p3, %p4167_p2 }
  0x64   :  { %p4170_p5 = pnand %p4169_p4, %p4163_p1 }
  0x66   :  { %4173 = shalt.err (!%p4170_p5)
}
  0x67   :  { %90 = dma.hbm_to_vmem [thread:$0]  %s4858_s6, 4096, %s4319_s12, [#allocation12], %s4210_s2, %s4210_s2, %s4211_s25  }
  0x68   :  { %4196 = dma.done.wait [#allocation3], 512  }
  0x69   :  { %4197 = vsyncadd [#allocation3], 4294966784 }
  0x6a   :  { %4198 = dma.done.wait [#allocation6], 7296  }
  0x6b   :  { %4199 = vsyncadd [#allocation6], 4294960000 }
  0x6c   :  { %4200 = dma.done.wait [#allocation9], 7168  }
  0x6d   :  { %4201 = vsyncadd [#allocation9], 4294960128 }
  0x6e   :  { %4202 = dma.done.wait [#allocation12], 4096  }
  0x6f   :  { %4203 = vsyncadd [#allocation12], 4294963200  ;;  %v110_v0 = vld [vmem:[#allocation2] sm:$0xff]  ;;  %v112_v1 = vld [vmem:[#allocation2 + $0x10] sm:$0xff]  ;;  %v4220_v39 = vmov 0   ;;  %vm4222_vm0 = vmmov 0  }
  0x70   :  { %v111_v2 = vld [vmem:[#allocation2 + $0x8] sm:$0xff]  ;;  %116 = vadd.xlane.f32.xlu0 %v110_v0  ;;  %120 = vadd.xlane.f32.xlu1 %v112_v1  ;;  %v113_v3 = vld [vmem:[#allocation2 + $0x18] sm:$0xff]  ;;  %v3739_v6 = vld [vmem:[#allocation7 + $0x1c] ss:$12 sps:$4 sm:$0xff]   ;;  %vm483_vm1 = vcmask 523264   ;;  %vm596_vm2 = vcmask 130048  }
  0x71   :  { %v3736_v4 = vld [vmem:[#allocation7 + $0x4] ss:$12 sps:$4 sm:$0xff]   ;;  %v3738_v5 = vld [vmem:[#allocation7] ss:$12 sps:$4 sm:$0xff]   ;;  %v3741_v7 = vld [vmem:[#allocation7 + $0x8] ss:$12 sps:$4 sm:$0xff]   ;;  %407 = vmatprep.mubr.bf16.mxu0 %v4220_v39  ;;  %3734 = vset.pattern.permute.xlu1 %v4220_v39 }
  0x72   :  { %375 = vmatprep.subr.bf16.mxu0 %v3736_v4  ;;  %3519 = vmatprep.subr.bf16.mxu1 %v3741_v7  ;;  %v3742_v24 = vld [vmem:[#allocation7 + $0x18] ss:$12 sps:$4 sm:$0xff]   ;;  %v3743_v25 = vld [vmem:[#allocation7 + $0x34] ss:$12 sps:$4 sm:$0xff]   ;;  %v3746_v27 = vld [vmem:[#allocation7 + $0x30] ss:$12 sps:$4 sm:$0xff]  }
  0x73   :  { %376 = vmatpush1.bf16.msra.mxu0 %v3738_v5  ;;  %3520 = vmatpush3.bf16.msra.mxu1 %v3741_v7  ;;  %v3745_v26 = vld [vmem:[#allocation7 + $0x20] ss:$12 sps:$4 sm:$0xff]   ;;  %v3749_v29 = vld [vmem:[#allocation7 + $0x38] ss:$12 sps:$4 sm:$0xff]   ;;  %v3750_v30 = vld [vmem:[#allocation7 + $0x48] ss:$12 sps:$4 sm:$0xff]  }
  0x74   :  { %118 = vadd.xlane.f32.xlu0 %v111_v2  ;;  %122 = vadd.xlane.f32.xlu1 %v113_v3  ;;  %v3747_v28 = vld [vmem:[#allocation7 + $0x4c] ss:$12 sps:$4 sm:$0xff]   ;;  %v3751_v31 = vld [vmem:[#allocation7 + $0x64] ss:$12 sps:$4 sm:$0xff]   ;;  %v3755_v34 = vld [vmem:[#allocation7 + $0x7c] ss:$12 sps:$4 sm:$0xff]  }
  0x75   :  { %377 = vmatprep.subr.bf16.mxu0 %v3739_v6  ;;  %3521 = vmatprep.subr.bf16.mxu1 %v3745_v26  ;;  %v3753_v32 = vld [vmem:[#allocation7 + $0x50] ss:$12 sps:$4 sm:$0xff]   ;;  %v3754_v33 = vld [vmem:[#allocation7 + $0x60] ss:$12 sps:$4 sm:$0xff]   ;;  %v3757_v35 = vld [vmem:[#allocation7 + $0x68] ss:$12 sps:$4 sm:$0xff]  }
  0x76   :  { %v3758_v36 = vld [vmem:[#allocation7 + $0x78] ss:$12 sps:$4 sm:$0xff]   ;;  %v3759_v37 = vld [vmem:[#allocation7 + $0x94] ss:$12 sps:$4 sm:$0xff]   ;;  %v3762_v40 = vld [vmem:[#allocation7 + $0x90] ss:$12 sps:$4 sm:$0xff]   ;;  %3735 = vset.pattern.permute.xlu0 %v4220_v39 }
  0x77   :  { %378 = vmatpush1.bf16.msra.mxu0 %v3742_v24  ;;  %3522 = vmatpush3.bf16.msra.mxu1 %v3745_v26  ;;  %v3761_v38 = vld [vmem:[#allocation7 + $0x80] ss:$12 sps:$4 sm:$0xff]   ;;  %v3765_v42 = vld [vmem:[#allocation7 + $0x98] ss:$12 sps:$4 sm:$0xff]   ;;  %v3766_v43 = vld [vmem:[#allocation7 + $0xa8] ss:$12 sps:$4 sm:$0xff]  }
  0x78   :  { %379 = vmatprep.subr.bf16.mxu0 %v3743_v25  ;;  %3523 = vmatprep.subr.bf16.mxu1 %v3749_v29  ;;  %v3763_v41 = vld [vmem:[#allocation7 + $0xac] ss:$12 sps:$4 sm:$0xff]   ;;  %v3767_v44 = vld [vmem:[#allocation7 + $0xb0] ss:$12 sps:$4 sm:$0xff]   ;;  %vm3098_vm3 = vcmask 1041409   ;;  %vm3193_vm4 = vcmask 1041408  }
  0x79   :  { %v114_v59 = vld [vmem:[#allocation5] ss:$0 sm:$0xff] }
  0x7b   :  { %380 = vmatpush1.bf16.msra.mxu0 %v3746_v27  ;;  %3524 = vmatpush3.bf16.msra.mxu1 %v3749_v29 }
  0x7c   :  { %381 = vmatprep.subr.bf16.mxu0 %v3747_v28  ;;  %3525 = vmatprep.subr.bf16.mxu1 %v3753_v32 }
  0x7f   :  { %382 = vmatpush1.bf16.msra.mxu0 %v3750_v30  ;;  %3526 = vmatpush3.bf16.msra.mxu1 %v3753_v32 }
  0x80   :  { %383 = vmatprep.subr.bf16.mxu0 %v3751_v31  ;;  %3527 = vmatprep.subr.bf16.mxu1 %v3757_v35 }
  0x83   :  { %384 = vmatpush1.bf16.msra.mxu0 %v3754_v33  ;;  %3528 = vmatpush3.bf16.msra.mxu1 %v3757_v35 }
  0x84   :  { %385 = vmatprep.subr.bf16.mxu0 %v3755_v34  ;;  %3529 = vmatprep.subr.bf16.mxu1 %v3761_v38 }
  0x87   :  { %386 = vmatpush1.bf16.msra.mxu0 %v3758_v36  ;;  %3530 = vmatpush3.bf16.msra.mxu1 %v3761_v38 }
  0x88   :  { %387 = vmatprep.subr.bf16.mxu0 %v3759_v37  ;;  %3531 = vmatprep.subr.bf16.mxu1 %v3765_v42 }
  0x8b   :  { %388 = vmatpush1.bf16.msra.mxu0 %v3762_v40  ;;  %3532 = vmatpush3.bf16.msra.mxu1 %v3765_v42 }
  0x8c   :  { %389 = vmatprep.subr.bf16.mxu0 %v3763_v41  ;;  %3533 = vmatprep.subr.bf16.mxu1 %v3767_v44 }
  0x8f   :  { %390 = vmatpush1.bf16.msra.mxu0 %v3766_v43  ;;  %3534 = vmatpush3.bf16.msra.mxu1 %v3767_v44 }
  0xfd   :  { %v117_v8 = vpop.xlane.xlu0 %116  ;;  %v121_v9 = vpop.xlane.xlu1 %120 }
  0xfe   :  { %v125_v10 = vmul.f32 0.0078125, %v117_v8  ;;  %v127_v11 = vmul.f32 0.0078125, %v121_v9 }
 0x100   :  { %v4356_v12 = vsub.f32 %v110_v0, %v125_v10  ;;  %v4358_v13 = vsub.f32 %v112_v1, %v127_v11  ;;  %v115_v0 = vld [vmem:[#allocation5 + $0x1] ss:$0 sm:$0xff] }
 0x101   :  { %v119_v14 = vpop.xlane.xlu0 %118  ;;  %v123_v15 = vpop.xlane.xlu1 %122 }
 0x102   :  { %v126_v16 = vmul.f32 0.0078125, %v119_v14  ;;  %v133_v17 = vmul.f32 %v4356_v12, %v4356_v12  ;;  %v128_v18 = vmul.f32 0.0078125, %v123_v15  ;;  %v135_v21 = vmul.f32 %v4358_v13, %v4358_v13 }
 0x103   :  { %v176_v14 = vlaneseq }
 0x104   :  { %v4362_v19 = vsub.f32 %v111_v2, %v126_v16  ;;  %137 = vadd.xlane.f32.xlu0 %v133_v17  ;;  %v4364_v20 = vsub.f32 %v113_v3, %v128_v18  ;;  %v230_v17 = vld [vmem:[#allocation5 + $0x2] ss:$8 sm:$0x7] }
 0x105   :  { %v4398_v15 = vshrl.u32 %v176_v14, 7 }
 0x106   :  { %v134_v22 = vmul.f32 %v4362_v19, %v4362_v19  ;;  %v136_v23 = vmul.f32 %v4364_v20, %v4364_v20 }
 0x107   :  { %v4401_v16 = vsub.s32 0, %v4398_v15  ;;  %v4404_v18 = vsub.s32 1, %v4398_v15 }
 0x108   :  { %141 = vadd.xlane.f32.xlu0 %v135_v21  ;;  %139 = vadd.xlane.f32.xlu1 %v134_v22 }
 0x109   :  { %v239_v22 = vrot.slane %v230_v17, %v4404_v18 }
 0x10c   :  { %143 = vadd.xlane.f32.xlu1 %v136_v23 }
 0x191   :  { %v138_v45 = vpop.xlane.xlu0 %137 }
 0x192   :  { %v145_v46 = vmul.f32 0.0078125, %v138_v45 }
 0x194   :  { %v149_v47 = vadd.f32 1e-12, %v145_v46 }
 0x195   :  { %v140_v48 = vpop.xlane.xlu1 %139  ;;  %v142_v49 = vpop.xlane.xlu0 %141 }
 0x196   :  { %3904 = vrsqrt.f32 %v149_v47  ;;  %v146_v50 = vmul.f32 0.0078125, %v140_v48  ;;  %v147_v51 = vmul.f32 0.0078125, %v142_v49 }
 0x198   :  { %v150_v52 = vadd.f32 1e-12, %v146_v50  ;;  %v151_v53 = vadd.f32 1e-12, %v147_v51 }
 0x199   :  { %v144_v54 = vpop.xlane.xlu1 %143 }
 0x19a   :  { %3906 = vrsqrt.f32 %v150_v52  ;;  %v148_v55 = vmul.f32 0.0078125, %v144_v54 }
 0x19b   :  { %3908 = vrsqrt.f32 %v151_v53 }
 0x19c   :  { %v152_v56 = vadd.f32 1e-12, %v148_v55 }
 0x19e   :  { %3910 = vrsqrt.f32 %v152_v56  ;;  %v4223_v56 = vmov 1966171168  }
 0x1a0   :  { %v3905_v57 = vpop.eup %3904 }
 0x1a1   :  { %v157_v58 = vmul.f32 %v3905_v57, %v4356_v12  ;;  %v174_v57 = vunpack.c.l.s4 %v4223_v56 }
 0x1a3   :  { %v161_v63 = vmul.f32 %v157_v58, %v114_v59  ;;  %v169_v58 = vld [vmem:[%s4853_s1] sm:$0x3]  ;;  %s4224_s1 = smov [#allocation13]  }
 0x1a4   :  { %v3907_v60 = vpop.eup %3906 }
 0x1a5   :  { %v3909_v61 = vpop.eup %3908  ;;  %v158_v62 = vmul.f32 %v3907_v60, %v4362_v19  ;;  %v4378_v4 = vadd.f32 %v161_v63, %v115_v0  ;;  %v235_v19 = vrot.slane %v230_v17, %v4401_v16  ;;  %v175_v60 = vunpack.c.0.s8 %v174_v57 }
 0x1a6   :  { %v159_v1 = vmul.f32 %v3909_v61, %v4358_v13  ;;  %v4221_v13 = vmov 0.0  }
 0x1a7   :  { %v162_v2 = vmul.f32 %v158_v62, %v114_v59  ;;  %3539 = vmatprep.subr.bf16.mxu1 %v4221_v13  ;;  %3545 = vmatprep.subr.bf16.mxu0 %v4221_v13  ;;  %v178_v62 = vsub.s32 %v175_v60, %v4398_v15 }
 0x1a8   :  { %v3911_v3 = vpop.eup %3910  ;;  %v163_v7 = vmul.f32 %v159_v1, %v114_v59 }
 0x1a9   :  { %v4380_v5 = vadd.f32 %v162_v2, %v115_v0  ;;  %v160_v6 = vmul.f32 %v3911_v3, %v4364_v20  ;;  %v242_v20 = vsub.s32 2, %v4398_v15 }
 0x1aa   :  { %v4385_v10 = vadd.f32 %v163_v7, %v115_v0 }
 0x1ab   :  { %v195_v8 = vpack.c.bf16 %v4380_v5, %v4378_v4  ;;  %v164_v9 = vmul.f32 %v160_v6, %v114_v59  ;;  %v243_v28 = vrot.slane %v230_v17, %v242_v20  ;;  %v170_v59 = vsub.f32 1.0, %v169_v58 }
 0x1ad   :  { %408 = vmatmul.mubr.bf16.vlgmr.msra.gmra.mrb[0].mxu0 %v195_v8  ;;  %3535 = vmatprep.mubr.bf16.mxu1 %v195_v8  ;;  %v4387_v11 = vadd.f32 %v164_v9, %v115_v0  ;;  %v171_v61 = vmul.f32 -1e+09, %v170_v59 }
 0x1ae   :  { %417 = vmatprep.mubr.bf16.mxu0 %v4220_v39 }
 0x1af   :  { %v196_v12 = vpack.c.bf16 %v4387_v11, %v4385_v10  ;;  %v179_v63 = vrot.slane %v171_v61, %v178_v62 }
 0x1b1   :  { %3536 = vmatmul.mubr.bf16.vlgmr.msra.gmra.mrb[0].mxu1 %v196_v12  ;;  %v187_v0 = vrot.slane %v179_v63, %v178_v62  ;;  %v180_v2 = vcombine.high %v179_v63, %v179_v63 }
 0x1b2   :  { %3541 = vmatprep.mubr.msk.bf16.mxu1 %vm4222_vm0, %v4221_v13 }
 0x1b3   :  { %v4446_v1 = vrot.slane %v187_v0, %v4401_v16  ;;  %v194_v17 = vrot.slane %v180_v2, %v178_v62 }
 0x1b5   :  { %418 = vmatmul.mubr.bf16.gmra.mrb[4].mxu0 %v196_v12 }
 0x1b6   :  { %3547 = vmatprep.mubr.msk.bf16.mxu0 %vm4222_vm0, %v4221_v13 }
 0x280   :  { %v409_v21 = vpop.f32.mrb[0].mxu0 }
 0x281   :  { %v411_v23 = vpop.f32.mrb[1].mxu0  ;;  %v410_v25 = vadd.f32 %v409_v21, %v235_v19 }
 0x282   :  { %v413_v24 = vpop.f32.mrb[2].mxu0  ;;  %v412_v29 = vadd.f32 %v411_v23, %v239_v22  ;;  %v4453_v23 = vrot.slane %v194_v17, %v4401_v16 }
 0x283   :  { %v414_v26 = vadd.f32 %v413_v24, %v235_v19  ;;  %v415_v27 = vpop.f32.mrb[3].mxu0 }
 0x284   :  { %v416_v30 = vadd.f32 %v415_v27, %v239_v22  ;;  %v3537_v31 = vpop.f32.mrb[0].mxu1 }
 0x285   :  { %v4411_v32 = vpack.c.bf16 %v414_v26, %v410_v25  ;;  %v462_v33 = vpop.f32.mrb[1].mxu1  ;;  %v471_v36 = vadd.f32 %v3537_v31, %v243_v28 }
 0x286   :  { %v4413_v34 = vpack.c.bf16 %v416_v30, %v412_v29  ;;  %v3538_v35 = vpop.f32.mrb[2].mxu1  ;;  %v463_v40 = vadd.f32 %v462_v33, %v243_v28 }
 0x287   :  { %v474_v37 = vadd.f32 %v3538_v35, %v243_v28  ;;  %v465_v38 = vpop.f32.mrb[3].mxu1 }
 0x288   :  { %v466_v41 = vadd.f32 %v465_v38, %v243_v28  ;;  %v419_v42 = vpop.f32.mrb[4].mxu0  ;;  %v488_v43 = vsel %vm483_vm1, %v4413_v34, 0 }
 0x289   :  { %v4417_v44 = vpack.c.bf16 %v474_v37, %v471_v36  ;;  %v421_v45 = vpop.f32.mrb[5].mxu0  ;;  %3540 = vmatpush3.bf16.xpose.msra.mxu1 %v488_v43  ;;  %v420_v48 = vadd.f32 %v419_v42, %v235_v19 }
 0x28a   :  { %v4419_v46 = vpack.c.bf16 %v466_v41, %v463_v40  ;;  %v423_v47 = vpop.f32.mrb[6].mxu0  ;;  %3551 = vmatprep.subr.bf16.mxu1 %v4221_v13  ;;  %v422_v51 = vadd.f32 %v421_v45, %v239_v22 }
 0x28b   :  { %v424_v49 = vadd.f32 %v423_v47, %v235_v19  ;;  %v425_v50 = vpop.f32.mrb[7].mxu0 }
 0x28c   :  { %v426_v52 = vadd.f32 %v425_v50, %v239_v22 }
 0x28d   :  { %v4422_v53 = vpack.c.bf16 %v424_v49, %v420_v48 }
 0x28e   :  { %v4424_v54 = vpack.c.bf16 %v426_v52, %v422_v51 }
 0x290   :  { %3542 = vmatmul.mubr.msk.bf16.vlgmr.msra.gmra.mrb[4].mxu1 %vm483_vm1, %v4411_v32  ;;  %v535_v55 = vsel %vm483_vm1, %v4424_v54, 0 }
 0x291   :  { %3546 = vmatpush3.bf16.xpose.msra.mxu0 %v535_v55  ;;  %3552 = vmatpush3.bf16.msra.mxu1 %v4419_v46 }
 0x292   :  { %3557 = vmatprep.subr.bf16.mxu0 %v4221_v13  ;;  %3553 = vmatprep.mubr.msk.bf16.mxu1 %vm4222_vm0, %v4221_v13 }
 0x293   :  { %3563 = vmatprep.subr.bf16.mxu1 %v4221_v13 }
 0x298   :  { %3548 = vmatmul.mubr.msk.bf16.vlgmr.msra.gmra.mrb[8].mxu0 %vm483_vm1, %v4422_v53 }
 0x299   :  { %3558 = vmatpush3.bf16.msra.mxu0 %v4417_v44  ;;  %3559 = vmatprep.mubr.msk.bf16.mxu0 %vm4222_vm0, %v4221_v13 }
 0x29a   :  { %3569 = vmatprep.subr.bf16.mxu0 %v4221_v13 }
 0x363   :  { %v524_v3 = vpop.f32.mrb[4].mxu1 }
 0x364   :  { %v578_v6 = vmul.f32 0.125, %v524_v3  ;;  %v3543_v7 = vpop.f32.mrb[5].mxu1 }
 0x365   :  { %v527_v8 = vpop.f32.mrb[6].mxu1 }
 0x366   :  { %v579_v9 = vmul.f32 0.125, %v527_v8  ;;  %v3544_v12 = vpop.f32.mrb[7].mxu1  ;;  %v592_v14 = vadd.f32 %v4446_v1, %v578_v6 }
 0x368   :  { %v597_v19 = vsel %vm596_vm2, %v592_v14, -inf  ;;  %v593_v21 = vadd.f32 %v4446_v1, %v579_v9 }
 0x369   :  { %598 = vmax.xlane.f32.xlu0 %v597_v19 }
 0x36a   :  { %v600_v22 = vsel %vm596_vm2, %v593_v21, -inf }
 0x36b   :  { %601 = vmax.xlane.f32.xlu1 %v600_v22  ;;  %v571_v24 = vpop.f32.mrb[8].mxu0 }
 0x36c   :  { %v580_v25 = vmul.f32 0.125, %v571_v24  ;;  %v3549_v26 = vpop.f32.mrb[9].mxu0 }
 0x36d   :  { %v574_v27 = vpop.f32.mrb[10].mxu0 }
 0x36e   :  { %v581_v28 = vmul.f32 0.125, %v574_v27  ;;  %v3550_v29 = vpop.f32.mrb[11].mxu0  ;;  %v594_v30 = vadd.f32 %v4453_v23, %v580_v25 }
 0x370   :  { %v603_v31 = vsel %vm596_vm2, %v594_v30, -inf  ;;  %v595_v33 = vadd.f32 %v4453_v23, %v581_v28 }
 0x371   :  { %604 = vmax.xlane.f32.xlu0 %v603_v31 }
 0x372   :  { %v606_v35 = vsel %vm596_vm2, %v595_v33, -inf }
 0x373   :  { %607 = vmax.xlane.f32.xlu1 %v606_v35 }
 0x3f6   :  { %v599_v36 = vpop.xlane.xlu0 %598 }
 0x3f7   :  { %v609_v37 = vsub.f32 %v592_v14, %v599_v36 }
 0x3f8   :  { %v602_v38 = vpop.xlane.xlu1 %601 }
 0x3f9   :  { %v613_v40 = vmul.f32 1.442695, %v609_v37  ;;  %v610_v41 = vsub.f32 %v593_v21, %v602_v38 }
 0x3fb   :  { %3912 = vpow2.f32 %v613_v40  ;;  %v615_v42 = vmul.f32 1.442695, %v610_v41 }
 0x3fd   :  { %3914 = vpow2.f32 %v615_v42 }
 0x3fe   :  { %v605_v43 = vpop.xlane.xlu0 %604 }
 0x3ff   :  { %v611_v45 = vsub.f32 %v594_v30, %v605_v43 }
 0x400   :  { %v608_v56 = vpop.xlane.xlu1 %607 }
 0x401   :  { %v617_v47 = vmul.f32 1.442695, %v611_v45  ;;  %v612_v57 = vsub.f32 %v595_v33, %v608_v56 }
 0x403   :  { %3916 = vpow2.f32 %v617_v47  ;;  %v619_v58 = vmul.f32 1.442695, %v612_v57 }
 0x405   :  { %v3913_v48 = vpop.eup %3912  ;;  %3918 = vpow2.f32 %v619_v58 }
 0x406   :  { %v621_v49 = vsel %vm596_vm2, %v3913_v48, 0.0 }
 0x407   :  { %v3915_v50 = vpop.eup %3914  ;;  %622 = vadd.xlane.f32.xlu0 %v621_v49 }
 0x408   :  { %v624_v51 = vsel %vm596_vm2, %v3915_v50, 0.0 }
 0x409   :  { %625 = vadd.xlane.f32.xlu1 %v624_v51 }
 0x40d   :  { %v3917_v52 = vpop.eup %3916 }
 0x40e   :  { %v627_v55 = vsel %vm596_vm2, %v3917_v52, 0.0 }
 0x40f   :  { %628 = vadd.xlane.f32.xlu0 %v627_v55  ;;  %v3919_v59 = vpop.eup %3918 }
 0x410   :  { %v630_v60 = vsel %vm596_vm2, %v3919_v59, 0.0 }
 0x41a   :  { %790 = vrot.lane.b32.xlu1 %v4424_v54, %s4210_s2 }
 0x425   :  { %737 = vrot.lane.b32.xlu0 %v4413_v34, %s4210_s2 }
 0x43e   :  { %631 = vadd.xlane.f32.xlu1 %v630_v60 }
 0x44f   :  { %734 = vrot.lane.b32.xlu1 %v4411_v32, %s4210_s2 }
 0x453   :  { %787 = vrot.lane.b32.xlu1 %v4422_v53, %s4210_s2 }
 0x494   :  { %v623_v61 = vpop.xlane.xlu0 %622 }
 0x495   :  { %3920 = vrcp.f32 %v623_v61 }
 0x496   :  { %v626_v54 = vpop.xlane.xlu1 %625 }
 0x497   :  { %3922 = vrcp.f32 %v626_v54 }
 0x49a   :  { %v791_v32 = vpop.permute.xlu1 %790 }
 0x49b   :  { %v796_v21 = vsel %vm483_vm1, %v791_v32, 0 }
 0x49c   :  { %v629_v62 = vpop.xlane.xlu0 %628 }
 0x49d   :  { %3924 = vrcp.f32 %v629_v62 }
 0x49f   :  { %v3921_v63 = vpop.eup %3920 }
 0x4a0   :  { %v637_v0 = vmul.f32 %v3921_v63, %v3913_v48  ;;  %v738_v3 = vpop.permute.xlu0 %737 }
 0x4a1   :  { %v3923_v34 = vpop.eup %3922  ;;  %v743_v7 = vsel %vm483_vm1, %v738_v3, 0 }
 0x4a2   :  { %v638_v2 = vmul.f32 %v3923_v34, %v3915_v50 }
 0x4a4   :  { %v641_v6 = vpack.c.bf16 %v638_v2, %v637_v0 }
 0x4a6   :  { %3554 = vmatmul.mubr.msk.bf16.vlgmr.msra.gmra.mrb[8].mxu1 %vm596_vm2, %v641_v6 }
 0x4a7   :  { %3564 = vmatpush3.bf16.xpose.msra.mxu1 %v743_v7  ;;  %3565 = vmatprep.mubr.msk.bf16.mxu1 %vm4222_vm0, %v4221_v13  ;;  %v3925_v9 = vpop.eup %3924 }
 0x4a8   :  { %3575 = vmatprep.subr.bf16.mxu1 %v4221_v13  ;;  %v639_v14 = vmul.f32 %v3925_v9, %v3917_v52 }
 0x4cb   :  { %v632_v53 = vpop.xlane.xlu1 %631 }
 0x4cc   :  { %3926 = vrcp.f32 %v632_v53 }
 0x4cf   :  { %v735_v8 = vpop.permute.xlu1 %734 }
 0x4d0   :  { %3566 = vmatmul.mubr.msk.bf16.vlgmr.msra.gmra.mrb[12].mxu1 %vm483_vm1, %v735_v8 }
 0x4d1   :  { %3577 = vmatprep.mubr.msk.bf16.mxu1 %vm4222_vm0, %v4221_v13 }
 0x4d3   :  { %v788_v22 = vpop.permute.xlu1 %787 }
 0x4d6   :  { %v3927_v12 = vpop.eup %3926 }
 0x4d7   :  { %v640_v17 = vmul.f32 %v3927_v12, %v3919_v59 }
 0x4d9   :  { %v642_v19 = vpack.c.bf16 %v640_v17, %v639_v14 }
 0x4db   :  { %3560 = vmatmul.mubr.msk.bf16.vlgmr.msra.gmra.mrb[12].mxu0 %vm596_vm2, %v642_v19 }
 0x4dc   :  { %3570 = vmatpush3.bf16.xpose.msra.mxu0 %v796_v21  ;;  %3571 = vmatprep.mubr.msk.bf16.mxu0 %vm4222_vm0, %v4221_v13 }
 0x4dd   :  { %3581 = vmatprep.subr.bf16.mxu0 %v4221_v13 }
 0x4e3   :  { %3572 = vmatmul.mubr.msk.bf16.vlgmr.msra.gmra.mrb[16].mxu0 %vm483_vm1, %v788_v22 }
 0x4e4   :  { %3583 = vmatprep.mubr.msk.bf16.mxu0 %vm4222_vm0, %v4221_v13 }
 0x579   :  { %v4487_v24 = vpop.f32.mrb[8].mxu1 }
 0x57a   :  { %v3555_v25 = vpop.f32.mrb[9].mxu1 }
 0x57b   :  { %v4489_v26 = vpop.f32.mrb[10].mxu1 }
 0x57c   :  { %v731_v27 = vpack.c.bf16 %v4489_v26, %v4487_v24  ;;  %v3556_v28 = vpop.f32.mrb[11].mxu1 }
 0x5a3   :  { %v779_v29 = vpop.f32.mrb[12].mxu1 }
 0x5a4   :  { %v839_v30 = vmul.f32 0.125, %v779_v29  ;;  %v3567_v31 = vpop.f32.mrb[13].mxu1 }
 0x5a5   :  { %v782_v33 = vpop.f32.mrb[14].mxu1 }
 0x5a6   :  { %v840_v35 = vmul.f32 0.125, %v782_v33  ;;  %v3568_v36 = vpop.f32.mrb[15].mxu1  ;;  %v843_v37 = vadd.f32 %v839_v30, %v4446_v1 }
 0x5a8   :  { %v847_v38 = vsel %vm596_vm2, %v843_v37, -inf  ;;  %v844_v40 = vadd.f32 %v840_v35, %v4446_v1 }
 0x5a9   :  { %848 = vmax.xlane.f32.xlu0 %v847_v38 }
 0x5aa   :  { %v850_v41 = vsel %vm596_vm2, %v844_v40, -inf }
 0x5ab   :  { %851 = vmax.xlane.f32.xlu1 %v850_v41 }
 0x5ae   :  { %v4497_v42 = vpop.f32.mrb[12].mxu0 }
 0x5af   :  { %v3561_v43 = vpop.f32.mrb[13].mxu0 }
 0x5b0   :  { %v4499_v45 = vpop.f32.mrb[14].mxu0 }
 0x5b1   :  { %v732_v47 = vpack.c.bf16 %v4499_v45, %v4497_v42  ;;  %v3562_v48 = vpop.f32.mrb[15].mxu0 }
 0x5b6   :  { %v832_v49 = vpop.f32.mrb[16].mxu0 }
 0x5b7   :  { %v841_v50 = vmul.f32 0.125, %v832_v49  ;;  %v3573_v51 = vpop.f32.mrb[17].mxu0  ;;  %v3768_v49 = vld [vmem:[#allocation8] sm:$0xff]  }
 0x5b8   :  { %v835_v52 = vpop.f32.mrb[18].mxu0  ;;  %v3770_v51 = vld [vmem:[#allocation8 + $0x10] sm:$0xff]  }
 0x5b9   :  { %v842_v55 = vmul.f32 0.125, %v835_v52  ;;  %v3574_v56 = vpop.f32.mrb[19].mxu0  ;;  %v845_v57 = vadd.f32 %v841_v50, %v4453_v23  ;;  %v3769_v50 = vld [vmem:[#allocation8 + $0x8] sm:$0xff]   ;;  %v3771_v52 = vld [vmem:[#allocation8 + $0x18] sm:$0xff]  }
 0x5ba   :  { %v3773_v56 = vld [vmem:[#allocation8 + $0x28] sm:$0xff]  }
 0x5bb   :  { %v853_v58 = vsel %vm596_vm2, %v845_v57, -inf  ;;  %v846_v59 = vadd.f32 %v842_v55, %v4453_v23  ;;  %v3772_v55 = vld [vmem:[#allocation8 + $0x20] sm:$0xff]  }
 0x5bc   :  { %854 = vmax.xlane.f32.xlu0 %v853_v58  ;;  %v3775_v58 = vld [vmem:[#allocation8 + $0x38] sm:$0xff]  }
 0x5bd   :  { %v856_v60 = vsel %vm596_vm2, %v846_v59, -inf }
 0x5c0   :  { %857 = vmax.xlane.f32.xlu0 %v856_v60 }
 0x636   :  { %v849_v61 = vpop.xlane.xlu0 %848 }
 0x637   :  { %v859_v54 = vsub.f32 %v843_v37, %v849_v61 }
 0x638   :  { %v852_v62 = vpop.xlane.xlu1 %851 }
 0x639   :  { %v863_v63 = vmul.f32 1.442695, %v859_v54  ;;  %v860_v34 = vsub.f32 %v844_v40, %v852_v62 }
 0x63b   :  { %3928 = vpow2.f32 %v863_v63  ;;  %v865_v0 = vmul.f32 1.442695, %v860_v34 }
 0x63d   :  { %3930 = vpow2.f32 %v865_v0 }
 0x645   :  { %v3929_v2 = vpop.eup %3928 }
 0x646   :  { %v871_v3 = vsel %vm596_vm2, %v3929_v2, 0.0 }
 0x647   :  { %v3931_v6 = vpop.eup %3930  ;;  %872 = vadd.xlane.f32.xlu0 %v871_v3 }
 0x648   :  { %v874_v7 = vsel %vm596_vm2, %v3931_v6, 0.0 }
 0x649   :  { %875 = vadd.xlane.f32.xlu1 %v874_v7  ;;  %v855_v32 = vpop.xlane.xlu0 %854 }
 0x64a   :  { %v861_v53 = vsub.f32 %v845_v57, %v855_v32  ;;  %v3774_v57 = vld [vmem:[#allocation8 + $0x30] sm:$0xff]  }
 0x64c   :  { %v867_v8 = vmul.f32 1.442695, %v861_v53 }
 0x64d   :  { %v858_v9 = vpop.xlane.xlu0 %857 }
 0x64e   :  { %3932 = vpow2.f32 %v867_v8  ;;  %v862_v12 = vsub.f32 %v846_v59, %v858_v9  ;;  %v1021_v8 = vld [vmem:[#allocation5 + $0x3] ss:$0 sm:$0xff] }
 0x650   :  { %v869_v14 = vmul.f32 1.442695, %v862_v12 }
 0x652   :  { %3934 = vpow2.f32 %v869_v14 }
 0x658   :  { %v3933_v17 = vpop.eup %3932 }
 0x659   :  { %v877_v19 = vsel %vm596_vm2, %v3933_v17, 0.0 }
 0x65a   :  { %878 = vadd.xlane.f32.xlu0 %v877_v19 }
 0x65c   :  { %v3935_v21 = vpop.eup %3934 }
 0x65d   :  { %v880_v22 = vsel %vm596_vm2, %v3935_v21, 0.0 }
 0x65e   :  { %881 = vadd.xlane.f32.xlu1 %v880_v22 }
 0x66f   :  { %942 = vrot.lane.b32.xlu1 %v4417_v44, %s4210_s2 }
 0x670   :  { %894 = vrot.lane.b32.xlu0 %v4419_v46, %s4210_s2 }
 0x6d4   :  { %v873_v28 = vpop.xlane.xlu0 %872 }
 0x6d6   :  { %v876_v25 = vpop.xlane.xlu1 %875 }
 0x6d7   :  { %3936 = vrcp.f32 %v876_v25  ;;  %v3778_v25 = vld [vmem:[#allocation10 + $0x4] ss:$8 sps:$4 sm:$0xff]  }
 0x6d8   :  { %3938 = vrcp.f32 %v873_v28  ;;  %v3781_v28 = vld [vmem:[#allocation10 + $0x14] ss:$8 sps:$4 sm:$0xff]  }
 0x6e1   :  { %v3937_v29 = vpop.eup %3936 }
 0x6e2   :  { %v3939_v31 = vpop.eup %3938  ;;  %v888_v33 = vmul.f32 %v3937_v29, %v3931_v6  ;;  %v3779_v29 = vld [vmem:[#allocation10 + $0x10] ss:$8 sps:$4 sm:$0xff]  }
 0x6e3   :  { %v887_v35 = vmul.f32 %v3939_v31, %v3929_v2 }
 0x6e5   :  { %v891_v38 = vpack.c.bf16 %v888_v33, %v887_v35 }
 0x6e7   :  { %v879_v30 = vpop.xlane.xlu0 %878 }
 0x6e8   :  { %3940 = vrcp.f32 %v879_v30 }
 0x6eb   :  { %v882_v36 = vpop.xlane.xlu1 %881  ;;  %v895_v37 = vpop.permute.xlu0 %894 }
 0x6ec   :  { %3942 = vrcp.f32 %v882_v36  ;;  %3576 = vmatpush3.bf16.msra.mxu1 %v895_v37 }
 0x6ed   :  { %3587 = vmatprep.subr.bf16.mxu1 %v3768_v49 }
 0x6ef   :  { %v943_v40 = vpop.permute.xlu1 %942  ;;  %3578 = vmatmul.mubr.msk.bf16.vlgmr.msra.gmra.mrb[16].mxu1 %vm596_vm2, %v891_v38 }
 0x6f0   :  { %3582 = vmatpush3.bf16.msra.mxu0 %v943_v40  ;;  %3588 = vmatpush3.bf16.msra.mxu1 %v3768_v49  ;;  %v3782_v49 = vld [vmem:[#allocation10 + $0x20] ss:$8 sps:$4 sm:$0xff]  }
 0x6f1   :  { %3589 = vmatprep.subr.bf16.mxu1 %v3769_v50  ;;  %1288 = vmatprep.subr.bf16.mxu0 %v3778_v25 }
 0x6f2   :  { %v3941_v44 = vpop.eup %3940 }
 0x6f3   :  { %v889_v41 = vmul.f32 %v3941_v44, %v3933_v17 }
 0x6f4   :  { %3590 = vmatpush3.bf16.msra.mxu1 %v3769_v50  ;;  %v3787_v50 = vld [vmem:[#allocation10 + $0x34] ss:$8 sps:$4 sm:$0xff]  }
 0x6f5   :  { %3591 = vmatprep.subr.bf16.mxu1 %v3770_v51 }
 0x6f6   :  { %v3943_v46 = vpop.eup %3942 }
 0x6f7   :  { %v890_v43 = vmul.f32 %v3943_v46, %v3935_v21 }
 0x6f8   :  { %3592 = vmatpush3.bf16.msra.mxu1 %v3770_v51  ;;  %v3785_v51 = vld [vmem:[#allocation10 + $0x30] ss:$8 sps:$4 sm:$0xff]  }
 0x6f9   :  { %v892_v48 = vpack.c.bf16 %v890_v43, %v889_v41  ;;  %3593 = vmatprep.subr.bf16.mxu1 %v3771_v52 }
 0x6fb   :  { %3584 = vmatmul.mubr.msk.bf16.vlgmr.msra.gmra.mrb[20].mxu0 %vm596_vm2, %v892_v48  ;;  %v3784_v48 = vld [vmem:[#allocation10 + $0x24] ss:$8 sps:$4 sm:$0xff]  }
 0x6fc   :  { %1320 = vmatprep.mubr.bf16.mxu0 %v4220_v39  ;;  %3594 = vmatpush3.bf16.msra.mxu1 %v3771_v52  ;;  %v3790_v52 = vld [vmem:[#allocation10 + $0x44] ss:$8 sps:$4 sm:$0xff]  }
 0x6fd   :  { %3595 = vmatprep.subr.bf16.mxu1 %v3772_v55 }
 0x700   :  { %3596 = vmatpush3.bf16.msra.mxu1 %v3772_v55  ;;  %v3788_v55 = vld [vmem:[#allocation10 + $0x40] ss:$8 sps:$4 sm:$0xff]  }
 0x701   :  { %3597 = vmatprep.subr.bf16.mxu1 %v3773_v56 }
 0x704   :  { %3598 = vmatpush3.bf16.msra.mxu1 %v3773_v56  ;;  %v3793_v56 = vld [vmem:[#allocation10 + $0x54] ss:$8 sps:$4 sm:$0xff]  }
 0x705   :  { %3599 = vmatprep.subr.bf16.mxu1 %v3774_v57 }
 0x708   :  { %3600 = vmatpush3.bf16.msra.mxu1 %v3774_v57  ;;  %v3791_v57 = vld [vmem:[#allocation10 + $0x50] ss:$8 sps:$4 sm:$0xff]  }
 0x709   :  { %3601 = vmatprep.subr.bf16.mxu1 %v3775_v58 }
 0x70c   :  { %3602 = vmatpush3.bf16.msra.mxu1 %v3775_v58  ;;  %v3796_v58 = vld [vmem:[#allocation10 + $0x64] ss:$8 sps:$4 sm:$0xff]  }
 0x7c2   :  { %v934_v59 = vpop.f32.mrb[16].mxu1 }
 0x7c3   :  { %v3579_v60 = vpop.f32.mrb[17].mxu1 }
 0x7c4   :  { %v937_v61 = vpop.f32.mrb[18].mxu1  ;;  %v3799_v60 = vld [vmem:[#allocation10 + $0x74] ss:$8 sps:$4 sm:$0xff]  }
 0x7c5   :  { %v989_v54 = vpack.c.bf16 %v937_v61, %v934_v59  ;;  %v3580_v62 = vpop.f32.mrb[19].mxu1  ;;  %v3794_v59 = vld [vmem:[#allocation10 + $0x60] ss:$8 sps:$4 sm:$0xff]   ;;  %v3797_v61 = vld [vmem:[#allocation10 + $0x70] ss:$8 sps:$4 sm:$0xff]  }
 0x7c7   :  { %993 = vrot.lane.b32.xlu1 %v989_v54, %s4210_s2 }
 0x7ce   :  { %v982_v63 = vpop.f32.mrb[20].mxu0 }
 0x7cf   :  { %v3585_v34 = vpop.f32.mrb[21].mxu0 }
 0x7d0   :  { %v985_v0 = vpop.f32.mrb[22].mxu0 }
 0x7d1   :  { %v990_v2 = vpack.c.bf16 %v985_v0, %v982_v63  ;;  %v3586_v3 = vpop.f32.mrb[23].mxu0 }
 0x7d3   :  { %995 = vrot.lane.b32.xlu1 %v990_v2, %s4210_s2 }
 0x839   :  { %v994_v6 = vpop.permute.xlu1 %993 }
 0x83a   :  { %v999_v7 = vsel %vm483_vm1, %v731_v27, %v994_v6 }
 0x83b   :  { %3603 = vmatprep.mubr.bf16.mxu1 %v999_v7 }
 0x845   :  { %v996_v32 = vpop.permute.xlu1 %995 }
 0x846   :  { %v1003_v53 = vsel %vm483_vm1, %v732_v47, %v996_v32  ;;  %v3776_v47 = vld [vmem:[#allocation10] ss:$8 sps:$4 sm:$0xff]  }
 0x847   :  { %3604 = vmatmul.mubr.bf16.vlgmr.msra.gmra.mrb[20].mxu1 %v1003_v53  ;;  %1289 = vmatpush1.bf16.msra.mxu0 %v3776_v47 }
 0x848   :  { %1290 = vmatprep.subr.bf16.mxu0 %v3781_v28 }
 0x84b   :  { %1291 = vmatpush1.bf16.msra.mxu0 %v3779_v29 }
 0x84c   :  { %1292 = vmatprep.subr.bf16.mxu0 %v3784_v48  ;;  %v3812_v48 = vld [vmem:[#allocation11 + $0x70] sm:$0xff]  }
 0x84f   :  { %1293 = vmatpush1.bf16.msra.mxu0 %v3782_v49  ;;  %v3813_v49 = vld [vmem:[#allocation11 + $0x30] sm:$0xff]  }
 0x850   :  { %1294 = vmatprep.subr.bf16.mxu0 %v3787_v50  ;;  %v3814_v50 = vld [vmem:[#allocation11 + $0x78] sm:$0xff]  }
 0x853   :  { %1295 = vmatpush1.bf16.msra.mxu0 %v3785_v51  ;;  %v3815_v51 = vld [vmem:[#allocation11 + $0x38] sm:$0xff]  }
 0x854   :  { %1296 = vmatprep.subr.bf16.mxu0 %v3790_v52  ;;  %v1196_v52 = vld [vmem:[#allocation5 + $0x6] ss:$8 sm:$0x3] }
 0x857   :  { %1297 = vmatpush1.bf16.msra.mxu0 %v3788_v55  ;;  %v1201_v55 = vrot.slane %v1196_v52, %v4401_v16 }
 0x858   :  { %1298 = vmatprep.subr.bf16.mxu0 %v3793_v56  ;;  %v1205_v56 = vrot.slane %v1196_v52, %v4404_v18 }
 0x85b   :  { %1299 = vmatpush1.bf16.msra.mxu0 %v3791_v57 }
 0x85c   :  { %1300 = vmatprep.subr.bf16.mxu0 %v3796_v58 }
 0x85f   :  { %1301 = vmatpush1.bf16.msra.mxu0 %v3794_v59 }
 0x860   :  { %1302 = vmatprep.subr.bf16.mxu0 %v3799_v60 }
 0x863   :  { %1303 = vmatpush1.bf16.msra.mxu0 %v3797_v61 }
 0x91a   :  { %v3605_v9 = vpop.f32.mrb[20].mxu1 }
 0x91b   :  { %v1104_v12 = vpop.f32.mrb[21].mxu1  ;;  %v1113_v21 = vadd.f32 %v3605_v9, %v1021_v8 }
 0x91c   :  { %v1105_v14 = vadd.f32 %v1104_v12, %v1021_v8  ;;  %v3606_v17 = vpop.f32.mrb[22].mxu1  ;;  %v1123_v12 = vld [vmem:[#allocation5 + $0x4] ss:$0 sm:$0xff] }
 0x91d   :  { %v1107_v19 = vpop.f32.mrb[23].mxu1  ;;  %v1116_v27 = vadd.f32 %v3606_v17, %v1021_v8  ;;  %v1121_v42 = vadd.f32 %v1113_v21, %v4385_v10 }
 0x91e   :  { %v1108_v22 = vadd.f32 %v1107_v19, %v1021_v8  ;;  %v1119_v24 = vadd.f32 %v1105_v14, %v4378_v4 }
 0x91f   :  { %v1122_v45 = vadd.f32 %v1116_v27, %v4387_v11 }
 0x920   :  { %1125 = vadd.xlane.f32.xlu0 %v1119_v24  ;;  %v1120_v26 = vadd.f32 %v1108_v22, %v4380_v5 }
 0x922   :  { %1127 = vadd.xlane.f32.xlu1 %v1120_v26 }
 0x924   :  { %1129 = vadd.xlane.f32.xlu0 %v1121_v42 }
 0x928   :  { %1131 = vadd.xlane.f32.xlu0 %v1122_v45 }
 0x9ad   :  { %v1126_v4 = vpop.xlane.xlu0 %1125 }
 0x9ae   :  { %v1133_v30 = vmul.f32 0.0078125, %v1126_v4 }
 0x9af   :  { %v1128_v31 = vpop.xlane.xlu1 %1127 }
 0x9b0   :  { %v1137_v5 = vsub.f32 %v1119_v24, %v1133_v30  ;;  %v1134_v33 = vmul.f32 0.0078125, %v1128_v31  ;;  %v1124_v24 = vld [vmem:[#allocation5 + $0x5] ss:$0 sm:$0xff] }
 0x9b1   :  { %v1130_v35 = vpop.xlane.xlu0 %1129 }
 0x9b2   :  { %v1138_v36 = vsub.f32 %v1120_v26, %v1134_v33  ;;  %v1135_v10 = vmul.f32 0.0078125, %v1130_v35  ;;  %v1141_v37 = vmul.f32 %v1137_v5, %v1137_v5  ;;  %v3800_v33 = vld [vmem:[#allocation11 + $0x40] sm:$0xff]  }
 0x9b3   :  { %v3801_v35 = vld [vmem:[#allocation11] sm:$0xff]   ;;  %3418 = vmatprep.subr.bf16.mxu1 %v3800_v33 }
 0x9b4   :  { %v1139_v38 = vsub.f32 %v1121_v42, %v1135_v10  ;;  %1145 = vadd.xlane.f32.xlu0 %v1141_v37  ;;  %v1142_v11 = vmul.f32 %v1138_v36, %v1138_v36  ;;  %3419 = vmatpush3.bf16.msra.mxu1 %v3801_v35  ;;  %v3803_v10 = vld [vmem:[#allocation11 + $0x8] sm:$0xff]   ;;  %v3804_v37 = vld [vmem:[#allocation11 + $0x50] sm:$0xff]  }
 0x9b5   :  { %v1132_v40 = vpop.xlane.xlu0 %1131 }
 0x9b6   :  { %v1136_v44 = vmul.f32 0.0078125, %v1132_v40  ;;  %1147 = vadd.xlane.f32.xlu1 %v1142_v11  ;;  %v1143_v46 = vmul.f32 %v1139_v38, %v1139_v38  ;;  %v3806_v11 = vld [vmem:[#allocation11 + $0x58] sm:$0xff]  }
 0x9b7   :  { %v3807_v40 = vld [vmem:[#allocation11 + $0x18] sm:$0xff]  }
 0x9b8   :  { %v1140_v41 = vsub.f32 %v1122_v45, %v1136_v44  ;;  %1149 = vadd.xlane.f32.xlu0 %v1143_v46  ;;  %v3808_v44 = vld [vmem:[#allocation11 + $0x60] sm:$0xff]  }
 0x9b9   :  { %v3809_v46 = vld [vmem:[#allocation11 + $0x20] sm:$0xff]  }
 0x9ba   :  { %v1144_v43 = vmul.f32 %v1140_v41, %v1140_v41 }
 0x9bc   :  { %1151 = vadd.xlane.f32.xlu1 %v1144_v43  ;;  %v3811_v43 = vld [vmem:[#allocation11 + $0x28] sm:$0xff]  }
 0xa41   :  { %v1146_v54 = vpop.xlane.xlu0 %1145 }
 0xa42   :  { %v1153_v62 = vmul.f32 0.0078125, %v1146_v54 }
 0xa43   :  { %v1148_v63 = vpop.xlane.xlu1 %1147 }
 0xa44   :  { %v1157_v34 = vadd.f32 1e-12, %v1153_v62  ;;  %v1154_v0 = vmul.f32 0.0078125, %v1148_v63 }
 0xa45   :  { %v1150_v2 = vpop.xlane.xlu0 %1149 }
 0xa46   :  { %3944 = vrsqrt.f32 %v1157_v34  ;;  %v1158_v3 = vadd.f32 1e-12, %v1154_v0  ;;  %v1155_v6 = vmul.f32 0.0078125, %v1150_v2 }
 0xa48   :  { %3946 = vrsqrt.f32 %v1158_v3  ;;  %v1159_v7 = vadd.f32 1e-12, %v1155_v6 }
 0xa49   :  { %v1152_v32 = vpop.xlane.xlu1 %1151 }
 0xa4a   :  { %3948 = vrsqrt.f32 %v1159_v7  ;;  %v1156_v53 = vmul.f32 0.0078125, %v1152_v32 }
 0xa4c   :  { %v1160_v8 = vadd.f32 1e-12, %v1156_v53 }
 0xa4e   :  { %3950 = vrsqrt.f32 %v1160_v8 }
 0xa50   :  { %v3945_v9 = vpop.eup %3944 }
 0xa51   :  { %v1165_v14 = vmul.f32 %v3945_v9, %v1137_v5 }
 0xa52   :  { %v3947_v17 = vpop.eup %3946 }
 0xa53   :  { %v1166_v19 = vmul.f32 %v3947_v17, %v1138_v36  ;;  %v1169_v21 = vmul.f32 %v1165_v14, %v1123_v12  ;;  %v3802_v36 = vld [vmem:[#allocation11 + $0x48] sm:$0xff]  }
 0xa54   :  { %v3949_v22 = vpop.eup %3948  ;;  %3420 = vmatprep.subr.bf16.mxu1 %v3802_v36 }
 0xa55   :  { %v1170_v26 = vmul.f32 %v1166_v19, %v1123_v12  ;;  %v4532_v27 = vadd.f32 %v1169_v21, %v1124_v24  ;;  %v1167_v45 = vmul.f32 %v3949_v22, %v1139_v38  ;;  %3421 = vmatpush3.bf16.msra.mxu1 %v3803_v10  ;;  %v3805_v38 = vld [vmem:[#allocation11 + $0x10] sm:$0xff]  }
 0xa56   :  { %3422 = vmatprep.subr.bf16.mxu1 %v3804_v37 }
 0xa57   :  { %v4534_v42 = vadd.f32 %v1170_v26, %v1124_v24  ;;  %v1171_v29 = vmul.f32 %v1167_v45, %v1123_v12 }
 0xa58   :  { %v3951_v47 = vpop.eup %3950 }
 0xa59   :  { %v1177_v25 = vpack.c.bf16 %v4534_v42, %v4532_v27  ;;  %v1168_v28 = vmul.f32 %v3951_v47, %v1140_v41  ;;  %v4541_v31 = vadd.f32 %v1171_v29, %v1124_v24  ;;  %3423 = vmatpush3.bf16.msra.mxu1 %v3805_v38  ;;  %v3810_v41 = vld [vmem:[#allocation11 + $0x68] sm:$0xff]  }
 0xa5a   :  { %3424 = vmatprep.subr.bf16.mxu1 %v3806_v11 }
 0xa5b   :  { %1321 = vmatmul.mubr.bf16.vlgmr.msra.gmra.mrb[24].mxu0 %v1177_v25  ;;  %v1172_v4 = vmul.f32 %v1168_v28, %v1123_v12 }
 0xa5c   :  { %1330 = vmatprep.mubr.bf16.mxu0 %v4220_v39 }
 0xa5d   :  { %v4539_v30 = vadd.f32 %v1172_v4, %v1124_v24  ;;  %3425 = vmatpush3.bf16.msra.mxu1 %v3807_v40 }
 0xa5e   :  { %3426 = vmatprep.subr.bf16.mxu1 %v3808_v44 }
 0xa5f   :  { %v1178_v5 = vpack.c.bf16 %v4539_v30, %v4541_v31 }
 0xa61   :  { %3427 = vmatpush3.bf16.msra.mxu1 %v3809_v46 }
 0xa62   :  { %3428 = vmatprep.subr.bf16.mxu1 %v3810_v41 }
 0xa63   :  { %1331 = vmatmul.mubr.bf16.gmra.mrb[28].mxu0 %v1178_v5 }
 0xa64   :  { %1866 = vmatprep.mubr.bf16.mxu0 %v4220_v39 }
 0xa65   :  { %3429 = vmatpush3.bf16.msra.mxu1 %v3811_v43 }
 0xa66   :  { %3430 = vmatprep.subr.bf16.mxu1 %v3812_v48 }
 0xa69   :  { %3431 = vmatpush3.bf16.msra.mxu1 %v3813_v49 }
 0xa6a   :  { %3432 = vmatprep.subr.bf16.mxu1 %v3814_v50 }
 0xa6d   :  { %3433 = vmatpush3.bf16.msra.mxu1 %v3815_v51 }
 0xb2e   :  { %v1322_v57 = vpop.f32.mrb[24].mxu0 }
 0xb2f   :  { %v4548_v58 = vadd.f32 %v1322_v57, %v1201_v55  ;;  %v1324_v59 = vpop.f32.mrb[25].mxu0 }
 0xb30   :  { %v4550_v60 = vadd.f32 %v1324_v59, %v1205_v56  ;;  %v1326_v61 = vpop.f32.mrb[26].mxu0 }
 0xb31   :  { %v1341_v54 = vmul.f32 %v4548_v58, %v4548_v58  ;;  %v4554_v62 = vadd.f32 %v1326_v61, %v1201_v55  ;;  %v1328_v63 = vpop.f32.mrb[27].mxu0 }
 0xb32   :  { %v1342_v34 = vmul.f32 %v4550_v60, %v4550_v60  ;;  %v4558_v0 = vadd.f32 %v1328_v63, %v1205_v56 }
 0xb33   :  { %v1349_v2 = vmul.f32 %v1341_v54, %v4548_v58  ;;  %v1343_v3 = vmul.f32 %v4554_v62, %v4554_v62 }
 0xb34   :  { %v1350_v6 = vmul.f32 %v1342_v34, %v4550_v60  ;;  %v1344_v7 = vmul.f32 %v4558_v0, %v4558_v0 }
 0xb35   :  { %v1357_v32 = vmul.f32 0.044715, %v1349_v2  ;;  %v1351_v53 = vmul.f32 %v1343_v3, %v4554_v62 }
 0xb36   :  { %v1358_v8 = vmul.f32 0.044715, %v1350_v6  ;;  %v1352_v9 = vmul.f32 %v1344_v7, %v4558_v0  ;;  %v1332_v12 = vpop.f32.mrb[28].mxu0 }
 0xb37   :  { %v1365_v14 = vadd.f32 %v1357_v32, %v4548_v58  ;;  %v1359_v17 = vmul.f32 0.044715, %v1351_v53  ;;  %v4569_v19 = vadd.f32 %v1332_v12, %v1201_v55  ;;  %v1334_v21 = vpop.f32.mrb[29].mxu0 }
 0xb38   :  { %v1366_v22 = vadd.f32 %v1358_v8, %v4550_v60  ;;  %v1360_v24 = vmul.f32 0.044715, %v1352_v9  ;;  %v4572_v26 = vadd.f32 %v1334_v21, %v1205_v56  ;;  %v1336_v45 = vpop.f32.mrb[30].mxu0 }
 0xb39   :  { %v1373_v47 = vmul.f32 0.7978846, %v1365_v14  ;;  %v1367_v25 = vadd.f32 %v1359_v17, %v4554_v62  ;;  %v1345_v28 = vmul.f32 %v4569_v19, %v4569_v19  ;;  %v4577_v29 = vadd.f32 %v1336_v45, %v1201_v55  ;;  %v1338_v4 = vpop.f32.mrb[31].mxu0 }
 0xb3a   :  { %v1374_v5 = vmul.f32 0.7978846, %v1366_v22  ;;  %v1368_v33 = vadd.f32 %v1360_v24, %v4558_v0  ;;  %v1346_v35 = vmul.f32 %v4572_v26, %v4572_v26  ;;  %v4582_v36 = vadd.f32 %v1338_v4, %v1205_v56 }
 0xb3b   :  { %3952 = vtanh.f32 %v1373_v47  ;;  %v1375_v10 = vmul.f32 0.7978846, %v1367_v25  ;;  %v1353_v37 = vmul.f32 %v1345_v28, %v4569_v19  ;;  %v1347_v38 = vmul.f32 %v4577_v29, %v4577_v29 }
 0xb3c   :  { %3954 = vtanh.f32 %v1374_v5  ;;  %v1376_v11 = vmul.f32 0.7978846, %v1368_v33  ;;  %v1354_v40 = vmul.f32 %v1346_v35, %v4572_v26  ;;  %v1348_v44 = vmul.f32 %v4582_v36, %v4582_v36 }
 0xb3d   :  { %3956 = vtanh.f32 %v1375_v10  ;;  %v1361_v46 = vmul.f32 0.044715, %v1353_v37  ;;  %v1355_v41 = vmul.f32 %v1347_v38, %v4577_v29 }
 0xb3e   :  { %3958 = vtanh.f32 %v1376_v11  ;;  %v1362_v43 = vmul.f32 0.044715, %v1354_v40  ;;  %v1356_v48 = vmul.f32 %v1348_v44, %v4582_v36 }
 0xb3f   :  { %v1369_v49 = vadd.f32 %v1361_v46, %v4569_v19  ;;  %v1363_v50 = vmul.f32 0.044715, %v1355_v41 }
 0xb40   :  { %v1370_v51 = vadd.f32 %v1362_v43, %v4572_v26  ;;  %v1364_v52 = vmul.f32 0.044715, %v1356_v48  ;;  %v1449_v48 = vld [vmem:[#allocation5 + $0x7] ss:$0 sm:$0xff] }
 0xb41   :  { %v1377_v55 = vmul.f32 0.7978846, %v1369_v49  ;;  %v1371_v56 = vadd.f32 %v1363_v50, %v4577_v29 }
 0xb42   :  { %v1378_v57 = vmul.f32 0.7978846, %v1370_v51  ;;  %v1372_v59 = vadd.f32 %v1364_v52, %v4582_v36 }
 0xb43   :  { %3960 = vtanh.f32 %v1377_v55  ;;  %v1379_v61 = vmul.f32 0.7978846, %v1371_v56 }
 0xb44   :  { %3962 = vtanh.f32 %v1378_v57  ;;  %v1380_v54 = vmul.f32 0.7978846, %v1372_v59 }
 0xb45   :  { %v3953_v63 = vpop.eup %3952  ;;  %3964 = vtanh.f32 %v1379_v61 }
 0xb46   :  { %v3955_v34 = vpop.eup %3954  ;;  %v1389_v2 = vadd.f32 1.0, %v3953_v63  ;;  %3966 = vtanh.f32 %v1380_v54 }
 0xb47   :  { %v3957_v3 = vpop.eup %3956  ;;  %v1390_v6 = vadd.f32 1.0, %v3955_v34 }
 0xb48   :  { %v3959_v7 = vpop.eup %3958  ;;  %v1397_v32 = vmul.f32 0.5, %v1389_v2  ;;  %v1391_v53 = vadd.f32 1.0, %v3957_v3 }
 0xb49   :  { %v1392_v8 = vadd.f32 1.0, %v3959_v7  ;;  %v1398_v9 = vmul.f32 0.5, %v1390_v6  ;;  %v3816_v7 = vld [vmem:[#allocation7 + $0xc0] ss:$12 sps:$4 sm:$0xff]  }
 0xb4a   :  { %v1399_v12 = vmul.f32 0.5, %v1391_v53  ;;  %v1405_v17 = vmul.f32 %v1397_v32, %v4548_v58  ;;  %v3821_v32 = vld [vmem:[#allocation7 + $0xdc] ss:$12 sps:$4 sm:$0xff]  }
 0xb4b   :  { %v1400_v14 = vmul.f32 0.5, %v1392_v8  ;;  %v1406_v24 = vmul.f32 %v1398_v9, %v4550_v60 }
 0xb4c   :  { %v1407_v21 = vmul.f32 %v1399_v12, %v4554_v62 }
 0xb4d   :  { %v3961_v22 = vpop.eup %3960  ;;  %v1408_v45 = vmul.f32 %v1400_v14, %v4558_v0 }
 0xb4e   :  { %v3963_v47 = vpop.eup %3962  ;;  %v1413_v25 = vpack.c.bf16 %v1407_v21, %v1405_v17  ;;  %v1393_v28 = vadd.f32 1.0, %v3961_v22 }
 0xb4f   :  { %v3965_v4 = vpop.eup %3964  ;;  %v1414_v5 = vpack.c.bf16 %v1408_v45, %v1406_v24  ;;  %v1394_v33 = vadd.f32 1.0, %v3963_v47 }
 0xb50   :  { %v3967_v35 = vpop.eup %3966  ;;  %v1395_v10 = vadd.f32 1.0, %v3965_v4  ;;  %v1401_v37 = vmul.f32 0.5, %v1393_v28 }
 0xb51   :  { %1578 = vmatprep.mubr.bf16.mxu1 %v1414_v5  ;;  %v1396_v38 = vadd.f32 1.0, %v3967_v35  ;;  %v1402_v11 = vmul.f32 0.5, %v1394_v33  ;;  %v3824_v5 = vld [vmem:[#allocation7 + $0xf4] ss:$12 sps:$4 sm:$0xff]   ;;  %v3822_v35 = vld [vmem:[#allocation7 + $0xf0] ss:$12 sps:$4 sm:$0xff]  }
 0xb52   :  { %1579 = vmatmul.mubr.bf16.vlgmr.msra.gmra.mrb[24].mxu1 %v1413_v25  ;;  %v1403_v58 = vmul.f32 0.5, %v1395_v10  ;;  %v1409_v40 = vmul.f32 %v1401_v37, %v4569_v19  ;;  %v3825_v33 = vld [vmem:[#allocation7 + $0xc8] ss:$12 sps:$4 sm:$0xff]   ;;  %v3828_v10 = vld [vmem:[#allocation7 + $0x10c] ss:$12 sps:$4 sm:$0xff]  }
 0xb53   :  { %v1404_v62 = vmul.f32 0.5, %v1396_v38  ;;  %v1410_v0 = vmul.f32 %v1402_v11, %v4572_v26  ;;  %3607 = vmatprep.subr.bf16.mxu1 %v3825_v33  ;;  %v3829_v37 = vld [vmem:[#allocation7 + $0xe0] ss:$12 sps:$4 sm:$0xff]   ;;  %v3826_v38 = vld [vmem:[#allocation7 + $0x108] ss:$12 sps:$4 sm:$0xff]  }
 0xb54   :  { %v1411_v60 = vmul.f32 %v1403_v58, %v4577_v29  ;;  %3608 = vmatpush3.bf16.msra.mxu1 %v3825_v33  ;;  %v3832_v11 = vld [vmem:[#allocation7 + $0x124] ss:$12 sps:$4 sm:$0xff]  }
 0xb55   :  { %v1412_v44 = vmul.f32 %v1404_v62, %v4582_v36  ;;  %3609 = vmatprep.subr.bf16.mxu1 %v3829_v37  ;;  %v3833_v58 = vld [vmem:[#allocation7 + $0xf8] ss:$12 sps:$4 sm:$0xff]   ;;  %v3830_v62 = vld [vmem:[#allocation7 + $0x120] ss:$12 sps:$4 sm:$0xff]  }
 0xb56   :  { %v1415_v46 = vpack.c.bf16 %v1411_v60, %v1409_v40  ;;  %v3836_v40 = vld [vmem:[#allocation7 + $0x13c] ss:$12 sps:$4 sm:$0xff]  }
 0xb57   :  { %v1416_v41 = vpack.c.bf16 %v1412_v44, %v1410_v0  ;;  %v3837_v60 = vld [vmem:[#allocation7 + $0x110] ss:$12 sps:$4 sm:$0xff]   ;;  %v3834_v0 = vld [vmem:[#allocation7 + $0x138] ss:$12 sps:$4 sm:$0xff]   ;;  %v3840_v44 = vld [vmem:[#allocation7 + $0x154] ss:$12 sps:$4 sm:$0xff]  }
 0xb58   :  { %3610 = vmatpush3.bf16.msra.mxu1 %v3829_v37 }
 0xb59   :  { %1586 = vmatprep.mubr.bf16.mxu1 %v1416_v41  ;;  %3611 = vmatprep.subr.bf16.mxu1 %v3833_v58  ;;  %v3838_v41 = vld [vmem:[#allocation7 + $0x150] ss:$12 sps:$4 sm:$0xff]  }
 0xb5a   :  { %1587 = vmatmul.mubr.bf16.gmra.mrb[28].mxu1 %v1415_v46  ;;  %v3841_v46 = vld [vmem:[#allocation7 + $0x128] ss:$12 sps:$4 sm:$0xff]  }
 0xb5c   :  { %3612 = vmatpush3.bf16.msra.mxu1 %v3833_v58 }
 0xb5d   :  { %3613 = vmatprep.subr.bf16.mxu1 %v3837_v60 }
 0xb60   :  { %3614 = vmatpush3.bf16.msra.mxu1 %v3837_v60 }
 0xb61   :  { %3615 = vmatprep.subr.bf16.mxu1 %v3841_v46 }
 0xb64   :  { %3616 = vmatpush3.bf16.msra.mxu1 %v3841_v46 }
 0xc25   :  { %v3434_v43 = vpop.f32.mrb[24].mxu1 }
 0xc26   :  { %v3435_v49 = vpop.f32.mrb[25].mxu1 }
 0xc27   :  { %v3436_v50 = vadd.f32 %v3435_v49, %v3434_v43  ;;  %v3437_v51 = vpop.f32.mrb[26].mxu1  ;;  %v3842_v43 = vld [vmem:[#allocation7 + $0x168] ss:$12 sps:$4 sm:$0xff]   ;;  %v3845_v49 = vld [vmem:[#allocation7 + $0x140] ss:$12 sps:$4 sm:$0xff]  }
 0xc28   :  { %v3438_v52 = vpop.f32.mrb[27].mxu1  ;;  %3617 = vmatprep.subr.bf16.mxu1 %v3845_v49 }
 0xc29   :  { %v1581_v55 = vadd.f32 %v3436_v50, %v1449_v48  ;;  %v3439_v56 = vadd.f32 %v3438_v52, %v3437_v51  ;;  %3618 = vmatpush3.bf16.msra.mxu1 %v3845_v49  ;;  %v3846_v50 = vld [vmem:[#allocation7 + $0x158] ss:$12 sps:$4 sm:$0xff]   ;;  %v3847_v51 = vld [vmem:[#allocation7 + $0x170] ss:$12 sps:$4 sm:$0xff]  }
 0xc2a   :  { %3619 = vmatprep.subr.bf16.mxu1 %v3846_v50 }
 0xc2b   :  { %v1584_v57 = vadd.f32 %v3439_v56, %v1449_v48  ;;  %v1595_v19 = vadd.f32 %v1581_v55, %v4532_v27  ;;  %v3818_v27 = vld [vmem:[#allocation7 + $0xc4] ss:$12 sps:$4 sm:$0xff]  }
 0xc2c   :  { %1834 = vmatprep.subr.bf16.mxu0 %v3818_v27 }
 0xc2d   :  { %v3440_v29 = vpop.f32.mrb[28].mxu1  ;;  %1601 = vadd.xlane.f32.xlu0 %v1595_v19  ;;  %v1596_v26 = vadd.f32 %v1584_v57, %v4534_v42  ;;  %1835 = vmatpush1.bf16.msra.mxu0 %v3816_v7  ;;  %v3819_v42 = vld [vmem:[#allocation7 + $0xd8] ss:$12 sps:$4 sm:$0xff]  }
 0xc2e   :  { %v3441_v36 = vpop.f32.mrb[29].mxu1  ;;  %1836 = vmatprep.subr.bf16.mxu0 %v3821_v32  ;;  %3620 = vmatpush3.bf16.msra.mxu1 %v3846_v50  ;;  %v1600_v32 = vld [vmem:[#allocation5 + $0x19] ss:$0 sm:$0xff] }
 0xc2f   :  { %v3442_v59 = vadd.f32 %v3441_v36, %v3440_v29  ;;  %v3443_v61 = vpop.f32.mrb[30].mxu1  ;;  %1603 = vadd.xlane.f32.xlu1 %v1596_v26  ;;  %3621 = vmatprep.subr.bf16.mxu1 %v3847_v51 }
 0xc30   :  { %v3444_v54 = vpop.f32.mrb[31].mxu1 }
 0xc31   :  { %v1589_v63 = vadd.f32 %v3442_v59, %v1449_v48  ;;  %v3445_v34 = vadd.f32 %v3444_v54, %v3443_v61  ;;  %1837 = vmatpush1.bf16.msra.mxu0 %v3819_v42 }
 0xc32   :  { %1838 = vmatprep.subr.bf16.mxu0 %v3824_v5  ;;  %3622 = vmatpush3.bf16.msra.mxu1 %v3847_v51 }
 0xc33   :  { %v1592_v2 = vadd.f32 %v3445_v34, %v1449_v48  ;;  %v1597_v3 = vadd.f32 %v1589_v63, %v4541_v31  ;;  %v3844_v48 = vld [vmem:[#allocation7 + $0x16c] ss:$12 sps:$4 sm:$0xff]   ;;  %3645 = vmatprep.subr.bf16.mxu1 %v4221_v13 }
 0xc35   :  { %1605 = vadd.xlane.f32.xlu0 %v1597_v3  ;;  %v1598_v6 = vadd.f32 %v1592_v2, %v4539_v30  ;;  %1839 = vmatpush1.bf16.msra.mxu0 %v3822_v35  ;;  %v1599_v2 = vld [vmem:[#allocation5 + $0x18] ss:$0 sm:$0xff] }
 0xc36   :  { %1840 = vmatprep.subr.bf16.mxu0 %v3828_v10 }
 0xc37   :  { %1607 = vadd.xlane.f32.xlu1 %v1598_v6 }
 0xc39   :  { %1841 = vmatpush1.bf16.msra.mxu0 %v3826_v38 }
 0xc3a   :  { %1842 = vmatprep.subr.bf16.mxu0 %v3832_v11 }
 0xc3d   :  { %1843 = vmatpush1.bf16.msra.mxu0 %v3830_v62 }
 0xc3e   :  { %1844 = vmatprep.subr.bf16.mxu0 %v3836_v40 }
 0xc41   :  { %1845 = vmatpush1.bf16.msra.mxu0 %v3834_v0 }
 0xc42   :  { %1846 = vmatprep.subr.bf16.mxu0 %v3840_v44 }
 0xc45   :  { %1847 = vmatpush1.bf16.msra.mxu0 %v3838_v41 }
 0xc46   :  { %1848 = vmatprep.subr.bf16.mxu0 %v3844_v48 }
 0xc49   :  { %1849 = vmatpush1.bf16.msra.mxu0 %v3842_v43 }
 0xc4a   :  { %3627 = vmatprep.subr.bf16.mxu0 %v4221_v13 }
 0xcba   :  { %v1602_v53 = vpop.xlane.xlu0 %1601 }
 0xcbb   :  { %v1609_v8 = vmul.f32 0.0078125, %v1602_v53 }
 0xcbc   :  { %v1604_v9 = vpop.xlane.xlu1 %1603 }
 0xcbd   :  { %v4608_v12 = vsub.f32 %v1595_v19, %v1609_v8  ;;  %v1610_v14 = vmul.f32 0.0078125, %v1604_v9 }
 0xcbf   :  { %v4610_v17 = vsub.f32 %v1596_v26, %v1610_v14  ;;  %v1617_v30 = vmul.f32 %v4608_v12, %v4608_v12 }
 0xcc1   :  { %1621 = vadd.xlane.f32.xlu0 %v1617_v30  ;;  %v1618_v31 = vmul.f32 %v4610_v17, %v4610_v17 }
 0xcc2   :  { %v1606_v21 = vpop.xlane.xlu0 %1605 }
 0xcc3   :  { %v1611_v22 = vmul.f32 0.0078125, %v1606_v21  ;;  %1623 = vadd.xlane.f32.xlu1 %v1618_v31 }
 0xcc4   :  { %v1608_v24 = vpop.xlane.xlu1 %1607 }
 0xcc5   :  { %v4616_v45 = vsub.f32 %v1597_v3, %v1611_v22  ;;  %v1612_v47 = vmul.f32 0.0078125, %v1608_v24 }
 0xcc7   :  { %v4618_v25 = vsub.f32 %v1598_v6, %v1612_v47  ;;  %v1619_v28 = vmul.f32 %v4616_v45, %v4616_v45 }
 0xcc9   :  { %1625 = vadd.xlane.f32.xlu0 %v1619_v28  ;;  %v1620_v4 = vmul.f32 %v4618_v25, %v4618_v25 }
 0xccb   :  { %1627 = vadd.xlane.f32.xlu1 %v1620_v4 }
 0xd4e   :  { %v1622_v52 = vpop.xlane.xlu0 %1621 }
 0xd4f   :  { %v1629_v55 = vmul.f32 0.0078125, %v1622_v52 }
 0xd50   :  { %v1624_v56 = vpop.xlane.xlu1 %1623 }
 0xd51   :  { %v1633_v57 = vadd.f32 1e-12, %v1629_v55  ;;  %v1630_v19 = vmul.f32 0.0078125, %v1624_v56 }
 0xd53   :  { %3968 = vrsqrt.f32 %v1633_v57  ;;  %v1634_v29 = vadd.f32 1e-12, %v1630_v19 }
 0xd55   :  { %3970 = vrsqrt.f32 %v1634_v29 }
 0xd56   :  { %v1626_v26 = vpop.xlane.xlu0 %1625 }
 0xd57   :  { %v1631_v36 = vmul.f32 0.0078125, %v1626_v26 }
 0xd58   :  { %v1628_v59 = vpop.xlane.xlu1 %1627 }
 0xd59   :  { %v1635_v61 = vadd.f32 1e-12, %v1631_v36  ;;  %v1632_v54 = vmul.f32 0.0078125, %v1628_v59 }
 0xd5b   :  { %3972 = vrsqrt.f32 %v1635_v61  ;;  %v1636_v63 = vadd.f32 1e-12, %v1632_v54 }
 0xd5d   :  { %v3969_v34 = vpop.eup %3968  ;;  %3974 = vrsqrt.f32 %v1636_v63 }
 0xd5e   :  { %v1641_v3 = vmul.f32 %v3969_v34, %v4608_v12 }
 0xd5f   :  { %v3971_v6 = vpop.eup %3970 }
 0xd60   :  { %v1645_v7 = vmul.f32 %v1641_v3, %v1599_v2  ;;  %v1642_v27 = vmul.f32 %v3971_v6, %v4610_v17 }
 0xd62   :  { %v1646_v42 = vmul.f32 %v1642_v27, %v1599_v2  ;;  %v4628_v53 = vadd.f32 %v1645_v7, %v1600_v32 }
 0xd64   :  { %v4630_v8 = vadd.f32 %v1646_v42, %v1600_v32 }
 0xd65   :  { %v3973_v9 = vpop.eup %3972 }
 0xd66   :  { %v1653_v14 = vpack.c.bf16 %v4630_v8, %v4628_v53  ;;  %v1643_v30 = vmul.f32 %v3973_v9, %v4616_v45  ;;  %v1689_v45 = vld [vmem:[#allocation5 + $0x1a] ss:$8 sm:$0x7] }
 0xd67   :  { %v3975_v31 = vpop.eup %3974  ;;  %v1698_v4 = vrot.slane %v1689_v45, %v4404_v18  ;;  %v1702_v40 = vrot.slane %v1689_v45, %v242_v20 }
 0xd68   :  { %1867 = vmatmul.mubr.bf16.vlgmr.msra.gmra.mrb[32].mxu0 %v1653_v14  ;;  %3623 = vmatprep.mubr.bf16.mxu1 %v1653_v14  ;;  %v1644_v12 = vmul.f32 %v3975_v31, %v4618_v25  ;;  %v1647_v21 = vmul.f32 %v1643_v30, %v1599_v2  ;;  %v1694_v25 = vrot.slane %v1689_v45, %v4401_v16 }
 0xd69   :  { %1876 = vmatprep.mubr.bf16.mxu0 %v4220_v39 }
 0xd6a   :  { %v1648_v17 = vmul.f32 %v1644_v12, %v1599_v2  ;;  %v4637_v22 = vadd.f32 %v1647_v21, %v1600_v32 }
 0xd6c   :  { %v4639_v24 = vadd.f32 %v1648_v17, %v1600_v32 }
 0xd6e   :  { %v1654_v47 = vpack.c.bf16 %v4639_v24, %v4637_v22 }
 0xd70   :  { %1877 = vmatmul.mubr.bf16.gmra.mrb[36].mxu0 %v1654_v47  ;;  %3624 = vmatmul.mubr.bf16.vlgmr.msra.gmra.mrb[32].mxu1 %v1654_v47 }
 0xd71   :  { %3629 = vmatprep.mubr.msk.bf16.mxu0 %vm4222_vm0, %v4221_v13  ;;  %3647 = vmatprep.mubr.msk.bf16.mxu1 %vm4222_vm0, %v4221_v13 }
 0xe3b   :  { %v1868_v28 = vpop.f32.mrb[32].mxu0 }
 0xe3c   :  { %v1870_v5 = vpop.f32.mrb[33].mxu0  ;;  %v1869_v35 = vadd.f32 %v1868_v28, %v1694_v25 }
 0xe3d   :  { %v1872_v33 = vpop.f32.mrb[34].mxu0  ;;  %v1871_v38 = vadd.f32 %v1870_v5, %v1698_v4 }
 0xe3e   :  { %v1873_v10 = vadd.f32 %v1872_v33, %v1694_v25  ;;  %v1874_v37 = vpop.f32.mrb[35].mxu0 }
 0xe3f   :  { %v1875_v11 = vadd.f32 %v1874_v37, %v1698_v4 }
 0xe40   :  { %v4649_v58 = vpack.c.bf16 %v1873_v10, %v1869_v35 }
 0xe41   :  { %v4651_v62 = vpack.c.bf16 %v1875_v11, %v1871_v38 }
 0xe43   :  { %v1878_v60 = vpop.f32.mrb[36].mxu0  ;;  %v3625_v0 = vpop.f32.mrb[32].mxu1  ;;  %v1946_v44 = vsel %vm483_vm1, %v4651_v62, 0 }
 0xe44   :  { %v1880_v46 = vpop.f32.mrb[37].mxu0  ;;  %v1921_v41 = vpop.f32.mrb[33].mxu1  ;;  %3628 = vmatpush3.bf16.xpose.msra.mxu0 %v1946_v44  ;;  %v1879_v49 = vadd.f32 %v1878_v60, %v1694_v25  ;;  %v1930_v50 = vadd.f32 %v3625_v0, %v1702_v40 }
 0xe45   :  { %v1882_v43 = vpop.f32.mrb[38].mxu0  ;;  %v3626_v48 = vpop.f32.mrb[34].mxu1  ;;  %3633 = vmatprep.subr.bf16.mxu0 %v4221_v13  ;;  %v1881_v15 = vadd.f32 %v1880_v46, %v1698_v4  ;;  %v1922_v20 = vadd.f32 %v1921_v41, %v1702_v40 }
 0xe46   :  { %v1883_v51 = vadd.f32 %v1882_v43, %v1694_v25  ;;  %v1933_v52 = vadd.f32 %v3626_v48, %v1702_v40  ;;  %v1884_v55 = vpop.f32.mrb[39].mxu0  ;;  %v1924_v56 = vpop.f32.mrb[35].mxu1 }
 0xe47   :  { %v1885_v57 = vadd.f32 %v1884_v55, %v1698_v4  ;;  %v1925_v19 = vadd.f32 %v1924_v56, %v1702_v40 }
 0xe48   :  { %v4658_v29 = vpack.c.bf16 %v1883_v51, %v1879_v49  ;;  %v4660_v26 = vpack.c.bf16 %v1933_v52, %v1930_v50 }
 0xe49   :  { %v1940_v36 = vpack.c.bf16 %v1885_v57, %v1881_v15  ;;  %v4662_v59 = vpack.c.bf16 %v1925_v19, %v1922_v20 }
 0xe4a   :  { %3646 = vmatpush3.bf16.msra.mxu1 %v4660_v26 }
 0xe4b   :  { %3630 = vmatmul.mubr.msk.bf16.vlgmr.msra.gmra.mrb[40].mxu0 %vm483_vm1, %v4649_v58  ;;  %v1993_v61 = vsel %vm483_vm1, %v1940_v36, 0  ;;  %3657 = vmatprep.subr.bf16.mxu1 %v4221_v13 }
 0xe4c   :  { %3634 = vmatpush3.bf16.xpose.msra.mxu0 %v1993_v61  ;;  %3635 = vmatprep.mubr.msk.bf16.mxu0 %vm4222_vm0, %v4221_v13 }
 0xe4d   :  { %3639 = vmatprep.subr.bf16.mxu0 %v4221_v13 }
 0xe53   :  { %3636 = vmatmul.mubr.msk.bf16.vlgmr.msra.gmra.mrb[44].mxu0 %vm483_vm1, %v4658_v29 }
 0xe54   :  { %3640 = vmatpush3.bf16.msra.mxu0 %v4662_v59  ;;  %3641 = vmatprep.mubr.msk.bf16.mxu0 %vm4222_vm0, %v4221_v13 }
 0xe55   :  { %3651 = vmatprep.subr.bf16.mxu0 %v4221_v13 }
 0xf1e   :  { %v1982_v54 = vpop.f32.mrb[40].mxu0 }
 0xf1f   :  { %v2036_v63 = vmul.f32 0.125, %v1982_v54  ;;  %v3631_v34 = vpop.f32.mrb[41].mxu0 }
 0xf20   :  { %v1985_v2 = vpop.f32.mrb[42].mxu0 }
 0xf21   :  { %v2037_v3 = vmul.f32 0.125, %v1985_v2  ;;  %v3632_v6 = vpop.f32.mrb[43].mxu0  ;;  %v2040_v7 = vadd.f32 %v2036_v63, %v4446_v1 }
 0xf23   :  { %v2044_v27 = vsel %vm596_vm2, %v2040_v7, -inf  ;;  %v2041_v32 = vadd.f32 %v2037_v3, %v4446_v1 }
 0xf24   :  { %2045 = vmax.xlane.f32.xlu0 %v2044_v27 }
 0xf25   :  { %v2047_v42 = vsel %vm596_vm2, %v2041_v32, -inf }
 0xf26   :  { %2048 = vmax.xlane.f32.xlu1 %v2047_v42  ;;  %v2029_v9 = vpop.f32.mrb[44].mxu0 }
 0xf27   :  { %v2038_v14 = vmul.f32 0.125, %v2029_v9  ;;  %v3637_v30 = vpop.f32.mrb[45].mxu0 }
 0xf28   :  { %v2032_v31 = vpop.f32.mrb[46].mxu0 }
 0xf29   :  { %v2039_v12 = vmul.f32 0.125, %v2032_v31  ;;  %v3638_v21 = vpop.f32.mrb[47].mxu0  ;;  %v2042_v17 = vadd.f32 %v2038_v14, %v4453_v23 }
 0xf2b   :  { %v2050_v47 = vsel %vm596_vm2, %v2042_v17, -inf  ;;  %v2043_v45 = vadd.f32 %v2039_v12, %v4453_v23 }
 0xf2c   :  { %2051 = vmax.xlane.f32.xlu0 %v2050_v47 }
 0xf2d   :  { %v2053_v25 = vsel %vm596_vm2, %v2043_v45, -inf }
 0xf2e   :  { %2054 = vmax.xlane.f32.xlu1 %v2053_v25 }
 0xfb1   :  { %v2046_v28 = vpop.xlane.xlu0 %2045 }
 0xfb2   :  { %v2056_v4 = vsub.f32 %v2040_v7, %v2046_v28 }
 0xfb3   :  { %v2049_v5 = vpop.xlane.xlu1 %2048 }
 0xfb4   :  { %v2060_v33 = vmul.f32 1.442695, %v2056_v4  ;;  %v2057_v35 = vsub.f32 %v2041_v32, %v2049_v5 }
 0xfb6   :  { %3976 = vpow2.f32 %v2060_v33  ;;  %v2062_v10 = vmul.f32 1.442695, %v2057_v35 }
 0xfb8   :  { %3978 = vpow2.f32 %v2062_v10 }
 0xfb9   :  { %v2052_v37 = vpop.xlane.xlu0 %2051 }
 0xfba   :  { %v2058_v38 = vsub.f32 %v2042_v17, %v2052_v37 }
 0xfbb   :  { %v2055_v43 = vpop.xlane.xlu1 %2054 }
 0xfbc   :  { %v2064_v11 = vmul.f32 1.442695, %v2058_v38  ;;  %v2059_v48 = vsub.f32 %v2043_v45, %v2055_v43 }
 0xfbe   :  { %3980 = vpow2.f32 %v2064_v11  ;;  %v2066_v49 = vmul.f32 1.442695, %v2059_v48 }
 0xfc0   :  { %v3977_v40 = vpop.eup %3976  ;;  %3982 = vpow2.f32 %v2066_v49 }
 0xfc1   :  { %v2068_v60 = vsel %vm596_vm2, %v3977_v40, 0.0 }
 0xfc2   :  { %v3979_v0 = vpop.eup %3978  ;;  %2069 = vadd.xlane.f32.xlu0 %v2068_v60 }
 0xfc3   :  { %v2071_v44 = vsel %vm596_vm2, %v3979_v0, 0.0 }
 0xfc4   :  { %2072 = vadd.xlane.f32.xlu1 %v2071_v44 }
 0xfc8   :  { %v3981_v46 = vpop.eup %3980 }
 0xfc9   :  { %v2074_v41 = vsel %vm596_vm2, %v3981_v46, 0.0 }
 0xfca   :  { %2075 = vadd.xlane.f32.xlu0 %v2074_v41  ;;  %v3983_v50 = vpop.eup %3982 }
 0xfcb   :  { %v2077_v51 = vsel %vm596_vm2, %v3983_v50, 0.0 }
 0xfd5   :  { %2237 = vrot.lane.b32.xlu1 %v1940_v36, %s4210_s2 }
 0xfe0   :  { %2184 = vrot.lane.b32.xlu0 %v4651_v62, %s4210_s2 }
 0xff9   :  { %2078 = vadd.xlane.f32.xlu1 %v2077_v51 }
0x100a   :  { %2181 = vrot.lane.b32.xlu1 %v4649_v58, %s4210_s2 }
0x100e   :  { %2234 = vrot.lane.b32.xlu1 %v4658_v29, %s4210_s2 }
0x104f   :  { %v2070_v52 = vpop.xlane.xlu0 %2069 }
0x1050   :  { %3984 = vrcp.f32 %v2070_v52 }
0x1051   :  { %v2073_v55 = vpop.xlane.xlu1 %2072 }
0x1052   :  { %3986 = vrcp.f32 %v2073_v55 }
0x1055   :  { %v2238_v58 = vpop.permute.xlu1 %2237 }
0x1056   :  { %v2243_v7 = vsel %vm483_vm1, %v2238_v58, 0 }
0x1057   :  { %v2076_v56 = vpop.xlane.xlu0 %2075 }
0x1058   :  { %3988 = vrcp.f32 %v2076_v56 }
0x105a   :  { %v3985_v15 = vpop.eup %3984 }
0x105b   :  { %v2084_v20 = vmul.f32 %v3985_v15, %v3977_v40  ;;  %v2185_v19 = vpop.permute.xlu0 %2184 }
0x105c   :  { %v3987_v62 = vpop.eup %3986  ;;  %v2190_v61 = vsel %vm483_vm1, %v2185_v19, 0 }
0x105d   :  { %v2085_v57 = vmul.f32 %v3987_v62, %v3979_v0 }
0x105f   :  { %v2088_v36 = vpack.c.bf16 %v2085_v57, %v2084_v20 }
0x1061   :  { %3642 = vmatmul.mubr.msk.bf16.vlgmr.msra.gmra.mrb[48].mxu0 %vm596_vm2, %v2088_v36 }
0x1062   :  { %3652 = vmatpush3.bf16.xpose.msra.mxu0 %v2190_v61  ;;  %3653 = vmatprep.mubr.msk.bf16.mxu0 %vm4222_vm0, %v4221_v13  ;;  %v3989_v63 = vpop.eup %3988 }
0x1063   :  { %3663 = vmatprep.subr.bf16.mxu0 %v4221_v13  ;;  %v2086_v2 = vmul.f32 %v3989_v63, %v3981_v46 }
0x1086   :  { %v2079_v29 = vpop.xlane.xlu1 %2078 }
0x1087   :  { %3990 = vrcp.f32 %v2079_v29 }
0x108a   :  { %v2182_v54 = vpop.permute.xlu1 %2181 }
0x108b   :  { %3654 = vmatmul.mubr.msk.bf16.vlgmr.msra.gmra.mrb[52].mxu0 %vm483_vm1, %v2182_v54 }
0x108c   :  { %3665 = vmatprep.mubr.msk.bf16.mxu0 %vm4222_vm0, %v4221_v13 }
0x108e   :  { %v2235_v27 = vpop.permute.xlu1 %2234 }
0x1091   :  { %v3991_v34 = vpop.eup %3990 }
0x1092   :  { %v2087_v3 = vmul.f32 %v3991_v34, %v3983_v50 }
0x1094   :  { %v2089_v6 = vpack.c.bf16 %v2087_v3, %v2086_v2 }
0x1096   :  { %3648 = vmatmul.mubr.msk.bf16.vlgmr.msra.gmra.mrb[36].mxu1 %vm596_vm2, %v2089_v6 }
0x1097   :  { %3658 = vmatpush3.bf16.xpose.msra.mxu1 %v2243_v7  ;;  %3659 = vmatprep.mubr.msk.bf16.mxu1 %vm4222_vm0, %v4221_v13 }
0x1098   :  { %3669 = vmatprep.subr.bf16.mxu1 %v4221_v13 }
0x109e   :  { %3660 = vmatmul.mubr.msk.bf16.vlgmr.msra.gmra.mrb[40].mxu1 %vm483_vm1, %v2235_v27 }
0x109f   :  { %3671 = vmatprep.mubr.msk.bf16.mxu1 %vm4222_vm0, %v4221_v13 }
0x1134   :  { %v4713_v32 = vpop.f32.mrb[48].mxu0 }
0x1135   :  { %v3643_v42 = vpop.f32.mrb[49].mxu0 }
0x1136   :  { %v4715_v9 = vpop.f32.mrb[50].mxu0 }
0x1137   :  { %v2178_v14 = vpack.c.bf16 %v4715_v9, %v4713_v32  ;;  %v3644_v30 = vpop.f32.mrb[51].mxu0 }
0x115e   :  { %v2226_v31 = vpop.f32.mrb[52].mxu0 }
0x115f   :  { %v2286_v12 = vmul.f32 0.125, %v2226_v31  ;;  %v3655_v21 = vpop.f32.mrb[53].mxu0 }
0x1160   :  { %v2229_v17 = vpop.f32.mrb[54].mxu0 }
0x1161   :  { %v2287_v47 = vmul.f32 0.125, %v2229_v17  ;;  %v3656_v45 = vpop.f32.mrb[55].mxu0  ;;  %v2290_v25 = vadd.f32 %v2286_v12, %v4446_v1 }
0x1163   :  { %v2294_v28 = vsel %vm596_vm2, %v2290_v25, -inf  ;;  %v2291_v4 = vadd.f32 %v2287_v47, %v4446_v1 }
0x1164   :  { %2295 = vmax.xlane.f32.xlu0 %v2294_v28 }
0x1165   :  { %v2297_v5 = vsel %vm596_vm2, %v2291_v4, -inf }
0x1166   :  { %2298 = vmax.xlane.f32.xlu1 %v2297_v5  ;;  %v3849_v5 = vld [vmem:[#allocation8 + $0x48] sm:$0xff]  }
0x1169   :  { %v4723_v33 = vpop.f32.mrb[36].mxu1 }
0x116a   :  { %v3649_v35 = vpop.f32.mrb[37].mxu1 }
0x116b   :  { %v4725_v10 = vpop.f32.mrb[38].mxu1  ;;  %v3850_v35 = vld [vmem:[#allocation8 + $0x50] sm:$0xff]  }
0x116c   :  { %v2179_v37 = vpack.c.bf16 %v4725_v10, %v4723_v33  ;;  %v3650_v38 = vpop.f32.mrb[39].mxu1 }
0x116d   :  { %v3851_v38 = vld [vmem:[#allocation8 + $0x58] sm:$0xff]  }
0x1171   :  { %v2279_v11 = vpop.f32.mrb[40].mxu1 }
0x1172   :  { %v2288_v40 = vmul.f32 0.125, %v2279_v11  ;;  %v3661_v60 = vpop.f32.mrb[41].mxu1  ;;  %v3852_v11 = vld [vmem:[#allocation8 + $0x60] sm:$0xff]  }
0x1173   :  { %v2282_v0 = vpop.f32.mrb[42].mxu1  ;;  %v3854_v60 = vld [vmem:[#allocation8 + $0x70] sm:$0xff]  }
0x1174   :  { %v2289_v44 = vmul.f32 0.125, %v2282_v0  ;;  %v3662_v46 = vpop.f32.mrb[43].mxu1  ;;  %v2292_v1 = vadd.f32 %v2288_v40, %v4453_v23  ;;  %v3853_v40 = vld [vmem:[#allocation8 + $0x68] sm:$0xff]   ;;  %v3855_v0 = vld [vmem:[#allocation8 + $0x78] sm:$0xff]  }
0x1176   :  { %v2300_v41 = vsel %vm596_vm2, %v2292_v1, -inf  ;;  %v2293_v43 = vadd.f32 %v2289_v44, %v4453_v23 }
0x1177   :  { %2301 = vmax.xlane.f32.xlu0 %v2300_v41 }
0x1178   :  { %v2303_v48 = vsel %vm596_vm2, %v2293_v43, -inf }
0x117b   :  { %2304 = vmax.xlane.f32.xlu0 %v2303_v48 }
0x11f1   :  { %v2296_v49 = vpop.xlane.xlu0 %2295 }
0x11f2   :  { %v2306_v50 = vsub.f32 %v2290_v25, %v2296_v49 }
0x11f3   :  { %v2299_v51 = vpop.xlane.xlu1 %2298 }
0x11f4   :  { %v2310_v52 = vmul.f32 1.442695, %v2306_v50  ;;  %v2307_v55 = vsub.f32 %v2291_v4, %v2299_v51  ;;  %v3848_v4 = vld [vmem:[#allocation8 + $0x40] sm:$0xff]  }
0x11f6   :  { %3992 = vpow2.f32 %v2310_v52  ;;  %v2312_v56 = vmul.f32 1.442695, %v2307_v55 }
0x11f8   :  { %3994 = vpow2.f32 %v2312_v56 }
0x1200   :  { %v3993_v15 = vpop.eup %3992 }
0x1201   :  { %v2318_v62 = vsel %vm596_vm2, %v3993_v15, 0.0 }
0x1202   :  { %v3995_v20 = vpop.eup %3994  ;;  %2319 = vadd.xlane.f32.xlu0 %v2318_v62 }
0x1203   :  { %v2321_v57 = vsel %vm596_vm2, %v3995_v20, 0.0 }
0x1204   :  { %v2302_v23 = vpop.xlane.xlu0 %2301  ;;  %2322 = vadd.xlane.f32.xlu1 %v2321_v57 }
0x1205   :  { %v2308_v19 = vsub.f32 %v2292_v1, %v2302_v23 }
0x1207   :  { %v2314_v36 = vmul.f32 1.442695, %v2308_v19 }
0x1208   :  { %v2305_v61 = vpop.xlane.xlu0 %2304 }
0x1209   :  { %3996 = vpow2.f32 %v2314_v36  ;;  %v2309_v58 = vsub.f32 %v2293_v43, %v2305_v61 }
0x120b   :  { %v2316_v29 = vmul.f32 1.442695, %v2309_v58 }
0x120d   :  { %3998 = vpow2.f32 %v2316_v29 }
0x1213   :  { %v3997_v54 = vpop.eup %3996 }
0x1214   :  { %v2324_v63 = vsel %vm596_vm2, %v3997_v54, 0.0 }
0x1215   :  { %2325 = vadd.xlane.f32.xlu0 %v2324_v63  ;;  %v3861_v63 = vld [vmem:[#allocation10 + $0x94] ss:$8 sps:$4 sm:$0xff]  }
0x1217   :  { %v3999_v34 = vpop.eup %3998 }
0x1218   :  { %v2327_v2 = vsel %vm596_vm2, %v3999_v34, 0.0 }
0x1219   :  { %2328 = vadd.xlane.f32.xlu1 %v2327_v2 }
0x122a   :  { %2389 = vrot.lane.b32.xlu1 %v4660_v26, %s4210_s2 }
0x122b   :  { %2341 = vrot.lane.b32.xlu0 %v4662_v59, %s4210_s2 }
0x128f   :  { %v2320_v6 = vpop.xlane.xlu0 %2319 }
0x1291   :  { %v2323_v3 = vpop.xlane.xlu1 %2322 }
0x1292   :  { %4000 = vrcp.f32 %v2323_v3 }
0x1293   :  { %4002 = vrcp.f32 %v2320_v6 }
0x129c   :  { %v4001_v7 = vpop.eup %4000 }
0x129d   :  { %v4003_v42 = vpop.eup %4002  ;;  %v2335_v30 = vmul.f32 %v4001_v7, %v3995_v20  ;;  %v2469_v20 = vld [vmem:[#allocation5 + $0x1b] ss:$0 sm:$0xff] }
0x129e   :  { %v2334_v31 = vmul.f32 %v4003_v42, %v3993_v15 }
0x12a0   :  { %v2338_v17 = vpack.c.bf16 %v2335_v30, %v2334_v31 }
0x12a2   :  { %v2326_v27 = vpop.xlane.xlu0 %2325 }
0x12a3   :  { %4004 = vrcp.f32 %v2326_v27 }
0x12a6   :  { %v2342_v12 = vpop.permute.xlu0 %2341  ;;  %v2329_v21 = vpop.xlane.xlu1 %2328 }
0x12a7   :  { %4006 = vrcp.f32 %v2329_v21  ;;  %3664 = vmatpush3.bf16.msra.mxu0 %v2342_v12 }
0x12a8   :  { %3675 = vmatprep.subr.bf16.mxu0 %v3848_v4 }
0x12aa   :  { %3666 = vmatmul.mubr.msk.bf16.vlgmr.msra.gmra.mrb[56].mxu0 %vm596_vm2, %v2338_v17  ;;  %v2390_v26 = vpop.permute.xlu1 %2389 }
0x12ab   :  { %3670 = vmatpush3.bf16.msra.mxu1 %v2390_v26  ;;  %3676 = vmatpush3.bf16.msra.mxu0 %v3848_v4  ;;  %v3868_v4 = vld [vmem:[#allocation10 + $0xc0] ss:$8 sps:$4 sm:$0xff]  }
0x12ac   :  { %3677 = vmatprep.subr.bf16.mxu0 %v3849_v5 }
0x12ad   :  { %v4005_v59 = vpop.eup %4004 }
0x12ae   :  { %v2336_v45 = vmul.f32 %v4005_v59, %v3997_v54  ;;  %v3858_v54 = vld [vmem:[#allocation10 + $0x84] ss:$8 sps:$4 sm:$0xff]  }
0x12af   :  { %3678 = vmatpush3.bf16.msra.mxu0 %v3849_v5  ;;  %2737 = vmatprep.subr.bf16.mxu1 %v3858_v54  ;;  %v3864_v59 = vld [vmem:[#allocation10 + $0xa4] ss:$8 sps:$4 sm:$0xff]   ;;  %v3873_v5 = vld [vmem:[#allocation10 + $0xd4] ss:$8 sps:$4 sm:$0xff]  }
0x12b0   :  { %3679 = vmatprep.subr.bf16.mxu0 %v3850_v35 }
0x12b1   :  { %v4007_v47 = vpop.eup %4006 }
0x12b2   :  { %v2337_v25 = vmul.f32 %v4007_v47, %v3999_v34  ;;  %v3859_v34 = vld [vmem:[#allocation10 + $0x90] ss:$8 sps:$4 sm:$0xff]   ;;  %v3862_v47 = vld [vmem:[#allocation10 + $0xa0] ss:$8 sps:$4 sm:$0xff]  }
0x12b3   :  { %3680 = vmatpush3.bf16.msra.mxu0 %v3850_v35  ;;  %v3871_v35 = vld [vmem:[#allocation10 + $0xd0] ss:$8 sps:$4 sm:$0xff]  }
0x12b4   :  { %v2339_v28 = vpack.c.bf16 %v2337_v25, %v2336_v45  ;;  %3681 = vmatprep.subr.bf16.mxu0 %v3851_v38  ;;  %v3867_v45 = vld [vmem:[#allocation10 + $0xb4] ss:$8 sps:$4 sm:$0xff]   ;;  %v3865_v25 = vld [vmem:[#allocation10 + $0xb0] ss:$8 sps:$4 sm:$0xff]  }
0x12b6   :  { %3672 = vmatmul.mubr.msk.bf16.vlgmr.msra.gmra.mrb[44].mxu1 %vm596_vm2, %v2339_v28  ;;  %v3870_v28 = vld [vmem:[#allocation10 + $0xc4] ss:$8 sps:$4 sm:$0xff]  }
0x12b7   :  { %2769 = vmatprep.mubr.bf16.mxu1 %v4220_v39  ;;  %3682 = vmatpush3.bf16.msra.mxu0 %v3851_v38  ;;  %v3876_v38 = vld [vmem:[#allocation10 + $0xe4] ss:$8 sps:$4 sm:$0xff]  }
0x12b8   :  { %3683 = vmatprep.subr.bf16.mxu0 %v3852_v11 }
0x12bb   :  { %3684 = vmatpush3.bf16.msra.mxu0 %v3852_v11  ;;  %v3874_v11 = vld [vmem:[#allocation10 + $0xe0] ss:$8 sps:$4 sm:$0xff]  }
0x12bc   :  { %3685 = vmatprep.subr.bf16.mxu0 %v3853_v40 }
0x12bf   :  { %3686 = vmatpush3.bf16.msra.mxu0 %v3853_v40  ;;  %v3879_v40 = vld [vmem:[#allocation10 + $0xf4] ss:$8 sps:$4 sm:$0xff]  }
0x12c0   :  { %3687 = vmatprep.subr.bf16.mxu0 %v3854_v60 }
0x12c3   :  { %3688 = vmatpush3.bf16.msra.mxu0 %v3854_v60  ;;  %v3877_v60 = vld [vmem:[#allocation10 + $0xf0] ss:$8 sps:$4 sm:$0xff]  }
0x12c4   :  { %3689 = vmatprep.subr.bf16.mxu0 %v3855_v0 }
0x12c7   :  { %3690 = vmatpush3.bf16.msra.mxu0 %v3855_v0 }
0x137d   :  { %v2381_v44 = vpop.f32.mrb[56].mxu0 }
0x137e   :  { %v3667_v46 = vpop.f32.mrb[57].mxu0 }
0x137f   :  { %v2384_v1 = vpop.f32.mrb[58].mxu0 }
0x1380   :  { %v2436_v41 = vpack.c.bf16 %v2384_v1, %v2381_v44  ;;  %v3668_v43 = vpop.f32.mrb[59].mxu0 }
0x1382   :  { %2440 = vrot.lane.b32.xlu1 %v2436_v41, %s4210_s2 }
0x1389   :  { %v2429_v48 = vpop.f32.mrb[44].mxu1 }
0x138a   :  { %v3673_v49 = vpop.f32.mrb[45].mxu1 }
0x138b   :  { %v2432_v50 = vpop.f32.mrb[46].mxu1 }
0x138c   :  { %v2437_v51 = vpack.c.bf16 %v2432_v50, %v2429_v48  ;;  %v3674_v52 = vpop.f32.mrb[47].mxu1 }
0x138e   :  { %2442 = vrot.lane.b32.xlu1 %v2437_v51, %s4210_s2  ;;  %s3217_s2 = sshll.u32 %s4224_s1, 4  ;;  %s3218_s2 = int_to_ptr.vmem [resolvable:$true] %s3217_s2 }
0x138f   :  { %s4174_s15 = scalar_lea.vmem %s3218_s2, 32  ;;  %p4179_p7 = scmp.lt.s32.totalorder %s3218_s2, %s3218_s2 }
0x1390   :  { %p4175_p6 = scmp.ne.s32.totalorder %s3218_s2, %s4174_s15  ;;  %p4180_p8 = scmp.lt.s32.totalorder %s4174_s15, %s4174_s15 }
0x1392   :  { %p4181_p9 = por %p4180_p8, %p4179_p7 }
0x1394   :  { %p4182_p10 = pnand %p4181_p9, %p4175_p6 }
0x13f4   :  { %v2441_v55 = vpop.permute.xlu1 %2440 }
0x13f5   :  { %v2446_v56 = vsel %vm483_vm1, %v2178_v14, %v2441_v55 }
0x13f6   :  { %3691 = vmatprep.mubr.bf16.mxu0 %v2446_v56 }
0x1400   :  { %v2443_v15 = vpop.permute.xlu1 %2442 }
0x1401   :  { %v2450_v62 = vsel %vm483_vm1, %v2179_v37, %v2443_v15  ;;  %v3856_v37 = vld [vmem:[#allocation10 + $0x80] ss:$8 sps:$4 sm:$0xff]   ;;  %v2571_v15 = vld [vmem:[#allocation5 + $0x1c] ss:$0 sm:$0xff] }
0x1402   :  { %3692 = vmatmul.mubr.bf16.vlgmr.msra.gmra.mrb[60].mxu0 %v2450_v62  ;;  %2738 = vmatpush1.bf16.msra.mxu1 %v3856_v37 }
0x1403   :  { %2739 = vmatprep.subr.bf16.mxu1 %v3861_v63 }
0x1406   :  { %2740 = vmatpush1.bf16.msra.mxu1 %v3859_v34 }
0x1407   :  { %2741 = vmatprep.subr.bf16.mxu1 %v3864_v59 }
0x140a   :  { %2742 = vmatpush1.bf16.msra.mxu1 %v3862_v47 }
0x140b   :  { %2743 = vmatprep.subr.bf16.mxu1 %v3867_v45 }
0x140e   :  { %2744 = vmatpush1.bf16.msra.mxu1 %v3865_v25 }
0x140f   :  { %2745 = vmatprep.subr.bf16.mxu1 %v3870_v28 }
0x1412   :  { %2746 = vmatpush1.bf16.msra.mxu1 %v3868_v4 }
0x1413   :  { %2747 = vmatprep.subr.bf16.mxu1 %v3873_v5 }
0x1416   :  { %2748 = vmatpush1.bf16.msra.mxu1 %v3871_v35 }
0x1417   :  { %2749 = vmatprep.subr.bf16.mxu1 %v3876_v38 }
0x141a   :  { %2750 = vmatpush1.bf16.msra.mxu1 %v3874_v11 }
0x141b   :  { %2751 = vmatprep.subr.bf16.mxu1 %v3879_v40 }
0x141e   :  { %2752 = vmatpush1.bf16.msra.mxu1 %v3877_v60 }
0x141f   :  { %3695 = vmatprep.subr.bf16.mxu1 %v4221_v13 }
0x14d5   :  { %v3693_v57 = vpop.f32.mrb[60].mxu0 }
0x14d6   :  { %v2552_v23 = vpop.f32.mrb[61].mxu0  ;;  %v2561_v58 = vadd.f32 %v3693_v57, %v2469_v20 }
0x14d7   :  { %v2553_v19 = vadd.f32 %v2552_v23, %v2469_v20  ;;  %v3694_v36 = vpop.f32.mrb[62].mxu0 }
0x14d8   :  { %v2555_v61 = vpop.f32.mrb[63].mxu0  ;;  %v2564_v14 = vadd.f32 %v3694_v36, %v2469_v20  ;;  %v2569_v33 = vadd.f32 %v2561_v58, %v4637_v22  ;;  %v2572_v36 = vld [vmem:[#allocation5 + $0x1d] ss:$0 sm:$0xff] }
0x14d9   :  { %v2556_v29 = vadd.f32 %v2555_v61, %v2469_v20  ;;  %v2567_v32 = vadd.f32 %v2553_v19, %v4628_v53 }
0x14da   :  { %v2570_v10 = vadd.f32 %v2564_v14, %v4639_v24 }
0x14db   :  { %2573 = vadd.xlane.f32.xlu0 %v2567_v32  ;;  %v2568_v9 = vadd.f32 %v2556_v29, %v4630_v8 }
0x14dd   :  { %2575 = vadd.xlane.f32.xlu1 %v2568_v9 }
0x14df   :  { %2577 = vadd.xlane.f32.xlu0 %v2569_v33 }
0x14e3   :  { %2579 = vadd.xlane.f32.xlu0 %v2570_v10 }
0x1568   :  { %v2574_v53 = vpop.xlane.xlu0 %2573 }
0x1569   :  { %v2581_v2 = vmul.f32 0.0078125, %v2574_v53  ;;  %v3880_v53 = vld [vmem:[#allocation11 + $0xc0] sm:$0xff]  }
0x156a   :  { %v2576_v3 = vpop.xlane.xlu1 %2575  ;;  %3482 = vmatprep.subr.bf16.mxu0 %v3880_v53 }
0x156b   :  { %v2585_v8 = vsub.f32 %v2567_v32, %v2581_v2  ;;  %v2582_v6 = vmul.f32 0.0078125, %v2576_v3  ;;  %v3881_v2 = vld [vmem:[#allocation11 + $0x80] sm:$0xff]   ;;  %v3882_v3 = vld [vmem:[#allocation11 + $0xc8] sm:$0xff]  }
0x156c   :  { %v2578_v7 = vpop.xlane.xlu0 %2577  ;;  %3483 = vmatpush3.bf16.msra.mxu0 %v3881_v2 }
0x156d   :  { %v2586_v27 = vsub.f32 %v2568_v9, %v2582_v6  ;;  %v2583_v22 = vmul.f32 0.0078125, %v2578_v7  ;;  %v2589_v42 = vmul.f32 %v2585_v8, %v2585_v8  ;;  %3484 = vmatprep.subr.bf16.mxu0 %v3882_v3  ;;  %v3884_v6 = vld [vmem:[#allocation11 + $0xd0] sm:$0xff]  }
0x156e   :  { %v3885_v7 = vld [vmem:[#allocation11 + $0x90] sm:$0xff]  }
0x156f   :  { %v4758_v30 = vsub.f32 %v2569_v33, %v2583_v22  ;;  %2593 = vadd.xlane.f32.xlu0 %v2589_v42  ;;  %v2590_v24 = vmul.f32 %v2586_v27, %v2586_v27  ;;  %v3888_v22 = vld [vmem:[#allocation11 + $0xe0] sm:$0xff]  }
0x1570   :  { %v2580_v31 = vpop.xlane.xlu0 %2579  ;;  %v3889_v42 = vld [vmem:[#allocation11 + $0xa0] sm:$0xff]  }
0x1571   :  { %v2584_v12 = vmul.f32 0.0078125, %v2580_v31  ;;  %2595 = vadd.xlane.f32.xlu1 %v2590_v24  ;;  %v2591_v21 = vmul.f32 %v4758_v30, %v4758_v30  ;;  %v3891_v24 = vld [vmem:[#allocation11 + $0xa8] sm:$0xff]   ;;  %v3892_v31 = vld [vmem:[#allocation11 + $0xf0] sm:$0xff]  }
0x1573   :  { %v2588_v17 = vsub.f32 %v2570_v10, %v2584_v12  ;;  %2597 = vadd.xlane.f32.xlu0 %v2591_v21  ;;  %v3893_v12 = vld [vmem:[#allocation11 + $0xb0] sm:$0xff]   ;;  %v3894_v21 = vld [vmem:[#allocation11 + $0xf8] sm:$0xff]  }
0x1575   :  { %v2592_v26 = vmul.f32 %v2588_v17, %v2588_v17 }
0x1577   :  { %2599 = vadd.xlane.f32.xlu1 %v2592_v26  ;;  %v2645_v26 = vld [vmem:[#allocation5 + $0x1e] ss:$8 sm:$0x3] }
0x1578   :  { %v2650_v59 = vrot.slane %v2645_v26, %v4401_v16  ;;  %v2654_v47 = vrot.slane %v2645_v26, %v4404_v18 }
0x15fc   :  { %v2594_v0 = vpop.xlane.xlu0 %2593 }
0x15fd   :  { %v2601_v44 = vmul.f32 0.0078125, %v2594_v0 }
0x15fe   :  { %v2596_v46 = vpop.xlane.xlu1 %2595 }
0x15ff   :  { %v2605_v1 = vadd.f32 1e-12, %v2601_v44  ;;  %v2602_v41 = vmul.f32 0.0078125, %v2596_v46 }
0x1600   :  { %v2598_v43 = vpop.xlane.xlu0 %2597 }
0x1601   :  { %4008 = vrsqrt.f32 %v2605_v1  ;;  %v2606_v48 = vadd.f32 1e-12, %v2602_v41  ;;  %v2603_v49 = vmul.f32 0.0078125, %v2598_v43 }
0x1603   :  { %4010 = vrsqrt.f32 %v2606_v48  ;;  %v2607_v50 = vadd.f32 1e-12, %v2603_v49 }
0x1604   :  { %v2600_v51 = vpop.xlane.xlu1 %2599 }
0x1605   :  { %4012 = vrsqrt.f32 %v2607_v50  ;;  %v2604_v52 = vmul.f32 0.0078125, %v2600_v51 }
0x1607   :  { %v2608_v55 = vadd.f32 1e-12, %v2604_v52 }
0x1609   :  { %4014 = vrsqrt.f32 %v2608_v55 }
0x160b   :  { %v4009_v56 = vpop.eup %4008 }
0x160c   :  { %v2613_v62 = vmul.f32 %v4009_v56, %v2585_v8  ;;  %v3883_v8 = vld [vmem:[#allocation11 + $0x88] sm:$0xff]  }
0x160d   :  { %v4011_v20 = vpop.eup %4010  ;;  %3485 = vmatpush3.bf16.msra.mxu0 %v3883_v8 }
0x160e   :  { %v2614_v57 = vmul.f32 %v4011_v20, %v2586_v27  ;;  %v2617_v23 = vmul.f32 %v2613_v62, %v2571_v15  ;;  %3486 = vmatprep.subr.bf16.mxu0 %v3884_v6  ;;  %v3887_v27 = vld [vmem:[#allocation11 + $0x98] sm:$0xff]  }
0x160f   :  { %v4013_v19 = vpop.eup %4012 }
0x1610   :  { %v2618_v61 = vmul.f32 %v2614_v57, %v2571_v15  ;;  %v4763_v58 = vadd.f32 %v2617_v23, %v2572_v36  ;;  %v2615_v32 = vmul.f32 %v4013_v19, %v4758_v30  ;;  %v3890_v30 = vld [vmem:[#allocation11 + $0xe8] sm:$0xff]  }
0x1611   :  { %3487 = vmatpush3.bf16.msra.mxu0 %v3885_v7 }
0x1612   :  { %v2622_v29 = vadd.f32 %v2618_v61, %v2572_v36  ;;  %v2619_v10 = vmul.f32 %v2615_v32, %v2571_v15 }
0x1613   :  { %v4015_v9 = vpop.eup %4014 }
0x1614   :  { %v2625_v14 = vpack.c.bf16 %v2622_v29, %v4763_v58  ;;  %v2616_v33 = vmul.f32 %v4015_v9, %v2588_v17  ;;  %v4768_v63 = vadd.f32 %v2619_v10, %v2572_v36  ;;  %v3895_v17 = vld [vmem:[#allocation11 + $0xb8] sm:$0xff]  }
0x1616   :  { %2770 = vmatmul.mubr.bf16.vlgmr.msra.gmra.mrb[48].mxu1 %v2625_v14  ;;  %v2620_v37 = vmul.f32 %v2616_v33, %v2571_v15 }
0x1617   :  { %2779 = vmatprep.mubr.bf16.mxu1 %v4220_v39  ;;  %v3886_v39 = vld [vmem:[#allocation11 + $0xd8] sm:$0xff]  }
0x1618   :  { %v2624_v54 = vadd.f32 %v2620_v37, %v2572_v36  ;;  %3488 = vmatprep.subr.bf16.mxu0 %v3886_v39 }
0x1619   :  { %3489 = vmatpush3.bf16.msra.mxu0 %v3887_v27 }
0x161a   :  { %v2626_v34 = vpack.c.bf16 %v2624_v54, %v4768_v63  ;;  %3490 = vmatprep.subr.bf16.mxu0 %v3888_v22 }
0x161d   :  { %3491 = vmatpush3.bf16.msra.mxu0 %v3889_v42 }
0x161e   :  { %2780 = vmatmul.mubr.bf16.gmra.mrb[52].mxu1 %v2626_v34  ;;  %3492 = vmatprep.subr.bf16.mxu0 %v3890_v30 }
0x161f   :  { %3711 = vmatprep.mubr.msk.bf16.mxu1 %vm4222_vm0, %v4221_v13 }
0x1621   :  { %3493 = vmatpush3.bf16.msra.mxu0 %v3891_v24 }
0x1622   :  { %3494 = vmatprep.subr.bf16.mxu0 %v3892_v31 }
0x1625   :  { %3495 = vmatpush3.bf16.msra.mxu0 %v3893_v12 }
0x1626   :  { %3496 = vmatprep.subr.bf16.mxu0 %v3894_v21 }
0x1629   :  { %3497 = vmatpush3.bf16.msra.mxu0 %v3895_v17 }
0x16e9   :  { %v2771_v45 = vpop.f32.mrb[48].mxu1 }
0x16ea   :  { %v4775_v25 = vadd.f32 %v2771_v45, %v2650_v59  ;;  %v2773_v28 = vpop.f32.mrb[49].mxu1 }
0x16eb   :  { %v4777_v4 = vadd.f32 %v2773_v28, %v2654_v47  ;;  %v2775_v5 = vpop.f32.mrb[50].mxu1 }
0x16ec   :  { %v2790_v35 = vmul.f32 %v4775_v25, %v4775_v25  ;;  %v4781_v38 = vadd.f32 %v2775_v5, %v2650_v59  ;;  %v2777_v11 = vpop.f32.mrb[51].mxu1 }
0x16ed   :  { %v2791_v40 = vmul.f32 %v4777_v4, %v4777_v4  ;;  %v4785_v60 = vadd.f32 %v2777_v11, %v2654_v47 }
0x16ee   :  { %v2798_v16 = vmul.f32 %v2790_v35, %v4775_v25  ;;  %v2792_v18 = vmul.f32 %v4781_v38, %v4781_v38 }
0x16ef   :  { %v2799_v0 = vmul.f32 %v2791_v40, %v4777_v4  ;;  %v2793_v44 = vmul.f32 %v4785_v60, %v4785_v60 }
0x16f0   :  { %v2806_v46 = vmul.f32 0.044715, %v2798_v16  ;;  %v2800_v1 = vmul.f32 %v2792_v18, %v4781_v38 }
0x16f1   :  { %v2807_v41 = vmul.f32 0.044715, %v2799_v0  ;;  %v2801_v43 = vmul.f32 %v2793_v44, %v4785_v60  ;;  %v2781_v48 = vpop.f32.mrb[52].mxu1 }
0x16f2   :  { %v2814_v49 = vadd.f32 %v2806_v46, %v4775_v25  ;;  %v2808_v50 = vmul.f32 0.044715, %v2800_v1  ;;  %v4796_v51 = vadd.f32 %v2781_v48, %v2650_v59  ;;  %v2783_v52 = vpop.f32.mrb[53].mxu1 }
0x16f3   :  { %v2815_v55 = vadd.f32 %v2807_v41, %v4777_v4  ;;  %v2809_v56 = vmul.f32 0.044715, %v2801_v43  ;;  %v4799_v15 = vadd.f32 %v2783_v52, %v2654_v47  ;;  %v2785_v62 = vpop.f32.mrb[54].mxu1 }
0x16f4   :  { %v2822_v20 = vmul.f32 0.7978846, %v2814_v49  ;;  %v2816_v57 = vadd.f32 %v2808_v50, %v4781_v38  ;;  %v2794_v23 = vmul.f32 %v4796_v51, %v4796_v51  ;;  %v4804_v19 = vadd.f32 %v2785_v62, %v2650_v59  ;;  %v2787_v36 = vpop.f32.mrb[55].mxu1 }
0x16f5   :  { %v2823_v61 = vmul.f32 0.7978846, %v2815_v55  ;;  %v2817_v29 = vadd.f32 %v2809_v56, %v4785_v60  ;;  %v2795_v32 = vmul.f32 %v4799_v15, %v4799_v15  ;;  %v4809_v9 = vadd.f32 %v2787_v36, %v2654_v47 }
0x16f6   :  { %4016 = vtanh.f32 %v2822_v20  ;;  %v2824_v14 = vmul.f32 0.7978846, %v2816_v57  ;;  %v2802_v33 = vmul.f32 %v2794_v23, %v4796_v51  ;;  %v2796_v10 = vmul.f32 %v4804_v19, %v4804_v19 }
0x16f7   :  { %4018 = vtanh.f32 %v2823_v61  ;;  %v2825_v37 = vmul.f32 0.7978846, %v2817_v29  ;;  %v2803_v54 = vmul.f32 %v2795_v32, %v4799_v15  ;;  %v2797_v34 = vmul.f32 %v4809_v9, %v4809_v9 }
0x16f8   :  { %4020 = vtanh.f32 %v2824_v14  ;;  %v2810_v53 = vmul.f32 0.044715, %v2802_v33  ;;  %v2804_v2 = vmul.f32 %v2796_v10, %v4804_v19  ;;  %v2899_v14 = vld [vmem:[#allocation5 + $0x1f] ss:$0 sm:$0xff] }
0x16f9   :  { %4022 = vtanh.f32 %v2825_v37  ;;  %v2811_v3 = vmul.f32 0.044715, %v2803_v54  ;;  %v2805_v8 = vmul.f32 %v2797_v34, %v4809_v9 }
0x16fa   :  { %v2818_v6 = vadd.f32 %v2810_v53, %v4796_v51  ;;  %v2812_v7 = vmul.f32 0.044715, %v2804_v2 }
0x16fb   :  { %v2819_v39 = vadd.f32 %v2811_v3, %v4799_v15  ;;  %v2813_v27 = vmul.f32 0.044715, %v2805_v8 }
0x16fc   :  { %v2826_v22 = vmul.f32 0.7978846, %v2818_v6  ;;  %v2820_v42 = vadd.f32 %v2812_v7, %v4804_v19 }
0x16fd   :  { %v2827_v30 = vmul.f32 0.7978846, %v2819_v39  ;;  %v2821_v24 = vadd.f32 %v2813_v27, %v4809_v9 }
0x16fe   :  { %4024 = vtanh.f32 %v2826_v22  ;;  %v2828_v31 = vmul.f32 0.7978846, %v2820_v42 }
0x16ff   :  { %4026 = vtanh.f32 %v2827_v30  ;;  %v2829_v12 = vmul.f32 0.7978846, %v2821_v24 }
0x1700   :  { %v4017_v21 = vpop.eup %4016  ;;  %4028 = vtanh.f32 %v2828_v31  ;;  %v3897_v31 = vld [vmem:[#allocation8 + $0x88] sm:$0xff]  }
0x1701   :  { %v4019_v17 = vpop.eup %4018  ;;  %v2838_v26 = vadd.f32 1.0, %v4017_v21  ;;  %4030 = vtanh.f32 %v2829_v12  ;;  %v3899_v12 = vld [vmem:[#allocation8 + $0x98] sm:$0xff]   ;;  %v3900_v21 = vld [vmem:[#allocation8 + $0xa0] sm:$0xff]  }
0x1702   :  { %v4021_v59 = vpop.eup %4020  ;;  %v2839_v47 = vadd.f32 1.0, %v4019_v17  ;;  %v3901_v17 = vld [vmem:[#allocation8 + $0xa8] sm:$0xff]  }
0x1703   :  { %v4023_v45 = vpop.eup %4022  ;;  %v2846_v28 = vmul.f32 0.5, %v2838_v26  ;;  %v2840_v5 = vadd.f32 1.0, %v4021_v59  ;;  %v3902_v26 = vld [vmem:[#allocation8 + $0xb0] sm:$0xff]   ;;  %v3903_v59 = vld [vmem:[#allocation8 + $0xb8] sm:$0xff]  }
0x1704   :  { %v2841_v35 = vadd.f32 1.0, %v4023_v45  ;;  %v2847_v11 = vmul.f32 0.5, %v2839_v47 }
0x1705   :  { %v2848_v40 = vmul.f32 0.5, %v2840_v5  ;;  %v2854_v18 = vmul.f32 %v2846_v28, %v4775_v25 }
0x1706   :  { %v2849_v16 = vmul.f32 0.5, %v2841_v35  ;;  %v2855_v46 = vmul.f32 %v2847_v11, %v4777_v4 }
0x1707   :  { %v2856_v0 = vmul.f32 %v2848_v40, %v4781_v38 }
0x1708   :  { %v4025_v44 = vpop.eup %4024  ;;  %v2857_v1 = vmul.f32 %v2849_v16, %v4785_v60 }
0x1709   :  { %v4027_v41 = vpop.eup %4026  ;;  %v2862_v43 = vpack.c.bf16 %v2856_v0, %v2854_v18  ;;  %v2842_v48 = vadd.f32 1.0, %v4025_v44  ;;  %v3045_v18 = vld [vmem:[#allocation5 + $0x30] ss:$0 sm:$0xff] }
0x170a   :  { %v4029_v49 = vpop.eup %4028  ;;  %v2863_v50 = vpack.c.bf16 %v2857_v1, %v2855_v46  ;;  %v2843_v52 = vadd.f32 1.0, %v4027_v41  ;;  %v3046_v46 = vld [vmem:[#allocation5 + $0x31] ss:$0 sm:$0xff] }
0x170b   :  { %v4031_v55 = vpop.eup %4030  ;;  %v2844_v56 = vadd.f32 1.0, %v4029_v49  ;;  %v2850_v62 = vmul.f32 0.5, %v2842_v48 }
0x170c   :  { %3028 = vmatprep.mubr.bf16.mxu0 %v2863_v50  ;;  %v2845_v20 = vadd.f32 1.0, %v4031_v55  ;;  %v2851_v57 = vmul.f32 0.5, %v2843_v52 }
0x170d   :  { %3029 = vmatmul.mubr.bf16.vlgmr.msra.gmra.mrb[64].mxu0 %v2862_v43  ;;  %v2852_v25 = vmul.f32 0.5, %v2844_v56  ;;  %v2858_v23 = vmul.f32 %v2850_v62, %v4796_v51 }
0x170e   :  { %v2853_v38 = vmul.f32 0.5, %v2845_v20  ;;  %v2859_v60 = vmul.f32 %v2851_v57, %v4799_v15  ;;  %v3092_v20 = vld [vmem:[#allocation5 + $0x32] ss:$0 sm:$0xff] }
0x170f   :  { %v2860_v4 = vmul.f32 %v2852_v25, %v4804_v19 }
0x1710   :  { %v2861_v36 = vmul.f32 %v2853_v38, %v4809_v9 }
0x1711   :  { %v2864_v61 = vpack.c.bf16 %v2860_v4, %v2858_v23 }
0x1712   :  { %v2865_v29 = vpack.c.bf16 %v2861_v36, %v2859_v60  ;;  %v3191_v60 = vld [vmem:[#allocation5 + $0x33] ss:$0 sm:$0xff] }
0x1714   :  { %3035 = vmatprep.mubr.bf16.mxu0 %v2865_v29 }
0x1715   :  { %3036 = vmatmul.mubr.bf16.gmra.mrb[68].mxu0 %v2864_v61 }
0x17e0   :  { %v3498_v32 = vpop.f32.mrb[64].mxu0 }
0x17e1   :  { %v3499_v33 = vpop.f32.mrb[65].mxu0 }
0x17e2   :  { %v3500_v10 = vadd.f32 %v3499_v33, %v3498_v32  ;;  %v3501_v37 = vpop.f32.mrb[66].mxu0  ;;  %v3197_v32 = vld [vmem:[#allocation5 + $0x34] ss:$0 sm:$0xff] }
0x17e3   :  { %v3502_v54 = vpop.f32.mrb[67].mxu0 }
0x17e4   :  { %v3031_v34 = vadd.f32 %v3500_v10, %v2899_v14 }
0x17e6   :  { %v3043_v53 = vadd.f32 %v3031_v34, %v4763_v58  ;;  %v3896_v58 = vld [vmem:[#allocation8 + $0x80] sm:$0xff]  }
0x17e7   :  { %3696 = vmatpush3.bf16.msra.mxu1 %v3896_v58 }
0x17e8   :  { %3047 = vadd.xlane.f32.xlu1 %v3043_v53  ;;  %v3504_v51 = vpop.f32.mrb[68].mxu0  ;;  %3697 = vmatprep.subr.bf16.mxu1 %v4221_v13 }
0x17e9   :  { %v3505_v19 = vpop.f32.mrb[69].mxu0 }
0x17ea   :  { %v3506_v2 = vadd.f32 %v3505_v19, %v3504_v51  ;;  %v3507_v15 = vpop.f32.mrb[70].mxu0 }
0x17eb   :  { %v3508_v3 = vpop.f32.mrb[71].mxu0  ;;  %3698 = vmatpush3.bf16.msra.mxu1 %v3897_v31 }
0x17ec   :  { %v3038_v9 = vadd.f32 %v3506_v2, %v2899_v14  ;;  %3699 = vmatprep.subr.bf16.mxu1 %v4221_v13 }
0x17ee   :  { %v3044_v8 = vadd.f32 %v3038_v9, %v4768_v63  ;;  %v3898_v63 = vld [vmem:[#allocation8 + $0x90] sm:$0xff]  }
0x17ef   :  { %3700 = vmatpush3.bf16.msra.mxu1 %v3898_v63 }
0x17f0   :  { %3049 = vadd.xlane.f32.xlu0 %v3044_v8  ;;  %3701 = vmatprep.subr.bf16.mxu1 %v4221_v13 }
0x17f3   :  { %3702 = vmatpush3.bf16.msra.mxu1 %v3899_v12 }
0x17f4   :  { %3703 = vmatprep.subr.bf16.mxu1 %v4221_v13 }
0x17f7   :  { %3704 = vmatpush3.bf16.msra.mxu1 %v3900_v21 }
0x17f8   :  { %3705 = vmatprep.subr.bf16.mxu1 %v4221_v13 }
0x17fb   :  { %3706 = vmatpush3.bf16.msra.mxu1 %v3901_v17 }
0x17fc   :  { %3707 = vmatprep.subr.bf16.mxu1 %v4221_v13 }
0x17ff   :  { %3708 = vmatpush3.bf16.msra.mxu1 %v3902_v26 }
0x1800   :  { %3709 = vmatprep.subr.bf16.mxu1 %v4221_v13 }
0x1803   :  { %3710 = vmatpush3.bf16.msra.mxu1 %v3903_v59 }
0x1875   :  { %v3048_v6 = vpop.xlane.xlu1 %3047 }
0x1876   :  { %v3051_v7 = vmul.f32 0.0078125, %v3048_v6 }
0x1878   :  { %v3053_v39 = vsub.f32 %v3043_v53, %v3051_v7 }
0x187a   :  { %v3055_v27 = vmul.f32 %v3053_v39, %v3053_v39 }
0x187c   :  { %3057 = vadd.xlane.f32.xlu1 %v3055_v27 }
0x187d   :  { %v3050_v22 = vpop.xlane.xlu0 %3049 }
0x187e   :  { %v3052_v42 = vmul.f32 0.0078125, %v3050_v22 }
0x1880   :  { %v3054_v30 = vsub.f32 %v3044_v8, %v3052_v42 }
0x1882   :  { %v3056_v24 = vmul.f32 %v3054_v30, %v3054_v30 }
0x1884   :  { %3059 = vadd.xlane.f32.xlu0 %v3056_v24 }
0x1909   :  { %v3058_v47 = vpop.xlane.xlu1 %3057 }
0x190a   :  { %v3061_v45 = vmul.f32 0.0078125, %v3058_v47 }
0x190c   :  { %v3063_v28 = vadd.f32 1e-12, %v3061_v45 }
0x190e   :  { %4032 = vrsqrt.f32 %v3063_v28 }
0x1911   :  { %v3060_v5 = vpop.xlane.xlu0 %3059 }
0x1912   :  { %v3062_v35 = vmul.f32 0.0078125, %v3060_v5 }
0x1914   :  { %v3064_v11 = vadd.f32 1e-12, %v3062_v35 }
0x1916   :  { %4034 = vrsqrt.f32 %v3064_v11 }
0x1918   :  { %v4033_v40 = vpop.eup %4032 }
0x1919   :  { %v3067_v16 = vmul.f32 %v4033_v40, %v3053_v39 }
0x191b   :  { %v3069_v0 = vmul.f32 %v3067_v16, %v3045_v18 }
0x191d   :  { %v3071_v41 = vadd.f32 %v3069_v0, %v3046_v46 }
0x191f   :  { %v3073_v13 = vpack.c.bf16 %v3071_v41, %v3071_v41 }
0x1920   :  { %v4035_v44 = vpop.eup %4034 }
0x1921   :  { %v3068_v1 = vmul.f32 %v4035_v44, %v3054_v30  ;;  %v3095_v52 = vunpack.c.l.b16 %v3073_v13 }
0x1923   :  { %v3070_v43 = vmul.f32 %v3068_v1, %v3045_v18 }
0x1925   :  { %v3072_v48 = vadd.f32 %v3070_v43, %v3046_v46 }
0x1927   :  { %v3074_v49 = vpack.c.bf16 %v3072_v48, %v3072_v48 }
0x1929   :  { %v3096_v50 = vunpack.c.l.b16 %v3074_v49 }
0x192b   :  { %v3097_v55 = vrot.slane %v3096_v50, 7 }
0x192d   :  { %v3099_v56 = vsel %vm3098_vm3, %v3097_v55, %v3095_v52 }
0x192e   :  { %v3100_v62 = vpack.c.b16 %v3099_v56, %v3099_v56 }
0x1930   :  { %3712 = vmatmul.mubr.bf16.vlgmr.msra.gmra.mrb[56].mxu1 %v3100_v62 }
0x1a03   :  { %v3184_v57 = vpop.f32.mrb[56].mxu1 }
0x1a04   :  { %v3185_v25 = vadd.f32 %v3184_v57, %v3092_v20  ;;  %v3713_v38 = vpop.f32.mrb[57].mxu1 }
0x1a05   :  { %v3187_v23 = vpop.f32.mrb[58].mxu1 }
0x1a06   :  { %4036 = vtanh.f32 %v3185_v25  ;;  %v3714_v4 = vpop.f32.mrb[59].mxu1 }
0x1a10   :  { %v4037_v36 = vpop.eup %4036 }
0x1a11   :  { %v3192_v61 = vmul.f32 %v4037_v36, %v3191_v60 }
0x1a13   :  { %v3194_v29 = vsel %vm3193_vm4, %v3192_v61, 0.0 }
0x1a14   :  { %3195 = vadd.xlane.f32.xlu0 %v3194_v29 }
0x1aa1   :  { %v3196_v14 = vpop.xlane.xlu0 %3195 }
0x1aa2   :  { %v3198_v33 = vadd.f32 %v3197_v32, %v3196_v14 }
0x1aa4   :  { %v3381_v10 = vmul.f32 -1.442695, %v3198_v33 }
0x1aa6   :  { %4038 = vpow2.f32 %v3381_v10 }
0x1ab0   :  { %v4039_v37 = vpop.eup %4038 }
0x1ab1   :  { %v3202_v54 = vadd.f32 1.0, %v4039_v37 }
0x1ab3   :  { %4040 = vrcp.f32 %v3202_v54 }
0x1abd   :  { %v4041_v34 = vpop.eup %4040 }
0x1abe   :  { %3207 = vperm.xlu1 %3734, %v4041_v34  }
0x1b3d   :  { %v3208_v53 = vpop.permute.xlu1 %3207 }
0x1b3e   :  { %3210 = vst [vmem:[#allocation13] sm:$0x3] %v3208_v53 }
0x1b3f   :  { %4185 = shalt.err (!%p4182_p10)
}
0x1b40   :  { %s4186_s10 = scalar_lea.hbm %s4859_s7, 32 }
0x1b41   :  { %p4187_p11 = scmp.ne.s32.totalorder %s4859_s7, %s4186_s10  ;;  %p4190_p12 = scmp.lt.u32.totalorder %s4186_s10, %s4859_s7 }
0x1b43   :  { %p4192_p13 = pnand %p4190_p12, %p4187_p11 }
0x1b45   :  { %4195 = shalt.err (!%p4192_p13)
}
0x1b46   :  { %3220 = dma.vmem_to_hbm [thread:$0]  %s3218_s2, 32, %s4859_s7, [#allocation4]  }
0x1b47   :  { %4204 = dma.done.wait [#allocation4], 32  }
0x1b48   :  { %4205 = vsyncadd [#allocation4], 4294967264 }
0x1b49   :  { %3224 = vsyncpa [#allocation3], 1 }
0x1b4a   :  { %3225 = vsyncpa [#allocation6], 1 }
0x1b4b   :  { %3226 = vsyncpa [#allocation9], 1 }
0x1b4c   :  { %3227 = vsyncpa [#allocation12], 1 }
0x1b4d   :  { %3228 = vsyncpa [#allocation4], 1 }

</bundles_post_ra>
